<compile_context>
chip_gen: v5e
topology: v5e:2x2
jax: 0.10.0
libtpu: 0.0.40
codegen_flags: <defaults>
</compile_context>

<pallas_src>
import numpy as np
import jax
import jax.numpy as jnp
from jax.experimental import pallas as pl
from jax.experimental.pallas import tpu as pltpu


# ---------------------------------------------------------------------------
# Fused per-block kernel factory
# ---------------------------------------------------------------------------
def make_block_kernel(H, W, Cin, Cmid, Cout, do_pool):
    """[maxpool2x2] -> conv3x3+bias+ReLU -> conv3x3+bias+ReLU, packed layout."""

    def kernel(*refs):
        if do_pool:
            (x_ref, rs_ref, cs_ref, w1_ref, b1_ref, w2_ref, b2_ref,
             o_ref, s1_ref, s2_ref) = refs
        else:
            (x_ref, w1_ref, b1_ref, w2_ref, b2_ref,
             o_ref, s1_ref, s2_ref) = refs

        # ---- prologue: 2x2 max-pool via exact 0/1 selection matmuls --------
        if do_pool:
            x = x_ref[0]                                        # (2H, 2W*Cin)
            top = jnp.dot(rs_ref[0], x, preferred_element_type=jnp.float32)
            bot = jnp.dot(rs_ref[1], x, preferred_element_type=jnp.float32)
            rm = jnp.maximum(top, bot)                          # (H, 2W*Cin)
            ev = jnp.dot(rm, cs_ref[0], preferred_element_type=jnp.float32)
            od = jnp.dot(rm, cs_ref[1], preferred_element_type=jnp.float32)
            xin = jnp.maximum(ev, od)                           # (H, W*Cin)
        else:
            xin = x_ref[0]                                      # (H, W*Cin)

        # ---- conv3x3 (+ folded BN scale in weights) + bias + ReLU ----------
        def conv3x3(src, s_ref, c_in, w_ref, b_ref, c_out):
            wci, wco = W * c_in, W * c_out
            # zero-padded packed image in VMEM scratch
            s_ref[...] = jnp.zeros_like(s_ref)
            s_ref[pl.ds(1, H), pl.ds(c_in, wci)] = src
            acc = jnp.zeros((H, wco), jnp.float32)
            for k in range(9):                                  # unrolled
                kh, kw = k // 3, k % 3
                a = s_ref[pl.ds(kh, H), pl.ds(kw * c_in, wci)]  # (H, W*c_in)
                acc += jnp.dot(a.astype(jnp.bfloat16), w_ref[k],
                               preferred_element_type=jnp.float32)
            return jnp.maximum(acc + b_ref[...], 0.0)           # bias + ReLU

        y1 = conv3x3(xin, s1_ref, Cin, w1_ref, b1_ref, Cmid)    # (H, W*Cmid)
        y2 = conv3x3(y1, s2_ref, Cmid, w2_ref, b2_ref, Cout)    # (H, W*Cout)

        o_ref[...] = y2[None]                                   # dense 128-lane store

    return kernel


# ---------------------------------------------------------------------------
# Per-block wrapper (one pallas_call per EncoderBlock)
# ---------------------------------------------------------------------------
def encoder_block_forward(x_packed, blk):
    """x_packed: (N, H_in, W_in*Cin) f32, returns (N, H, W*Cout) f32."""
    N, H_in, win_c = x_packed.shape
    H, W = blk["H"], blk["W"]
    Cin, Cmid, Cout = blk["Cin"], blk["Cmid"], blk["Cout"]
    do_pool = blk["do_pool"]

    kernel = make_block_kernel(H, W, Cin, Cmid, Cout, do_pool)

    operands = [x_packed]
    in_specs = [pl.BlockSpec((1, H_in, win_c), lambda n: (n, 0, 0))]
    if do_pool:
        operands += [blk["rowsel"], blk["colsel"]]
        in_specs += [
            pl.BlockSpec(blk["rowsel"].shape, lambda n: (0, 0, 0)),
            pl.BlockSpec(blk["colsel"].shape, lambda n: (0, 0, 0)),
        ]
    operands += [blk["w1"], blk["b1"], blk["w2"], blk["b2"]]
    in_specs += [
        pl.BlockSpec(blk["w1"].shape, lambda n: (0, 0, 0)),
        pl.BlockSpec(blk["b1"].shape, lambda n: (0, 0)),
        pl.BlockSpec(blk["w2"].shape, lambda n: (0, 0, 0)),
        pl.BlockSpec(blk["b2"].shape, lambda n: (0, 0)),
    ]

    flops = 2 * N * H * W * 9 * (Cin * Cmid + Cmid * Cout)
    bytes_accessed = (x_packed.size * 4 + N * H * W * Cout * 4
                      + int(blk["w1"].size) * 2 + int(blk["w2"].size) * 2)
    cost = pl.CostEstimate(flops=flops, transcendentals=0,
                           bytes_accessed=bytes_accessed)

    return pl.pallas_call(
        kernel,
        out_shape=jax.ShapeDtypeStruct((N, H, W * Cout), jnp.float32),
        grid=(N,),
        in_specs=in_specs,
        out_specs=pl.BlockSpec((1, H, W * Cout), lambda n: (n, 0, 0)),
        scratch_shapes=[
            pltpu.VMEM((H + 2, (W + 2) * Cin), jnp.float32),
            pltpu.VMEM((H + 2, (W + 2) * Cmid), jnp.float32),
        ],
        compiler_params=pltpu.CompilerParams(
            dimension_semantics=("parallel",)),
        cost_estimate=cost,
    )(*operands)


# ---------------------------------------------------------------------------
# One-time parameter preprocessing (not in the hot path)
# ---------------------------------------------------------------------------
def pack_conv(w_eff, b_eff, W):
    """w_eff: (3,3,Cin,Cout) scale-folded.  Returns block-diagonal bf16
    weights (9, W*Cin, W*Cout) and tiled f32 bias (1, W*Cout)."""
    Cin, Cout = w_eff.shape[2], w_eff.shape[3]
    eye = jnp.eye(W, dtype=jnp.float32)
    w_bd = jnp.stack([jnp.kron(eye, w_eff[kh, kw])
                      for kh in range(3) for kw in range(3)])   # (9, W*Cin, W*Cout)
    b_t = jnp.tile(b_eff, W).reshape(1, W * Cout)
    return w_bd.astype(jnp.bfloat16), b_t.astype(jnp.float32)


def make_pool_selectors(H, W, C):
    """0/1 selection matrices for an in-kernel 2x2 maxpool in packed layout.
    rowsel: (2, H, 2H), colsel: (2, 2*W*C, W*C)."""
    rs = np.zeros((2, H, 2 * H), np.float32)
    for p in range(2):
        rs[p, np.arange(H), 2 * np.arange(H) + p] = 1.0
    cs = np.zeros((2, 2 * W * C, W * C), np.float32)
    for p in range(2):
        for w in range(W):
            for c in range(C):
                cs[p, (2 * w + p) * C + c, w * C + c] = 1.0
    return jnp.asarray(rs), jnp.asarray(cs)


def prepare_params(params, H0, W0):
    prepared = []
    H, W = H0, W0
    for i, block in enumerate(params):
        if i > 0:
            H, W = H // 2, W // 2
        (w1, b1), (w2, b2) = block
        Cin, Cmid = w1.shape[2], w1.shape[3]
        Cout = w2.shape[3]
        w1_bd, b1_t = pack_conv(w1, b1, W)
        w2_bd, b2_t = pack_conv(w2, b2, W)
        blk = dict(H=H, W=W, Cin=Cin, Cmid=Cmid, Cout=Cout, do_pool=(i > 0),
                   w1=w1_bd, b1=b1_t, w2=w2_bd, b2=b2_t)
        if i > 0:
            rs, cs = make_pool_selectors(H, W, Cin)
            blk["rowsel"], blk["colsel"] = rs, cs
        prepared.append(blk)
    return prepared


# ---------------------------------------------------------------------------
# Deterministic parameter init (synthetic — no checkpoint load).
# BN (eval mode) is folded: w_eff = w * gamma/sqrt(var+eps),
# b_eff = (conv_bias - mean) * gamma/sqrt(var+eps) + beta.
# ---------------------------------------------------------------------------
def init_params(key, in_channels, out_channels):
    params = []
    in_cs = [in_channels] + list(out_channels[:-1])
    for in_c, out_c in zip(in_cs, out_channels):
        block = []
        cin = in_c
        for _ in range(2):   # two (conv, norm, act) sub-blocks per EncoderBlock
            key, kw, kb, kg, kbe, km, kv = jax.random.split(key, 7)
            fan_in = 9 * cin
            w = jax.random.normal(kw, (3, 3, cin, out_c), jnp.float32) / jnp.sqrt(fan_in)
            cb = jax.random.normal(kb, (out_c,), jnp.float32) * 0.01
            gamma = jax.random.uniform(kg, (out_c,), jnp.float32, 0.5, 1.5)
            beta = jax.random.normal(kbe, (out_c,), jnp.float32) * 0.1
            mean = jax.random.normal(km, (out_c,), jnp.float32) * 0.1
            var = jax.random.uniform(kv, (out_c,), jnp.float32, 0.5, 1.5)
            scale = gamma / jnp.sqrt(var + 1e-5)
            w_eff = w * scale[None, None, None, :]
            b_eff = (cb - mean) * scale + beta
            block.append((w_eff, b_eff))
            cin = out_c
        params.append(block)
    return params


# ---------------------------------------------------------------------------
# UNetEncoder forward (returns list of per-block outputs, NCHW like PyTorch)
# ---------------------------------------------------------------------------
def unet_encoder_forward(x_nchw, prepared):
    N, C0, H0, W0 = x_nchw.shape
    # NCHW -> packed (N, H, W*C); the chain between blocks stays packed
    # (no transposes in the hot path), only returned outputs go back to NCHW.
    x = jnp.transpose(x_nchw, (0, 2, 3, 1)).reshape(N, H0, W0 * C0)
    outputs = []
    for blk in prepared:
        x = encoder_block_forward(x, blk)
        H, W, Cout = blk["H"], blk["W"], blk["Cout"]
        outputs.append(jnp.transpose(x.reshape(N, H, W, Cout), (0, 3, 1, 2)))
    return outputs


# ---------------------------------------------------------------------------
# Pure-JAX reference (for correctness check)
# ---------------------------------------------------------------------------
def reference_forward(x_nchw, params):
    x = jnp.transpose(x_nchw, (0, 2, 3, 1)).astype(jnp.float32)
    outs = []
    for i, block in enumerate(params):
        if i > 0:
            N, H, W, C = x.shape
            x = jnp.max(x.reshape(N, H // 2, 2, W // 2, 2, C), axis=(2, 4))
        for (w_eff, b_eff) in block:
            y = jax.lax.conv_general_dilated(
                x, w_eff, window_strides=(1, 1), padding=((1, 1), (1, 1)),
                dimension_numbers=("NHWC", "HWIO", "NHWC"),
                precision=jax.lax.Precision.HIGHEST)
            x = jnp.maximum(y + b_eff, 0.0)
        outs.append(jnp.transpose(x, (0, 3, 1, 2)))
    return outs


if __name__ == "__main__":
    key = jax.random.PRNGKey(0)
    kx, kp = jax.random.split(key)

    in_channels = 3
    out_channels = [8, 16, 32]
    N, H0, W0 = 2, 16, 16

    x = jax.random.normal(kx, (N, in_channels, H0, W0), jnp.float32)
    params = init_params(kp, in_channels, out_channels)
    prepared = prepare_params(params, H0, W0)

    fwd = jax.jit(lambda inp: unet_encoder_forward(inp, prepared))
    outs = fwd(x)
    outs = [jax.block_until_ready(o) for o in outs]

    expected = [(2, 8, 16, 16), (2, 16, 8, 8), (2, 32, 4, 4)]
    assert [tuple(o.shape) for o in outs] == expected, [o.shape for o in outs]

    refs = reference_forward(x, params)
    for o, r in zip(outs, refs):
        err = float(jnp.max(jnp.abs(o - r)))
        assert jnp.allclose(o, r, atol=1e-1, rtol=1e-1), f"max abs err {err}"
    assert all(bool(jnp.all(o >= 0)) for o in outs)   # ReLU outputs non-negative

    print("KERNEL_OK")
</pallas_src>

<mosaic_0001>
module attributes {stable_mosaic.version = 11 : i64} {
  func.func @kernel(%arg0: i32, %arg1: memref<1x16x48xf32, #tpu.memory_space<vmem>>, %arg2: memref<9x48x128xbf16, #tpu.memory_space<vmem>>, %arg3: memref<1x128xf32, #tpu.memory_space<vmem>>, %arg4: memref<9x128x128xbf16, #tpu.memory_space<vmem>>, %arg5: memref<1x128xf32, #tpu.memory_space<vmem>>, %arg6: memref<1x16x128xf32, #tpu.memory_space<vmem>>, %arg7: memref<18x54xf32, #tpu.memory_space<vmem>>, %arg8: memref<18x144xf32, #tpu.memory_space<vmem>>) attributes {dimension_semantics = [#tpu.dimension_semantics<parallel>], iteration_bounds = array<i64: 2>, scalar_prefetch = 0 : i64, scratch_operands = 2 : i64, tpu.core_type = #tpu.core_type<tc>, window_params = [{transform_indices = @transform_0, window_bounds = array<i64: 1, 16, 48>}, {pipeline_mode = #tpu.pipeline_mode<synchronous>, transform_indices = @transform_1, window_bounds = array<i64: 9, 48, 128>}, {pipeline_mode = #tpu.pipeline_mode<synchronous>, transform_indices = @transform_2, window_bounds = array<i64: 1, 128>}, {pipeline_mode = #tpu.pipeline_mode<synchronous>, transform_indices = @transform_3, window_bounds = array<i64: 9, 128, 128>}, {pipeline_mode = #tpu.pipeline_mode<synchronous>, transform_indices = @transform_4, window_bounds = array<i64: 1, 128>}, {transform_indices = @transform_5, window_bounds = array<i64: 1, 16, 128>}]} {
    %c0 = arith.constant 0 : index
    %c0_0 = arith.constant 0 : index
    %c0_1 = arith.constant 0 : index
    %0 = vector.load %arg1[%c0, %c0_0, %c0_1] : memref<1x16x48xf32, #tpu.memory_space<vmem>>, vector<1x16x48xf32>
    %1 = vector.shape_cast %0 : vector<1x16x48xf32> to vector<16x48xf32>
    %cst = arith.constant 0.000000e+00 : f32
    %2 = vector.broadcast %cst : f32 to vector<18x54xf32>
    %c0_2 = arith.constant 0 : index
    %c0_3 = arith.constant 0 : index
    %3 = vector.load %arg7[%c0_2, %c0_3] : memref<18x54xf32, #tpu.memory_space<vmem>>, vector<18x54xf32>
    tpu.vector_store %arg7[%c0_2, %c0_3], %2 {strides = array<i32>} : memref<18x54xf32, #tpu.memory_space<vmem>>, vector<18x54xf32>,
    %c1 = arith.constant 1 : index
    %c3 = arith.constant 3 : index
    %4 = vector.load %arg7[%c1, %c3] : memref<18x54xf32, #tpu.memory_space<vmem>>, vector<16x48xf32>
    tpu.vector_store %arg7[%c1, %c3], %1 {strides = array<i32>} : memref<18x54xf32, #tpu.memory_space<vmem>>, vector<16x48xf32>,
    %cst_4 = arith.constant 0.000000e+00 : f32
    %5 = vector.broadcast %cst_4 : f32 to vector<16x128xf32>
    %c0_5 = arith.constant 0 : index
    %c0_6 = arith.constant 0 : index
    %6 = vector.load %arg7[%c0_5, %c0_6] : memref<18x54xf32, #tpu.memory_space<vmem>>, vector<16x48xf32>
    %7 = arith.truncf %6 : vector<16x48xf32> to vector<16x48xbf16>
    %c0_7 = arith.constant 0 : index
    %c0_8 = arith.constant 0 : index
    %c0_9 = arith.constant 0 : index
    %8 = vector.load %arg2[%c0_7, %c0_8, %c0_9] : memref<9x48x128xbf16, #tpu.memory_space<vmem>>, vector<1x48x128xbf16>
    %9 = vector.shape_cast %8 : vector<1x48x128xbf16> to vector<48x128xbf16>
    %cst_10 = arith.constant dense<0.000000e+00> : vector<16x128xf32>
    %10 = tpu.matmul %7, %9, %cst_10 {dimension_numbers = #tpu.dot_dimension_numbers<[1], [0], [0], [1], [0, 0, 1, 1], [], []>} : vector<16x48xbf16>, vector<48x128xbf16>, vector<16x128xf32> -> vector<16x128xf32>
    %11 = arith.addf %5, %10 : vector<16x128xf32>
    %c0_11 = arith.constant 0 : index
    %c3_12 = arith.constant 3 : index
    %12 = vector.load %arg7[%c0_11, %c3_12] : memref<18x54xf32, #tpu.memory_space<vmem>>, vector<16x48xf32>
    %13 = arith.truncf %12 : vector<16x48xf32> to vector<16x48xbf16>
    %c1_13 = arith.constant 1 : index
    %c0_14 = arith.constant 0 : index
    %c0_15 = arith.constant 0 : index
    %14 = vector.load %arg2[%c1_13, %c0_14, %c0_15] : memref<9x48x128xbf16, #tpu.memory_space<vmem>>, vector<1x48x128xbf16>
    %15 = vector.shape_cast %14 : vector<1x48x128xbf16> to vector<48x128xbf16>
    %cst_16 = arith.constant dense<0.000000e+00> : vector<16x128xf32>
    %16 = tpu.matmul %13, %15, %cst_16 {dimension_numbers = #tpu.dot_dimension_numbers<[1], [0], [0], [1], [0, 0, 1, 1], [], []>} : vector<16x48xbf16>, vector<48x128xbf16>, vector<16x128xf32> -> vector<16x128xf32>
    %17 = arith.addf %11, %16 : vector<16x128xf32>
    %c0_17 = arith.constant 0 : index
    %c6 = arith.constant 6 : index
    %18 = vector.load %arg7[%c0_17, %c6] : memref<18x54xf32, #tpu.memory_space<vmem>>, vector<16x48xf32>
    %19 = arith.truncf %18 : vector<16x48xf32> to vector<16x48xbf16>
    %c2 = arith.constant 2 : index
    %c0_18 = arith.constant 0 : index
    %c0_19 = arith.constant 0 : index
    %20 = vector.load %arg2[%c2, %c0_18, %c0_19] : memref<9x48x128xbf16, #tpu.memory_space<vmem>>, vector<1x48x128xbf16>
    %21 = vector.shape_cast %20 : vector<1x48x128xbf16> to vector<48x128xbf16>
    %cst_20 = arith.constant dense<0.000000e+00> : vector<16x128xf32>
    %22 = tpu.matmul %19, %21, %cst_20 {dimension_numbers = #tpu.dot_dimension_numbers<[1], [0], [0], [1], [0, 0, 1, 1], [], []>} : vector<16x48xbf16>, vector<48x128xbf16>, vector<16x128xf32> -> vector<16x128xf32>
    %23 = arith.addf %17, %22 : vector<16x128xf32>
    %c1_21 = arith.constant 1 : index
    %c0_22 = arith.constant 0 : index
    %24 = vector.load %arg7[%c1_21, %c0_22] : memref<18x54xf32, #tpu.memory_space<vmem>>, vector<16x48xf32>
    %25 = arith.truncf %24 : vector<16x48xf32> to vector<16x48xbf16>
    %c3_23 = arith.constant 3 : index
    %c0_24 = arith.constant 0 : index
    %c0_25 = arith.constant 0 : index
    %26 = vector.load %arg2[%c3_23, %c0_24, %c0_25] : memref<9x48x128xbf16, #tpu.memory_space<vmem>>, vector<1x48x128xbf16>
    %27 = vector.shape_cast %26 : vector<1x48x128xbf16> to vector<48x128xbf16>
    %cst_26 = arith.constant dense<0.000000e+00> : vector<16x128xf32>
    %28 = tpu.matmul %25, %27, %cst_26 {dimension_numbers = #tpu.dot_dimension_numbers<[1], [0], [0], [1], [0, 0, 1, 1], [], []>} : vector<16x48xbf16>, vector<48x128xbf16>, vector<16x128xf32> -> vector<16x128xf32>
    %29 = arith.addf %23, %28 : vector<16x128xf32>
    %c1_27 = arith.constant 1 : index
    %c3_28 = arith.constant 3 : index
    %30 = vector.load %arg7[%c1_27, %c3_28] : memref<18x54xf32, #tpu.memory_space<vmem>>, vector<16x48xf32>
    %31 = arith.truncf %30 : vector<16x48xf32> to vector<16x48xbf16>
    %c4 = arith.constant 4 : index
    %c0_29 = arith.constant 0 : index
    %c0_30 = arith.constant 0 : index
    %32 = vector.load %arg2[%c4, %c0_29, %c0_30] : memref<9x48x128xbf16, #tpu.memory_space<vmem>>, vector<1x48x128xbf16>
    %33 = vector.shape_cast %32 : vector<1x48x128xbf16> to vector<48x128xbf16>
    %cst_31 = arith.constant dense<0.000000e+00> : vector<16x128xf32>
    %34 = tpu.matmul %31, %33, %cst_31 {dimension_numbers = #tpu.dot_dimension_numbers<[1], [0], [0], [1], [0, 0, 1, 1], [], []>} : vector<16x48xbf16>, vector<48x128xbf16>, vector<16x128xf32> -> vector<16x128xf32>
    %35 = arith.addf %29, %34 : vector<16x128xf32>
    %c1_32 = arith.constant 1 : index
    %c6_33 = arith.constant 6 : index
    %36 = vector.load %arg7[%c1_32, %c6_33] : memref<18x54xf32, #tpu.memory_space<vmem>>, vector<16x48xf32>
    %37 = arith.truncf %36 : vector<16x48xf32> to vector<16x48xbf16>
    %c5 = arith.constant 5 : index
    %c0_34 = arith.constant 0 : index
    %c0_35 = arith.constant 0 : index
    %38 = vector.load %arg2[%c5, %c0_34, %c0_35] : memref<9x48x128xbf16, #tpu.memory_space<vmem>>, vector<1x48x128xbf16>
    %39 = vector.shape_cast %38 : vector<1x48x128xbf16> to vector<48x128xbf16>
    %cst_36 = arith.constant dense<0.000000e+00> : vector<16x128xf32>
    %40 = tpu.matmul %37, %39, %cst_36 {dimension_numbers = #tpu.dot_dimension_numbers<[1], [0], [0], [1], [0, 0, 1, 1], [], []>} : vector<16x48xbf16>, vector<48x128xbf16>, vector<16x128xf32> -> vector<16x128xf32>
    %41 = arith.addf %35, %40 : vector<16x128xf32>
    %c2_37 = arith.constant 2 : index
    %c0_38 = arith.constant 0 : index
    %42 = vector.load %arg7[%c2_37, %c0_38] : memref<18x54xf32, #tpu.memory_space<vmem>>, vector<16x48xf32>
    %43 = arith.truncf %42 : vector<16x48xf32> to vector<16x48xbf16>
    %c6_39 = arith.constant 6 : index
    %c0_40 = arith.constant 0 : index
    %c0_41 = arith.constant 0 : index
    %44 = vector.load %arg2[%c6_39, %c0_40, %c0_41] : memref<9x48x128xbf16, #tpu.memory_space<vmem>>, vector<1x48x128xbf16>
    %45 = vector.shape_cast %44 : vector<1x48x128xbf16> to vector<48x128xbf16>
    %cst_42 = arith.constant dense<0.000000e+00> : vector<16x128xf32>
    %46 = tpu.matmul %43, %45, %cst_42 {dimension_numbers = #tpu.dot_dimension_numbers<[1], [0], [0], [1], [0, 0, 1, 1], [], []>} : vector<16x48xbf16>, vector<48x128xbf16>, vector<16x128xf32> -> vector<16x128xf32>
    %47 = arith.addf %41, %46 : vector<16x128xf32>
    %c2_43 = arith.constant 2 : index
    %c3_44 = arith.constant 3 : index
    %48 = vector.load %arg7[%c2_43, %c3_44] : memref<18x54xf32, #tpu.memory_space<vmem>>, vector<16x48xf32>
    %49 = arith.truncf %48 : vector<16x48xf32> to vector<16x48xbf16>
    %c7 = arith.constant 7 : index
    %c0_45 = arith.constant 0 : index
    %c0_46 = arith.constant 0 : index
    %50 = vector.load %arg2[%c7, %c0_45, %c0_46] : memref<9x48x128xbf16, #tpu.memory_space<vmem>>, vector<1x48x128xbf16>
    %51 = vector.shape_cast %50 : vector<1x48x128xbf16> to vector<48x128xbf16>
    %cst_47 = arith.constant dense<0.000000e+00> : vector<16x128xf32>
    %52 = tpu.matmul %49, %51, %cst_47 {dimension_numbers = #tpu.dot_dimension_numbers<[1], [0], [0], [1], [0, 0, 1, 1], [], []>} : vector<16x48xbf16>, vector<48x128xbf16>, vector<16x128xf32> -> vector<16x128xf32>
    %53 = arith.addf %47, %52 : vector<16x128xf32>
    %c2_48 = arith.constant 2 : index
    %c6_49 = arith.constant 6 : index
    %54 = vector.load %arg7[%c2_48, %c6_49] : memref<18x54xf32, #tpu.memory_space<vmem>>, vector<16x48xf32>
    %55 = arith.truncf %54 : vector<16x48xf32> to vector<16x48xbf16>
    %c8 = arith.constant 8 : index
    %c0_50 = arith.constant 0 : index
    %c0_51 = arith.constant 0 : index
    %56 = vector.load %arg2[%c8, %c0_50, %c0_51] : memref<9x48x128xbf16, #tpu.memory_space<vmem>>, vector<1x48x128xbf16>
    %57 = vector.shape_cast %56 : vector<1x48x128xbf16> to vector<48x128xbf16>
    %cst_52 = arith.constant dense<0.000000e+00> : vector<16x128xf32>
    %58 = tpu.matmul %55, %57, %cst_52 {dimension_numbers = #tpu.dot_dimension_numbers<[1], [0], [0], [1], [0, 0, 1, 1], [], []>} : vector<16x48xbf16>, vector<48x128xbf16>, vector<16x128xf32> -> vector<16x128xf32>
    %59 = arith.addf %53, %58 : vector<16x128xf32>
    %c0_53 = arith.constant 0 : index
    %c0_54 = arith.constant 0 : index
    %60 = vector.load %arg3[%c0_53, %c0_54] : memref<1x128xf32, #tpu.memory_space<vmem>>, vector<1x128xf32>
    %61 = vector.broadcast %60 : vector<1x128xf32> to vector<16x128xf32>
    %62 = arith.addf %59, %61 : vector<16x128xf32>
    %cst_55 = arith.constant 0.000000e+00 : f32
    %63 = vector.broadcast %cst_55 : f32 to vector<16x128xf32>
    %64 = arith.maximumf %62, %63 : vector<16x128xf32>
    %cst_56 = arith.constant 0.000000e+00 : f32
    %65 = vector.broadcast %cst_56 : f32 to vector<18x144xf32>
    %c0_57 = arith.constant 0 : index
    %c0_58 = arith.constant 0 : index
    %66 = vector.load %arg8[%c0_57, %c0_58] : memref<18x144xf32, #tpu.memory_space<vmem>>, vector<18x144xf32>
    tpu.vector_store %arg8[%c0_57, %c0_58], %65 {strides = array<i32>} : memref<18x144xf32, #tpu.memory_space<vmem>>, vector<18x144xf32>,
    %c1_59 = arith.constant 1 : index
    %c8_60 = arith.constant 8 : index
    %67 = vector.load %arg8[%c1_59, %c8_60] : memref<18x144xf32, #tpu.memory_space<vmem>>, vector<16x128xf32>
    tpu.vector_store %arg8[%c1_59, %c8_60], %64 {strides = array<i32>} : memref<18x144xf32, #tpu.memory_space<vmem>>, vector<16x128xf32>,
    %cst_61 = arith.constant 0.000000e+00 : f32
    %68 = vector.broadcast %cst_61 : f32 to vector<16x128xf32>
    %c0_62 = arith.constant 0 : index
    %c0_63 = arith.constant 0 : index
    %69 = vector.load %arg8[%c0_62, %c0_63] : memref<18x144xf32, #tpu.memory_space<vmem>>, vector<16x128xf32>
    %70 = arith.truncf %69 : vector<16x128xf32> to vector<16x128xbf16>
    %c0_64 = arith.constant 0 : index
    %c0_65 = arith.constant 0 : index
    %c0_66 = arith.constant 0 : index
    %71 = vector.load %arg4[%c0_64, %c0_65, %c0_66] : memref<9x128x128xbf16, #tpu.memory_space<vmem>>, vector<1x128x128xbf16>
    %72 = vector.shape_cast %71 : vector<1x128x128xbf16> to vector<128x128xbf16>
    %cst_67 = arith.constant dense<0.000000e+00> : vector<16x128xf32>
    %73 = tpu.matmul %70, %72, %cst_67 {dimension_numbers = #tpu.dot_dimension_numbers<[1], [0], [0], [1], [0, 0, 1, 1], [], []>} : vector<16x128xbf16>, vector<128x128xbf16>, vector<16x128xf32> -> vector<16x128xf32>
    %74 = arith.addf %68, %73 : vector<16x128xf32>
    %c0_68 = arith.constant 0 : index
    %c8_69 = arith.constant 8 : index
    %75 = vector.load %arg8[%c0_68, %c8_69] : memref<18x144xf32, #tpu.memory_space<vmem>>, vector<16x128xf32>
    %76 = arith.truncf %75 : vector<16x128xf32> to vector<16x128xbf16>
    %c1_70 = arith.constant 1 : index
    %c0_71 = arith.constant 0 : index
    %c0_72 = arith.constant 0 : index
    %77 = vector.load %arg4[%c1_70, %c0_71, %c0_72] : memref<9x128x128xbf16, #tpu.memory_space<vmem>>, vector<1x128x128xbf16>
    %78 = vector.shape_cast %77 : vector<1x128x128xbf16> to vector<128x128xbf16>
    %cst_73 = arith.constant dense<0.000000e+00> : vector<16x128xf32>
    %79 = tpu.matmul %76, %78, %cst_73 {dimension_numbers = #tpu.dot_dimension_numbers<[1], [0], [0], [1], [0, 0, 1, 1], [], []>} : vector<16x128xbf16>, vector<128x128xbf16>, vector<16x128xf32> -> vector<16x128xf32>
    %80 = arith.addf %74, %79 : vector<16x128xf32>
    %c0_74 = arith.constant 0 : index
    %c16 = arith.constant 16 : index
    %81 = vector.load %arg8[%c0_74, %c16] : memref<18x144xf32, #tpu.memory_space<vmem>>, vector<16x128xf32>
    %82 = arith.truncf %81 : vector<16x128xf32> to vector<16x128xbf16>
    %c2_75 = arith.constant 2 : index
    %c0_76 = arith.constant 0 : index
    %c0_77 = arith.constant 0 : index
    %83 = vector.load %arg4[%c2_75, %c0_76, %c0_77] : memref<9x128x128xbf16, #tpu.memory_space<vmem>>, vector<1x128x128xbf16>
    %84 = vector.shape_cast %83 : vector<1x128x128xbf16> to vector<128x128xbf16>
    %cst_78 = arith.constant dense<0.000000e+00> : vector<16x128xf32>
    %85 = tpu.matmul %82, %84, %cst_78 {dimension_numbers = #tpu.dot_dimension_numbers<[1], [0], [0], [1], [0, 0, 1, 1], [], []>} : vector<16x128xbf16>, vector<128x128xbf16>, vector<16x128xf32> -> vector<16x128xf32>
    %86 = arith.addf %80, %85 : vector<16x128xf32>
    %c1_79 = arith.constant 1 : index
    %c0_80 = arith.constant 0 : index
    %87 = vector.load %arg8[%c1_79, %c0_80] : memref<18x144xf32, #tpu.memory_space<vmem>>, vector<16x128xf32>
    %88 = arith.truncf %87 : vector<16x128xf32> to vector<16x128xbf16>
    %c3_81 = arith.constant 3 : index
    %c0_82 = arith.constant 0 : index
    %c0_83 = arith.constant 0 : index
    %89 = vector.load %arg4[%c3_81, %c0_82, %c0_83] : memref<9x128x128xbf16, #tpu.memory_space<vmem>>, vector<1x128x128xbf16>
    %90 = vector.shape_cast %89 : vector<1x128x128xbf16> to vector<128x128xbf16>
    %cst_84 = arith.constant dense<0.000000e+00> : vector<16x128xf32>
    %91 = tpu.matmul %88, %90, %cst_84 {dimension_numbers = #tpu.dot_dimension_numbers<[1], [0], [0], [1], [0, 0, 1, 1], [], []>} : vector<16x128xbf16>, vector<128x128xbf16>, vector<16x128xf32> -> vector<16x128xf32>
    %92 = arith.addf %86, %91 : vector<16x128xf32>
    %c1_85 = arith.constant 1 : index
    %c8_86 = arith.constant 8 : index
    %93 = vector.load %arg8[%c1_85, %c8_86] : memref<18x144xf32, #tpu.memory_space<vmem>>, vector<16x128xf32>
    %94 = arith.truncf %93 : vector<16x128xf32> to vector<16x128xbf16>
    %c4_87 = arith.constant 4 : index
    %c0_88 = arith.constant 0 : index
    %c0_89 = arith.constant 0 : index
    %95 = vector.load %arg4[%c4_87, %c0_88, %c0_89] : memref<9x128x128xbf16, #tpu.memory_space<vmem>>, vector<1x128x128xbf16>
    %96 = vector.shape_cast %95 : vector<1x128x128xbf16> to vector<128x128xbf16>
    %cst_90 = arith.constant dense<0.000000e+00> : vector<16x128xf32>
    %97 = tpu.matmul %94, %96, %cst_90 {dimension_numbers = #tpu.dot_dimension_numbers<[1], [0], [0], [1], [0, 0, 1, 1], [], []>} : vector<16x128xbf16>, vector<128x128xbf16>, vector<16x128xf32> -> vector<16x128xf32>
    %98 = arith.addf %92, %97 : vector<16x128xf32>
    %c1_91 = arith.constant 1 : index
    %c16_92 = arith.constant 16 : index
    %99 = vector.load %arg8[%c1_91, %c16_92] : memref<18x144xf32, #tpu.memory_space<vmem>>, vector<16x128xf32>
    %100 = arith.truncf %99 : vector<16x128xf32> to vector<16x128xbf16>
    %c5_93 = arith.constant 5 : index
    %c0_94 = arith.constant 0 : index
    %c0_95 = arith.constant 0 : index
    %101 = vector.load %arg4[%c5_93, %c0_94, %c0_95] : memref<9x128x128xbf16, #tpu.memory_space<vmem>>, vector<1x128x128xbf16>
    %102 = vector.shape_cast %101 : vector<1x128x128xbf16> to vector<128x128xbf16>
    %cst_96 = arith.constant dense<0.000000e+00> : vector<16x128xf32>
    %103 = tpu.matmul %100, %102, %cst_96 {dimension_numbers = #tpu.dot_dimension_numbers<[1], [0], [0], [1], [0, 0, 1, 1], [], []>} : vector<16x128xbf16>, vector<128x128xbf16>, vector<16x128xf32> -> vector<16x128xf32>
    %104 = arith.addf %98, %103 : vector<16x128xf32>
    %c2_97 = arith.constant 2 : index
    %c0_98 = arith.constant 0 : index
    %105 = vector.load %arg8[%c2_97, %c0_98] : memref<18x144xf32, #tpu.memory_space<vmem>>, vector<16x128xf32>
    %106 = arith.truncf %105 : vector<16x128xf32> to vector<16x128xbf16>
    %c6_99 = arith.constant 6 : index
    %c0_100 = arith.constant 0 : index
    %c0_101 = arith.constant 0 : index
    %107 = vector.load %arg4[%c6_99, %c0_100, %c0_101] : memref<9x128x128xbf16, #tpu.memory_space<vmem>>, vector<1x128x128xbf16>
    %108 = vector.shape_cast %107 : vector<1x128x128xbf16> to vector<128x128xbf16>
    %cst_102 = arith.constant dense<0.000000e+00> : vector<16x128xf32>
    %109 = tpu.matmul %106, %108, %cst_102 {dimension_numbers = #tpu.dot_dimension_numbers<[1], [0], [0], [1], [0, 0, 1, 1], [], []>} : vector<16x128xbf16>, vector<128x128xbf16>, vector<16x128xf32> -> vector<16x128xf32>
    %110 = arith.addf %104, %109 : vector<16x128xf32>
    %c2_103 = arith.constant 2 : index
    %c8_104 = arith.constant 8 : index
    %111 = vector.load %arg8[%c2_103, %c8_104] : memref<18x144xf32, #tpu.memory_space<vmem>>, vector<16x128xf32>
    %112 = arith.truncf %111 : vector<16x128xf32> to vector<16x128xbf16>
    %c7_105 = arith.constant 7 : index
    %c0_106 = arith.constant 0 : index
    %c0_107 = arith.constant 0 : index
    %113 = vector.load %arg4[%c7_105, %c0_106, %c0_107] : memref<9x128x128xbf16, #tpu.memory_space<vmem>>, vector<1x128x128xbf16>
    %114 = vector.shape_cast %113 : vector<1x128x128xbf16> to vector<128x128xbf16>
    %cst_108 = arith.constant dense<0.000000e+00> : vector<16x128xf32>
    %115 = tpu.matmul %112, %114, %cst_108 {dimension_numbers = #tpu.dot_dimension_numbers<[1], [0], [0], [1], [0, 0, 1, 1], [], []>} : vector<16x128xbf16>, vector<128x128xbf16>, vector<16x128xf32> -> vector<16x128xf32>
    %116 = arith.addf %110, %115 : vector<16x128xf32>
    %c2_109 = arith.constant 2 : index
    %c16_110 = arith.constant 16 : index
    %117 = vector.load %arg8[%c2_109, %c16_110] : memref<18x144xf32, #tpu.memory_space<vmem>>, vector<16x128xf32>
    %118 = arith.truncf %117 : vector<16x128xf32> to vector<16x128xbf16>
    %c8_111 = arith.constant 8 : index
    %c0_112 = arith.constant 0 : index
    %c0_113 = arith.constant 0 : index
    %119 = vector.load %arg4[%c8_111, %c0_112, %c0_113] : memref<9x128x128xbf16, #tpu.memory_space<vmem>>, vector<1x128x128xbf16>
    %120 = vector.shape_cast %119 : vector<1x128x128xbf16> to vector<128x128xbf16>
    %cst_114 = arith.constant dense<0.000000e+00> : vector<16x128xf32>
    %121 = tpu.matmul %118, %120, %cst_114 {dimension_numbers = #tpu.dot_dimension_numbers<[1], [0], [0], [1], [0, 0, 1, 1], [], []>} : vector<16x128xbf16>, vector<128x128xbf16>, vector<16x128xf32> -> vector<16x128xf32>
    %122 = arith.addf %116, %121 : vector<16x128xf32>
    %c0_115 = arith.constant 0 : index
    %c0_116 = arith.constant 0 : index
    %123 = vector.load %arg5[%c0_115, %c0_116] : memref<1x128xf32, #tpu.memory_space<vmem>>, vector<1x128xf32>
    %124 = vector.broadcast %123 : vector<1x128xf32> to vector<16x128xf32>
    %125 = arith.addf %122, %124 : vector<16x128xf32>
    %cst_117 = arith.constant 0.000000e+00 : f32
    %126 = vector.broadcast %cst_117 : f32 to vector<16x128xf32>
    %127 = arith.maximumf %125, %126 : vector<16x128xf32>
    %128 = vector.shape_cast %127 : vector<16x128xf32> to vector<1x16x128xf32>
    %c0_118 = arith.constant 0 : index
    %c0_119 = arith.constant 0 : index
    %c0_120 = arith.constant 0 : index
    %129 = vector.load %arg6[%c0_118, %c0_119, %c0_120] : memref<1x16x128xf32, #tpu.memory_space<vmem>>, vector<1x16x128xf32>
    tpu.vector_store %arg6[%c0_118, %c0_119, %c0_120], %128 {strides = array<i32>} : memref<1x16x128xf32, #tpu.memory_space<vmem>>, vector<1x16x128xf32>,
    return
  }
  func.func @transform_0(%arg0: i32) -> (i32, i32, i32) {
    %c0_i32 = arith.constant 0 : i32
    %c0_i32_0 = arith.constant 0 : i32
    %c0_i32_1 = arith.constant 0 : i32
    return %arg0, %c0_i32, %c0_i32_0 : i32, i32, i32
  }
  func.func @transform_1(%arg0: i32) -> (i32, i32, i32) {
    %c0_i32 = arith.constant 0 : i32
    %c0_i32_0 = arith.constant 0 : i32
    %c0_i32_1 = arith.constant 0 : i32
    %c0_i32_2 = arith.constant 0 : i32
    return %c0_i32, %c0_i32_0, %c0_i32_1 : i32, i32, i32
  }
  func.func @transform_2(%arg0: i32) -> (i32, i32) {
    %c0_i32 = arith.constant 0 : i32
    %c0_i32_0 = arith.constant 0 : i32
    %c0_i32_1 = arith.constant 0 : i32
    return %c0_i32, %c0_i32_0 : i32, i32
  }
  func.func @transform_3(%arg0: i32) -> (i32, i32, i32) {
    %c0_i32 = arith.constant 0 : i32
    %c0_i32_0 = arith.constant 0 : i32
    %c0_i32_1 = arith.constant 0 : i32
    %c0_i32_2 = arith.constant 0 : i32
    return %c0_i32, %c0_i32_0, %c0_i32_1 : i32, i32, i32
  }
  func.func @transform_4(%arg0: i32) -> (i32, i32) {
    %c0_i32 = arith.constant 0 : i32
    %c0_i32_0 = arith.constant 0 : i32
    %c0_i32_1 = arith.constant 0 : i32
    return %c0_i32, %c0_i32_0 : i32, i32
  }
  func.func @transform_5(%arg0: i32) -> (i32, i32, i32) {
    %c0_i32 = arith.constant 0 : i32
    %c0_i32_0 = arith.constant 0 : i32
    %c0_i32_1 = arith.constant 0 : i32
    return %arg0, %c0_i32, %c0_i32_0 : i32, i32, i32
  }
}

module attributes {stable_mosaic.version = 11 : i64} {
  func.func @kernel(%arg0: i32, %arg1: memref<1x16x128xf32, #tpu.memory_space<vmem>>, %arg2: memref<2x8x16xf32, #tpu.memory_space<vmem>>, %arg3: memref<2x128x64xf32, #tpu.memory_space<vmem>>, %arg4: memref<9x64x128xbf16, #tpu.memory_space<vmem>>, %arg5: memref<1x128xf32, #tpu.memory_space<vmem>>, %arg6: memref<9x128x128xbf16, #tpu.memory_space<vmem>>, %arg7: memref<1x128xf32, #tpu.memory_space<vmem>>, %arg8: memref<1x8x128xf32, #tpu.memory_space<vmem>>, %arg9: memref<10x80xf32, #tpu.memory_space<vmem>>, %arg10: memref<10x160xf32, #tpu.memory_space<vmem>>) attributes {dimension_semantics = [#tpu.dimension_semantics<parallel>], iteration_bounds = array<i64: 2>, scalar_prefetch = 0 : i64, scratch_operands = 2 : i64, tpu.core_type = #tpu.core_type<tc>, window_params = [{transform_indices = @transform_0, window_bounds = array<i64: 1, 16, 128>}, {pipeline_mode = #tpu.pipeline_mode<synchronous>, transform_indices = @transform_1, window_bounds = array<i64: 2, 8, 16>}, {pipeline_mode = #tpu.pipeline_mode<synchronous>, transform_indices = @transform_2, window_bounds = array<i64: 2, 128, 64>}, {pipeline_mode = #tpu.pipeline_mode<synchronous>, transform_indices = @transform_3, window_bounds = array<i64: 9, 64, 128>}, {pipeline_mode = #tpu.pipeline_mode<synchronous>, transform_indices = @transform_4, window_bounds = array<i64: 1, 128>}, {pipeline_mode = #tpu.pipeline_mode<synchronous>, transform_indices = @transform_5, window_bounds = array<i64: 9, 128, 128>}, {pipeline_mode = #tpu.pipeline_mode<synchronous>, transform_indices = @transform_6, window_bounds = array<i64: 1, 128>}, {transform_indices = @transform_7, window_bounds = array<i64: 1, 8, 128>}]} {
    %c0 = arith.constant 0 : index
    %c0_0 = arith.constant 0 : index
    %c0_1 = arith.constant 0 : index
    %0 = vector.load %arg1[%c0, %c0_0, %c0_1] : memref<1x16x128xf32, #tpu.memory_space<vmem>>, vector<1x16x128xf32>
    %1 = vector.shape_cast %0 : vector<1x16x128xf32> to vector<16x128xf32>
    %c0_2 = arith.constant 0 : index
    %c0_3 = arith.constant 0 : index
    %c0_4 = arith.constant 0 : index
    %2 = vector.load %arg2[%c0_2, %c0_3, %c0_4] : memref<2x8x16xf32, #tpu.memory_space<vmem>>, vector<1x8x16xf32>
    %3 = vector.shape_cast %2 : vector<1x8x16xf32> to vector<8x16xf32>
    %cst = arith.constant dense<0.000000e+00> : vector<8x128xf32>
    %4 = tpu.matmul %3, %1, %cst {dimension_numbers = #tpu.dot_dimension_numbers<[1], [0], [0], [1], [0, 0, 1, 1], [], []>} : vector<8x16xf32>, vector<16x128xf32>, vector<8x128xf32> -> vector<8x128xf32>
    %c1 = arith.constant 1 : index
    %c0_5 = arith.constant 0 : index
    %c0_6 = arith.constant 0 : index
    %5 = vector.load %arg2[%c1, %c0_5, %c0_6] : memref<2x8x16xf32, #tpu.memory_space<vmem>>, vector<1x8x16xf32>
    %6 = vector.shape_cast %5 : vector<1x8x16xf32> to vector<8x16xf32>
    %cst_7 = arith.constant dense<0.000000e+00> : vector<8x128xf32>
    %7 = tpu.matmul %6, %1, %cst_7 {dimension_numbers = #tpu.dot_dimension_numbers<[1], [0], [0], [1], [0, 0, 1, 1], [], []>} : vector<8x16xf32>, vector<16x128xf32>, vector<8x128xf32> -> vector<8x128xf32>
    %8 = arith.maximumf %4, %7 : vector<8x128xf32>
    %c0_8 = arith.constant 0 : index
    %c0_9 = arith.constant 0 : index
    %c0_10 = arith.constant 0 : index
    %9 = vector.load %arg3[%c0_8, %c0_9, %c0_10] : memref<2x128x64xf32, #tpu.memory_space<vmem>>, vector<1x128x64xf32>
    %10 = vector.shape_cast %9 : vector<1x128x64xf32> to vector<128x64xf32>
    %cst_11 = arith.constant dense<0.000000e+00> : vector<8x64xf32>
    %11 = tpu.matmul %8, %10, %cst_11 {dimension_numbers = #tpu.dot_dimension_numbers<[1], [0], [0], [1], [0, 0, 1, 1], [], []>} : vector<8x128xf32>, vector<128x64xf32>, vector<8x64xf32> -> vector<8x64xf32>
    %c1_12 = arith.constant 1 : index
    %c0_13 = arith.constant 0 : index
    %c0_14 = arith.constant 0 : index
    %12 = vector.load %arg3[%c1_12, %c0_13, %c0_14] : memref<2x128x64xf32, #tpu.memory_space<vmem>>, vector<1x128x64xf32>
    %13 = vector.shape_cast %12 : vector<1x128x64xf32> to vector<128x64xf32>
    %cst_15 = arith.constant dense<0.000000e+00> : vector<8x64xf32>
    %14 = tpu.matmul %8, %13, %cst_15 {dimension_numbers = #tpu.dot_dimension_numbers<[1], [0], [0], [1], [0, 0, 1, 1], [], []>} : vector<8x128xf32>, vector<128x64xf32>, vector<8x64xf32> -> vector<8x64xf32>
    %15 = arith.maximumf %11, %14 : vector<8x64xf32>
    %cst_16 = arith.constant 0.000000e+00 : f32
    %16 = vector.broadcast %cst_16 : f32 to vector<10x80xf32>
    %c0_17 = arith.constant 0 : index
    %c0_18 = arith.constant 0 : index
    %17 = vector.load %arg9[%c0_17, %c0_18] : memref<10x80xf32, #tpu.memory_space<vmem>>, vector<10x80xf32>
    tpu.vector_store %arg9[%c0_17, %c0_18], %16 {strides = array<i32>} : memref<10x80xf32, #tpu.memory_space<vmem>>, vector<10x80xf32>,
    %c1_19 = arith.constant 1 : index
    %c8 = arith.constant 8 : index
    %18 = vector.load %arg9[%c1_19, %c8] : memref<10x80xf32, #tpu.memory_space<vmem>>, vector<8x64xf32>
    tpu.vector_store %arg9[%c1_19, %c8], %15 {strides = array<i32>} : memref<10x80xf32, #tpu.memory_space<vmem>>, vector<8x64xf32>,
    %cst_20 = arith.constant 0.000000e+00 : f32
    %19 = vector.broadcast %cst_20 : f32 to vector<8x128xf32>
    %c0_21 = arith.constant 0 : index
    %c0_22 = arith.constant 0 : index
    %20 = vector.load %arg9[%c0_21, %c0_22] : memref<10x80xf32, #tpu.memory_space<vmem>>, vector<8x64xf32>
    %21 = arith.truncf %20 : vector<8x64xf32> to vector<8x64xbf16>
    %c0_23 = arith.constant 0 : index
    %c0_24 = arith.constant 0 : index
    %c0_25 = arith.constant 0 : index
    %22 = vector.load %arg4[%c0_23, %c0_24, %c0_25] : memref<9x64x128xbf16, #tpu.memory_space<vmem>>, vector<1x64x128xbf16>
    %23 = vector.shape_cast %22 : vector<1x64x128xbf16> to vector<64x128xbf16>
    %cst_26 = arith.constant dense<0.000000e+00> : vector<8x128xf32>
    %24 = tpu.matmul %21, %23, %cst_26 {dimension_numbers = #tpu.dot_dimension_numbers<[1], [0], [0], [1], [0, 0, 1, 1], [], []>} : vector<8x64xbf16>, vector<64x128xbf16>, vector<8x128xf32> -> vector<8x128xf32>
    %25 = arith.addf %19, %24 : vector<8x128xf32>
    %c0_27 = arith.constant 0 : index
    %c8_28 = arith.constant 8 : index
    %26 = vector.load %arg9[%c0_27, %c8_28] : memref<10x80xf32, #tpu.memory_space<vmem>>, vector<8x64xf32>
    %27 = arith.truncf %26 : vector<8x64xf32> to vector<8x64xbf16>
    %c1_29 = arith.constant 1 : index
    %c0_30 = arith.constant 0 : index
    %c0_31 = arith.constant 0 : index
    %28 = vector.load %arg4[%c1_29, %c0_30, %c0_31] : memref<9x64x128xbf16, #tpu.memory_space<vmem>>, vector<1x64x128xbf16>
    %29 = vector.shape_cast %28 : vector<1x64x128xbf16> to vector<64x128xbf16>
    %cst_32 = arith.constant dense<0.000000e+00> : vector<8x128xf32>
    %30 = tpu.matmul %27, %29, %cst_32 {dimension_numbers = #tpu.dot_dimension_numbers<[1], [0], [0], [1], [0, 0, 1, 1], [], []>} : vector<8x64xbf16>, vector<64x128xbf16>, vector<8x128xf32> -> vector<8x128xf32>
    %31 = arith.addf %25, %30 : vector<8x128xf32>
    %c0_33 = arith.constant 0 : index
    %c16 = arith.constant 16 : index
    %32 = vector.load %arg9[%c0_33, %c16] : memref<10x80xf32, #tpu.memory_space<vmem>>, vector<8x64xf32>
    %33 = arith.truncf %32 : vector<8x64xf32> to vector<8x64xbf16>
    %c2 = arith.constant 2 : index
    %c0_34 = arith.constant 0 : index
    %c0_35 = arith.constant 0 : index
    %34 = vector.load %arg4[%c2, %c0_34, %c0_35] : memref<9x64x128xbf16, #tpu.memory_space<vmem>>, vector<1x64x128xbf16>
    %35 = vector.shape_cast %34 : vector<1x64x128xbf16> to vector<64x128xbf16>
    %cst_36 = arith.constant dense<0.000000e+00> : vector<8x128xf32>
    %36 = tpu.matmul %33, %35, %cst_36 {dimension_numbers = #tpu.dot_dimension_numbers<[1], [0], [0], [1], [0, 0, 1, 1], [], []>} : vector<8x64xbf16>, vector<64x128xbf16>, vector<8x128xf32> -> vector<8x128xf32>
    %37 = arith.addf %31, %36 : vector<8x128xf32>
    %c1_37 = arith.constant 1 : index
    %c0_38 = arith.constant 0 : index
    %38 = vector.load %arg9[%c1_37, %c0_38] : memref<10x80xf32, #tpu.memory_space<vmem>>, vector<8x64xf32>
    %39 = arith.truncf %38 : vector<8x64xf32> to vector<8x64xbf16>
    %c3 = arith.constant 3 : index
    %c0_39 = arith.constant 0 : index
    %c0_40 = arith.constant 0 : index
    %40 = vector.load %arg4[%c3, %c0_39, %c0_40] : memref<9x64x128xbf16, #tpu.memory_space<vmem>>, vector<1x64x128xbf16>
    %41 = vector.shape_cast %40 : vector<1x64x128xbf16> to vector<64x128xbf16>
    %cst_41 = arith.constant dense<0.000000e+00> : vector<8x128xf32>
    %42 = tpu.matmul %39, %41, %cst_41 {dimension_numbers = #tpu.dot_dimension_numbers<[1], [0], [0], [1], [0, 0, 1, 1], [], []>} : vector<8x64xbf16>, vector<64x128xbf16>, vector<8x128xf32> -> vector<8x128xf32>
    %43 = arith.addf %37, %42 : vector<8x128xf32>
    %c1_42 = arith.constant 1 : index
    %c8_43 = arith.constant 8 : index
    %44 = vector.load %arg9[%c1_42, %c8_43] : memref<10x80xf32, #tpu.memory_space<vmem>>, vector<8x64xf32>
    %45 = arith.truncf %44 : vector<8x64xf32> to vector<8x64xbf16>
    %c4 = arith.constant 4 : index
    %c0_44 = arith.constant 0 : index
    %c0_45 = arith.constant 0 : index
    %46 = vector.load %arg4[%c4, %c0_44, %c0_45] : memref<9x64x128xbf16, #tpu.memory_space<vmem>>, vector<1x64x128xbf16>
    %47 = vector.shape_cast %46 : vector<1x64x128xbf16> to vector<64x128xbf16>
    %cst_46 = arith.constant dense<0.000000e+00> : vector<8x128xf32>
    %48 = tpu.matmul %45, %47, %cst_46 {dimension_numbers = #tpu.dot_dimension_numbers<[1], [0], [0], [1], [0, 0, 1, 1], [], []>} : vector<8x64xbf16>, vector<64x128xbf16>, vector<8x128xf32> -> vector<8x128xf32>
    %49 = arith.addf %43, %48 : vector<8x128xf32>
    %c1_47 = arith.constant 1 : index
    %c16_48 = arith.constant 16 : index
    %50 = vector.load %arg9[%c1_47, %c16_48] : memref<10x80xf32, #tpu.memory_space<vmem>>, vector<8x64xf32>
    %51 = arith.truncf %50 : vector<8x64xf32> to vector<8x64xbf16>
    %c5 = arith.constant 5 : index
    %c0_49 = arith.constant 0 : index
    %c0_50 = arith.constant 0 : index
    %52 = vector.load %arg4[%c5, %c0_49, %c0_50] : memref<9x64x128xbf16, #tpu.memory_space<vmem>>, vector<1x64x128xbf16>
    %53 = vector.shape_cast %52 : vector<1x64x128xbf16> to vector<64x128xbf16>
    %cst_51 = arith.constant dense<0.000000e+00> : vector<8x128xf32>
    %54 = tpu.matmul %51, %53, %cst_51 {dimension_numbers = #tpu.dot_dimension_numbers<[1], [0], [0], [1], [0, 0, 1, 1], [], []>} : vector<8x64xbf16>, vector<64x128xbf16>, vector<8x128xf32> -> vector<8x128xf32>
    %55 = arith.addf %49, %54 : vector<8x128xf32>
    %c2_52 = arith.constant 2 : index
    %c0_53 = arith.constant 0 : index
    %56 = vector.load %arg9[%c2_52, %c0_53] : memref<10x80xf32, #tpu.memory_space<vmem>>, vector<8x64xf32>
    %57 = arith.truncf %56 : vector<8x64xf32> to vector<8x64xbf16>
    %c6 = arith.constant 6 : index
    %c0_54 = arith.constant 0 : index
    %c0_55 = arith.constant 0 : index
    %58 = vector.load %arg4[%c6, %c0_54, %c0_55] : memref<9x64x128xbf16, #tpu.memory_space<vmem>>, vector<1x64x128xbf16>
    %59 = vector.shape_cast %58 : vector<1x64x128xbf16> to vector<64x128xbf16>
    %cst_56 = arith.constant dense<0.000000e+00> : vector<8x128xf32>
    %60 = tpu.matmul %57, %59, %cst_56 {dimension_numbers = #tpu.dot_dimension_numbers<[1], [0], [0], [1], [0, 0, 1, 1], [], []>} : vector<8x64xbf16>, vector<64x128xbf16>, vector<8x128xf32> -> vector<8x128xf32>
    %61 = arith.addf %55, %60 : vector<8x128xf32>
    %c2_57 = arith.constant 2 : index
    %c8_58 = arith.constant 8 : index
    %62 = vector.load %arg9[%c2_57, %c8_58] : memref<10x80xf32, #tpu.memory_space<vmem>>, vector<8x64xf32>
    %63 = arith.truncf %62 : vector<8x64xf32> to vector<8x64xbf16>
    %c7 = arith.constant 7 : index
    %c0_59 = arith.constant 0 : index
    %c0_60 = arith.constant 0 : index
    %64 = vector.load %arg4[%c7, %c0_59, %c0_60] : memref<9x64x128xbf16, #tpu.memory_space<vmem>>, vector<1x64x128xbf16>
    %65 = vector.shape_cast %64 : vector<1x64x128xbf16> to vector<64x128xbf16>
    %cst_61 = arith.constant dense<0.000000e+00> : vector<8x128xf32>
    %66 = tpu.matmul %63, %65, %cst_61 {dimension_numbers = #tpu.dot_dimension_numbers<[1], [0], [0], [1], [0, 0, 1, 1], [], []>} : vector<8x64xbf16>, vector<64x128xbf16>, vector<8x128xf32> -> vector<8x128xf32>
    %67 = arith.addf %61, %66 : vector<8x128xf32>
    %c2_62 = arith.constant 2 : index
    %c16_63 = arith.constant 16 : index
    %68 = vector.load %arg9[%c2_62, %c16_63] : memref<10x80xf32, #tpu.memory_space<vmem>>, vector<8x64xf32>
    %69 = arith.truncf %68 : vector<8x64xf32> to vector<8x64xbf16>
    %c8_64 = arith.constant 8 : index
    %c0_65 = arith.constant 0 : index
    %c0_66 = arith.constant 0 : index
    %70 = vector.load %arg4[%c8_64, %c0_65, %c0_66] : memref<9x64x128xbf16, #tpu.memory_space<vmem>>, vector<1x64x128xbf16>
    %71 = vector.shape_cast %70 : vector<1x64x128xbf16> to vector<64x128xbf16>
    %cst_67 = arith.constant dense<0.000000e+00> : vector<8x128xf32>
    %72 = tpu.matmul %69, %71, %cst_67 {dimension_numbers = #tpu.dot_dimension_numbers<[1], [0], [0], [1], [0, 0, 1, 1], [], []>} : vector<8x64xbf16>, vector<64x128xbf16>, vector<8x128xf32> -> vector<8x128xf32>
    %73 = arith.addf %67, %72 : vector<8x128xf32>
    %c0_68 = arith.constant 0 : index
    %c0_69 = arith.constant 0 : index
    %74 = vector.load %arg5[%c0_68, %c0_69] : memref<1x128xf32, #tpu.memory_space<vmem>>, vector<1x128xf32>
    %75 = vector.broadcast %74 : vector<1x128xf32> to vector<8x128xf32>
    %76 = arith.addf %73, %75 : vector<8x128xf32>
    %cst_70 = arith.constant 0.000000e+00 : f32
    %77 = vector.broadcast %cst_70 : f32 to vector<8x128xf32>
    %78 = arith.maximumf %76, %77 : vector<8x128xf32>
    %cst_71 = arith.constant 0.000000e+00 : f32
    %79 = vector.broadcast %cst_71 : f32 to vector<10x160xf32>
    %c0_72 = arith.constant 0 : index
    %c0_73 = arith.constant 0 : index
    %80 = vector.load %arg10[%c0_72, %c0_73] : memref<10x160xf32, #tpu.memory_space<vmem>>, vector<10x160xf32>
    tpu.vector_store %arg10[%c0_72, %c0_73], %79 {strides = array<i32>} : memref<10x160xf32, #tpu.memory_space<vmem>>, vector<10x160xf32>,
    %c1_74 = arith.constant 1 : index
    %c16_75 = arith.constant 16 : index
    %81 = vector.load %arg10[%c1_74, %c16_75] : memref<10x160xf32, #tpu.memory_space<vmem>>, vector<8x128xf32>
    tpu.vector_store %arg10[%c1_74, %c16_75], %78 {strides = array<i32>} : memref<10x160xf32, #tpu.memory_space<vmem>>, vector<8x128xf32>,
    %cst_76 = arith.constant 0.000000e+00 : f32
    %82 = vector.broadcast %cst_76 : f32 to vector<8x128xf32>
    %c0_77 = arith.constant 0 : index
    %c0_78 = arith.constant 0 : index
    %83 = vector.load %arg10[%c0_77, %c0_78] : memref<10x160xf32, #tpu.memory_space<vmem>>, vector<8x128xf32>
    %84 = arith.truncf %83 : vector<8x128xf32> to vector<8x128xbf16>
    %c0_79 = arith.constant 0 : index
    %c0_80 = arith.constant 0 : index
    %c0_81 = arith.constant 0 : index
    %85 = vector.load %arg6[%c0_79, %c0_80, %c0_81] : memref<9x128x128xbf16, #tpu.memory_space<vmem>>, vector<1x128x128xbf16>
    %86 = vector.shape_cast %85 : vector<1x128x128xbf16> to vector<128x128xbf16>
    %cst_82 = arith.constant dense<0.000000e+00> : vector<8x128xf32>
    %87 = tpu.matmul %84, %86, %cst_82 {dimension_numbers = #tpu.dot_dimension_numbers<[1], [0], [0], [1], [0, 0, 1, 1], [], []>} : vector<8x128xbf16>, vector<128x128xbf16>, vector<8x128xf32> -> vector<8x128xf32>
    %88 = arith.addf %82, %87 : vector<8x128xf32>
    %c0_83 = arith.constant 0 : index
    %c16_84 = arith.constant 16 : index
    %89 = vector.load %arg10[%c0_83, %c16_84] : memref<10x160xf32, #tpu.memory_space<vmem>>, vector<8x128xf32>
    %90 = arith.truncf %89 : vector<8x128xf32> to vector<8x128xbf16>
    %c1_85 = arith.constant 1 : index
    %c0_86 = arith.constant 0 : index
    %c0_87 = arith.constant 0 : index
    %91 = vector.load %arg6[%c1_85, %c0_86, %c0_87] : memref<9x128x128xbf16, #tpu.memory_space<vmem>>, vector<1x128x128xbf16>
    %92 = vector.shape_cast %91 : vector<1x128x128xbf16> to vector<128x128xbf16>
    %cst_88 = arith.constant dense<0.000000e+00> : vector<8x128xf32>
    %93 = tpu.matmul %90, %92, %cst_88 {dimension_numbers = #tpu.dot_dimension_numbers<[1], [0], [0], [1], [0, 0, 1, 1], [], []>} : vector<8x128xbf16>, vector<128x128xbf16>, vector<8x128xf32> -> vector<8x128xf32>
    %94 = arith.addf %88, %93 : vector<8x128xf32>
    %c0_89 = arith.constant 0 : index
    %c32 = arith.constant 32 : index
    %95 = vector.load %arg10[%c0_89, %c32] : memref<10x160xf32, #tpu.memory_space<vmem>>, vector<8x128xf32>
    %96 = arith.truncf %95 : vector<8x128xf32> to vector<8x128xbf16>
    %c2_90 = arith.constant 2 : index
    %c0_91 = arith.constant 0 : index
    %c0_92 = arith.constant 0 : index
    %97 = vector.load %arg6[%c2_90, %c0_91, %c0_92] : memref<9x128x128xbf16, #tpu.memory_space<vmem>>, vector<1x128x128xbf16>
    %98 = vector.shape_cast %97 : vector<1x128x128xbf16> to vector<128x128xbf16>
    %cst_93 = arith.constant dense<0.000000e+00> : vector<8x128xf32>
    %99 = tpu.matmul %96, %98, %cst_93 {dimension_numbers = #tpu.dot_dimension_numbers<[1], [0], [0], [1], [0, 0, 1, 1], [], []>} : vector<8x128xbf16>, vector<128x128xbf16>, vector<8x128xf32> -> vector<8x128xf32>
    %100 = arith.addf %94, %99 : vector<8x128xf32>
    %c1_94 = arith.constant 1 : index
    %c0_95 = arith.constant 0 : index
    %101 = vector.load %arg10[%c1_94, %c0_95] : memref<10x160xf32, #tpu.memory_space<vmem>>, vector<8x128xf32>
    %102 = arith.truncf %101 : vector<8x128xf32> to vector<8x128xbf16>
    %c3_96 = arith.constant 3 : index
    %c0_97 = arith.constant 0 : index
    %c0_98 = arith.constant 0 : index
    %103 = vector.load %arg6[%c3_96, %c0_97, %c0_98] : memref<9x128x128xbf16, #tpu.memory_space<vmem>>, vector<1x128x128xbf16>
    %104 = vector.shape_cast %103 : vector<1x128x128xbf16> to vector<128x128xbf16>
    %cst_99 = arith.constant dense<0.000000e+00> : vector<8x128xf32>
    %105 = tpu.matmul %102, %104, %cst_99 {dimension_numbers = #tpu.dot_dimension_numbers<[1], [0], [0], [1], [0, 0, 1, 1], [], []>} : vector<8x128xbf16>, vector<128x128xbf16>, vector<8x128xf32> -> vector<8x128xf32>
    %106 = arith.addf %100, %105 : vector<8x128xf32>
    %c1_100 = arith.constant 1 : index
    %c16_101 = arith.constant 16 : index
    %107 = vector.load %arg10[%c1_100, %c16_101] : memref<10x160xf32, #tpu.memory_space<vmem>>, vector<8x128xf32>
    %108 = arith.truncf %107 : vector<8x128xf32> to vector<8x128xbf16>
    %c4_102 = arith.constant 4 : index
    %c0_103 = arith.constant 0 : index
    %c0_104 = arith.constant 0 : index
    %109 = vector.load %arg6[%c4_102, %c0_103, %c0_104] : memref<9x128x128xbf16, #tpu.memory_space<vmem>>, vector<1x128x128xbf16>
    %110 = vector.shape_cast %109 : vector<1x128x128xbf16> to vector<128x128xbf16>
    %cst_105 = arith.constant dense<0.000000e+00> : vector<8x128xf32>
    %111 = tpu.matmul %108, %110, %cst_105 {dimension_numbers = #tpu.dot_dimension_numbers<[1], [0], [0], [1], [0, 0, 1, 1], [], []>} : vector<8x128xbf16>, vector<128x128xbf16>, vector<8x128xf32> -> vector<8x128xf32>
    %112 = arith.addf %106, %111 : vector<8x128xf32>
    %c1_106 = arith.constant 1 : index
    %c32_107 = arith.constant 32 : index
    %113 = vector.load %arg10[%c1_106, %c32_107] : memref<10x160xf32, #tpu.memory_space<vmem>>, vector<8x128xf32>
    %114 = arith.truncf %113 : vector<8x128xf32> to vector<8x128xbf16>
    %c5_108 = arith.constant 5 : index
    %c0_109 = arith.constant 0 : index
    %c0_110 = arith.constant 0 : index
    %115 = vector.load %arg6[%c5_108, %c0_109, %c0_110] : memref<9x128x128xbf16, #tpu.memory_space<vmem>>, vector<1x128x128xbf16>
    %116 = vector.shape_cast %115 : vector<1x128x128xbf16> to vector<128x128xbf16>
    %cst_111 = arith.constant dense<0.000000e+00> : vector<8x128xf32>
    %117 = tpu.matmul %114, %116, %cst_111 {dimension_numbers = #tpu.dot_dimension_numbers<[1], [0], [0], [1], [0, 0, 1, 1], [], []>} : vector<8x128xbf16>, vector<128x128xbf16>, vector<8x128xf32> -> vector<8x128xf32>
    %118 = arith.addf %112, %117 : vector<8x128xf32>
    %c2_112 = arith.constant 2 : index
    %c0_113 = arith.constant 0 : index
    %119 = vector.load %arg10[%c2_112, %c0_113] : memref<10x160xf32, #tpu.memory_space<vmem>>, vector<8x128xf32>
    %120 = arith.truncf %119 : vector<8x128xf32> to vector<8x128xbf16>
    %c6_114 = arith.constant 6 : index
    %c0_115 = arith.constant 0 : index
    %c0_116 = arith.constant 0 : index
    %121 = vector.load %arg6[%c6_114, %c0_115, %c0_116] : memref<9x128x128xbf16, #tpu.memory_space<vmem>>, vector<1x128x128xbf16>
    %122 = vector.shape_cast %121 : vector<1x128x128xbf16> to vector<128x128xbf16>
    %cst_117 = arith.constant dense<0.000000e+00> : vector<8x128xf32>
    %123 = tpu.matmul %120, %122, %cst_117 {dimension_numbers = #tpu.dot_dimension_numbers<[1], [0], [0], [1], [0, 0, 1, 1], [], []>} : vector<8x128xbf16>, vector<128x128xbf16>, vector<8x128xf32> -> vector<8x128xf32>
    %124 = arith.addf %118, %123 : vector<8x128xf32>
    %c2_118 = arith.constant 2 : index
    %c16_119 = arith.constant 16 : index
    %125 = vector.load %arg10[%c2_118, %c16_119] : memref<10x160xf32, #tpu.memory_space<vmem>>, vector<8x128xf32>
    %126 = arith.truncf %125 : vector<8x128xf32> to vector<8x128xbf16>
    %c7_120 = arith.constant 7 : index
    %c0_121 = arith.constant 0 : index
    %c0_122 = arith.constant 0 : index
    %127 = vector.load %arg6[%c7_120, %c0_121, %c0_122] : memref<9x128x128xbf16, #tpu.memory_space<vmem>>, vector<1x128x128xbf16>
    %128 = vector.shape_cast %127 : vector<1x128x128xbf16> to vector<128x128xbf16>
    %cst_123 = arith.constant dense<0.000000e+00> : vector<8x128xf32>
    %129 = tpu.matmul %126, %128, %cst_123 {dimension_numbers = #tpu.dot_dimension_numbers<[1], [0], [0], [1], [0, 0, 1, 1], [], []>} : vector<8x128xbf16>, vector<128x128xbf16>, vector<8x128xf32> -> vector<8x128xf32>
    %130 = arith.addf %124, %129 : vector<8x128xf32>
    %c2_124 = arith.constant 2 : index
    %c32_125 = arith.constant 32 : index
    %131 = vector.load %arg10[%c2_124, %c32_125] : memref<10x160xf32, #tpu.memory_space<vmem>>, vector<8x128xf32>
    %132 = arith.truncf %131 : vector<8x128xf32> to vector<8x128xbf16>
    %c8_126 = arith.constant 8 : index
    %c0_127 = arith.constant 0 : index
    %c0_128 = arith.constant 0 : index
    %133 = vector.load %arg6[%c8_126, %c0_127, %c0_128] : memref<9x128x128xbf16, #tpu.memory_space<vmem>>, vector<1x128x128xbf16>
    %134 = vector.shape_cast %133 : vector<1x128x128xbf16> to vector<128x128xbf16>
    %cst_129 = arith.constant dense<0.000000e+00> : vector<8x128xf32>
    %135 = tpu.matmul %132, %134, %cst_129 {dimension_numbers = #tpu.dot_dimension_numbers<[1], [0], [0], [1], [0, 0, 1, 1], [], []>} : vector<8x128xbf16>, vector<128x128xbf16>, vector<8x128xf32> -> vector<8x128xf32>
    %136 = arith.addf %130, %135 : vector<8x128xf32>
    %c0_130 = arith.constant 0 : index
    %c0_131 = arith.constant 0 : index
    %137 = vector.load %arg7[%c0_130, %c0_131] : memref<1x128xf32, #tpu.memory_space<vmem>>, vector<1x128xf32>
    %138 = vector.broadcast %137 : vector<1x128xf32> to vector<8x128xf32>
    %139 = arith.addf %136, %138 : vector<8x128xf32>
    %cst_132 = arith.constant 0.000000e+00 : f32
    %140 = vector.broadcast %cst_132 : f32 to vector<8x128xf32>
    %141 = arith.maximumf %139, %140 : vector<8x128xf32>
    %142 = vector.shape_cast %141 : vector<8x128xf32> to vector<1x8x128xf32>
    %c0_133 = arith.constant 0 : index
    %c0_134 = arith.constant 0 : index
    %c0_135 = arith.constant 0 : index
    %143 = vector.load %arg8[%c0_133, %c0_134, %c0_135] : memref<1x8x128xf32, #tpu.memory_space<vmem>>, vector<1x8x128xf32>
    tpu.vector_store %arg8[%c0_133, %c0_134, %c0_135], %142 {strides = array<i32>} : memref<1x8x128xf32, #tpu.memory_space<vmem>>, vector<1x8x128xf32>,
    return
  }
  func.func @transform_0(%arg0: i32) -> (i32, i32, i32) {
    %c0_i32 = arith.constant 0 : i32
    %c0_i32_0 = arith.constant 0 : i32
    %c0_i32_1 = arith.constant 0 : i32
    return %arg0, %c0_i32, %c0_i32_0 : i32, i32, i32
  }
  func.func @transform_1(%arg0: i32) -> (i32, i32, i32) {
    %c0_i32 = arith.constant 0 : i32
    %c0_i32_0 = arith.constant 0 : i32
    %c0_i32_1 = arith.constant 0 : i32
    %c0_i32_2 = arith.constant 0 : i32
    return %c0_i32, %c0_i32_0, %c0_i32_1 : i32, i32, i32
  }
  func.func @transform_2(%arg0: i32) -> (i32, i32, i32) {
    %c0_i32 = arith.constant 0 : i32
    %c0_i32_0 = arith.constant 0 : i32
    %c0_i32_1 = arith.constant 0 : i32
    %c0_i32_2 = arith.constant 0 : i32
    return %c0_i32, %c0_i32_0, %c0_i32_1 : i32, i32, i32
  }
  func.func @transform_3(%arg0: i32) -> (i32, i32, i32) {
    %c0_i32 = arith.constant 0 : i32
    %c0_i32_0 = arith.constant 0 : i32
    %c0_i32_1 = arith.constant 0 : i32
    %c0_i32_2 = arith.constant 0 : i32
    return %c0_i32, %c0_i32_0, %c0_i32_1 : i32, i32, i32
  }
  func.func @transform_4(%arg0: i32) -> (i32, i32) {
    %c0_i32 = arith.constant 0 : i32
    %c0_i32_0 = arith.constant 0 : i32
    %c0_i32_1 = arith.constant 0 : i32
    return %c0_i32, %c0_i32_0 : i32, i32
  }
  func.func @transform_5(%arg0: i32) -> (i32, i32, i32) {
    %c0_i32 = arith.constant 0 : i32
    %c0_i32_0 = arith.constant 0 : i32
    %c0_i32_1 = arith.constant 0 : i32
    %c0_i32_2 = arith.constant 0 : i32
    return %c0_i32, %c0_i32_0, %c0_i32_1 : i32, i32, i32
  }
  func.func @transform_6(%arg0: i32) -> (i32, i32) {
    %c0_i32 = arith.constant 0 : i32
    %c0_i32_0 = arith.constant 0 : i32
    %c0_i32_1 = arith.constant 0 : i32
    return %c0_i32, %c0_i32_0 : i32, i32
  }
  func.func @transform_7(%arg0: i32) -> (i32, i32, i32) {
    %c0_i32 = arith.constant 0 : i32
    %c0_i32_0 = arith.constant 0 : i32
    %c0_i32_1 = arith.constant 0 : i32
    return %arg0, %c0_i32, %c0_i32_0 : i32, i32, i32
  }
}

module attributes {stable_mosaic.version = 11 : i64} {
  func.func @kernel(%arg0: i32, %arg1: memref<1x8x128xf32, #tpu.memory_space<vmem>>, %arg2: memref<2x4x8xf32, #tpu.memory_space<vmem>>, %arg3: memref<2x128x64xf32, #tpu.memory_space<vmem>>, %arg4: memref<9x64x128xbf16, #tpu.memory_space<vmem>>, %arg5: memref<1x128xf32, #tpu.memory_space<vmem>>, %arg6: memref<9x128x128xbf16, #tpu.memory_space<vmem>>, %arg7: memref<1x128xf32, #tpu.memory_space<vmem>>, %arg8: memref<1x4x128xf32, #tpu.memory_space<vmem>>, %arg9: memref<6x96xf32, #tpu.memory_space<vmem>>, %arg10: memref<6x192xf32, #tpu.memory_space<vmem>>) attributes {dimension_semantics = [#tpu.dimension_semantics<parallel>], iteration_bounds = array<i64: 2>, scalar_prefetch = 0 : i64, scratch_operands = 2 : i64, tpu.core_type = #tpu.core_type<tc>, window_params = [{transform_indices = @transform_0, window_bounds = array<i64: 1, 8, 128>}, {pipeline_mode = #tpu.pipeline_mode<synchronous>, transform_indices = @transform_1, window_bounds = array<i64: 2, 4, 8>}, {pipeline_mode = #tpu.pipeline_mode<synchronous>, transform_indices = @transform_2, window_bounds = array<i64: 2, 128, 64>}, {pipeline_mode = #tpu.pipeline_mode<synchronous>, transform_indices = @transform_3, window_bounds = array<i64: 9, 64, 128>}, {pipeline_mode = #tpu.pipeline_mode<synchronous>, transform_indices = @transform_4, window_bounds = array<i64: 1, 128>}, {pipeline_mode = #tpu.pipeline_mode<synchronous>, transform_indices = @transform_5, window_bounds = array<i64: 9, 128, 128>}, {pipeline_mode = #tpu.pipeline_mode<synchronous>, transform_indices = @transform_6, window_bounds = array<i64: 1, 128>}, {transform_indices = @transform_7, window_bounds = array<i64: 1, 4, 128>}]} {
    %c0 = arith.constant 0 : index
    %c0_0 = arith.constant 0 : index
    %c0_1 = arith.constant 0 : index
    %0 = vector.load %arg1[%c0, %c0_0, %c0_1] : memref<1x8x128xf32, #tpu.memory_space<vmem>>, vector<1x8x128xf32>
    %1 = vector.shape_cast %0 : vector<1x8x128xf32> to vector<8x128xf32>
    %c0_2 = arith.constant 0 : index
    %c0_3 = arith.constant 0 : index
    %c0_4 = arith.constant 0 : index
    %2 = vector.load %arg2[%c0_2, %c0_3, %c0_4] : memref<2x4x8xf32, #tpu.memory_space<vmem>>, vector<1x4x8xf32>
    %3 = vector.shape_cast %2 : vector<1x4x8xf32> to vector<4x8xf32>
    %cst = arith.constant dense<0.000000e+00> : vector<4x128xf32>
    %4 = tpu.matmul %3, %1, %cst {dimension_numbers = #tpu.dot_dimension_numbers<[1], [0], [0], [1], [0, 0, 1, 1], [], []>} : vector<4x8xf32>, vector<8x128xf32>, vector<4x128xf32> -> vector<4x128xf32>
    %c1 = arith.constant 1 : index
    %c0_5 = arith.constant 0 : index
    %c0_6 = arith.constant 0 : index
    %5 = vector.load %arg2[%c1, %c0_5, %c0_6] : memref<2x4x8xf32, #tpu.memory_space<vmem>>, vector<1x4x8xf32>
    %6 = vector.shape_cast %5 : vector<1x4x8xf32> to vector<4x8xf32>
    %cst_7 = arith.constant dense<0.000000e+00> : vector<4x128xf32>
    %7 = tpu.matmul %6, %1, %cst_7 {dimension_numbers = #tpu.dot_dimension_numbers<[1], [0], [0], [1], [0, 0, 1, 1], [], []>} : vector<4x8xf32>, vector<8x128xf32>, vector<4x128xf32> -> vector<4x128xf32>
    %8 = arith.maximumf %4, %7 : vector<4x128xf32>
    %c0_8 = arith.constant 0 : index
    %c0_9 = arith.constant 0 : index
    %c0_10 = arith.constant 0 : index
    %9 = vector.load %arg3[%c0_8, %c0_9, %c0_10] : memref<2x128x64xf32, #tpu.memory_space<vmem>>, vector<1x128x64xf32>
    %10 = vector.shape_cast %9 : vector<1x128x64xf32> to vector<128x64xf32>
    %cst_11 = arith.constant dense<0.000000e+00> : vector<4x64xf32>
    %11 = tpu.matmul %8, %10, %cst_11 {dimension_numbers = #tpu.dot_dimension_numbers<[1], [0], [0], [1], [0, 0, 1, 1], [], []>} : vector<4x128xf32>, vector<128x64xf32>, vector<4x64xf32> -> vector<4x64xf32>
    %c1_12 = arith.constant 1 : index
    %c0_13 = arith.constant 0 : index
    %c0_14 = arith.constant 0 : index
    %12 = vector.load %arg3[%c1_12, %c0_13, %c0_14] : memref<2x128x64xf32, #tpu.memory_space<vmem>>, vector<1x128x64xf32>
    %13 = vector.shape_cast %12 : vector<1x128x64xf32> to vector<128x64xf32>
    %cst_15 = arith.constant dense<0.000000e+00> : vector<4x64xf32>
    %14 = tpu.matmul %8, %13, %cst_15 {dimension_numbers = #tpu.dot_dimension_numbers<[1], [0], [0], [1], [0, 0, 1, 1], [], []>} : vector<4x128xf32>, vector<128x64xf32>, vector<4x64xf32> -> vector<4x64xf32>
    %15 = arith.maximumf %11, %14 : vector<4x64xf32>
    %cst_16 = arith.constant 0.000000e+00 : f32
    %16 = vector.broadcast %cst_16 : f32 to vector<6x96xf32>
    %c0_17 = arith.constant 0 : index
    %c0_18 = arith.constant 0 : index
    %17 = vector.load %arg9[%c0_17, %c0_18] : memref<6x96xf32, #tpu.memory_space<vmem>>, vector<6x96xf32>
    tpu.vector_store %arg9[%c0_17, %c0_18], %16 {strides = array<i32>} : memref<6x96xf32, #tpu.memory_space<vmem>>, vector<6x96xf32>,
    %c1_19 = arith.constant 1 : index
    %c16 = arith.constant 16 : index
    %18 = vector.load %arg9[%c1_19, %c16] : memref<6x96xf32, #tpu.memory_space<vmem>>, vector<4x64xf32>
    tpu.vector_store %arg9[%c1_19, %c16], %15 {strides = array<i32>} : memref<6x96xf32, #tpu.memory_space<vmem>>, vector<4x64xf32>,
    %cst_20 = arith.constant 0.000000e+00 : f32
    %19 = vector.broadcast %cst_20 : f32 to vector<4x128xf32>
    %c0_21 = arith.constant 0 : index
    %c0_22 = arith.constant 0 : index
    %20 = vector.load %arg9[%c0_21, %c0_22] : memref<6x96xf32, #tpu.memory_space<vmem>>, vector<4x64xf32>
    %21 = arith.truncf %20 : vector<4x64xf32> to vector<4x64xbf16>
    %c0_23 = arith.constant 0 : index
    %c0_24 = arith.constant 0 : index
    %c0_25 = arith.constant 0 : index
    %22 = vector.load %arg4[%c0_23, %c0_24, %c0_25] : memref<9x64x128xbf16, #tpu.memory_space<vmem>>, vector<1x64x128xbf16>
    %23 = vector.shape_cast %22 : vector<1x64x128xbf16> to vector<64x128xbf16>
    %cst_26 = arith.constant dense<0.000000e+00> : vector<4x128xf32>
    %24 = tpu.matmul %21, %23, %cst_26 {dimension_numbers = #tpu.dot_dimension_numbers<[1], [0], [0], [1], [0, 0, 1, 1], [], []>} : vector<4x64xbf16>, vector<64x128xbf16>, vector<4x128xf32> -> vector<4x128xf32>
    %25 = arith.addf %19, %24 : vector<4x128xf32>
    %c0_27 = arith.constant 0 : index
    %c16_28 = arith.constant 16 : index
    %26 = vector.load %arg9[%c0_27, %c16_28] : memref<6x96xf32, #tpu.memory_space<vmem>>, vector<4x64xf32>
    %27 = arith.truncf %26 : vector<4x64xf32> to vector<4x64xbf16>
    %c1_29 = arith.constant 1 : index
    %c0_30 = arith.constant 0 : index
    %c0_31 = arith.constant 0 : index
    %28 = vector.load %arg4[%c1_29, %c0_30, %c0_31] : memref<9x64x128xbf16, #tpu.memory_space<vmem>>, vector<1x64x128xbf16>
    %29 = vector.shape_cast %28 : vector<1x64x128xbf16> to vector<64x128xbf16>
    %cst_32 = arith.constant dense<0.000000e+00> : vector<4x128xf32>
    %30 = tpu.matmul %27, %29, %cst_32 {dimension_numbers = #tpu.dot_dimension_numbers<[1], [0], [0], [1], [0, 0, 1, 1], [], []>} : vector<4x64xbf16>, vector<64x128xbf16>, vector<4x128xf32> -> vector<4x128xf32>
    %31 = arith.addf %25, %30 : vector<4x128xf32>
    %c0_33 = arith.constant 0 : index
    %c32 = arith.constant 32 : index
    %32 = vector.load %arg9[%c0_33, %c32] : memref<6x96xf32, #tpu.memory_space<vmem>>, vector<4x64xf32>
    %33 = arith.truncf %32 : vector<4x64xf32> to vector<4x64xbf16>
    %c2 = arith.constant 2 : index
    %c0_34 = arith.constant 0 : index
    %c0_35 = arith.constant 0 : index
    %34 = vector.load %arg4[%c2, %c0_34, %c0_35] : memref<9x64x128xbf16, #tpu.memory_space<vmem>>, vector<1x64x128xbf16>
    %35 = vector.shape_cast %34 : vector<1x64x128xbf16> to vector<64x128xbf16>
    %cst_36 = arith.constant dense<0.000000e+00> : vector<4x128xf32>
    %36 = tpu.matmul %33, %35, %cst_36 {dimension_numbers = #tpu.dot_dimension_numbers<[1], [0], [0], [1], [0, 0, 1, 1], [], []>} : vector<4x64xbf16>, vector<64x128xbf16>, vector<4x128xf32> -> vector<4x128xf32>
    %37 = arith.addf %31, %36 : vector<4x128xf32>
    %c1_37 = arith.constant 1 : index
    %c0_38 = arith.constant 0 : index
    %38 = vector.load %arg9[%c1_37, %c0_38] : memref<6x96xf32, #tpu.memory_space<vmem>>, vector<4x64xf32>
    %39 = arith.truncf %38 : vector<4x64xf32> to vector<4x64xbf16>
    %c3 = arith.constant 3 : index
    %c0_39 = arith.constant 0 : index
    %c0_40 = arith.constant 0 : index
    %40 = vector.load %arg4[%c3, %c0_39, %c0_40] : memref<9x64x128xbf16, #tpu.memory_space<vmem>>, vector<1x64x128xbf16>
    %41 = vector.shape_cast %40 : vector<1x64x128xbf16> to vector<64x128xbf16>
    %cst_41 = arith.constant dense<0.000000e+00> : vector<4x128xf32>
    %42 = tpu.matmul %39, %41, %cst_41 {dimension_numbers = #tpu.dot_dimension_numbers<[1], [0], [0], [1], [0, 0, 1, 1], [], []>} : vector<4x64xbf16>, vector<64x128xbf16>, vector<4x128xf32> -> vector<4x128xf32>
    %43 = arith.addf %37, %42 : vector<4x128xf32>
    %c1_42 = arith.constant 1 : index
    %c16_43 = arith.constant 16 : index
    %44 = vector.load %arg9[%c1_42, %c16_43] : memref<6x96xf32, #tpu.memory_space<vmem>>, vector<4x64xf32>
    %45 = arith.truncf %44 : vector<4x64xf32> to vector<4x64xbf16>
    %c4 = arith.constant 4 : index
    %c0_44 = arith.constant 0 : index
    %c0_45 = arith.constant 0 : index
    %46 = vector.load %arg4[%c4, %c0_44, %c0_45] : memref<9x64x128xbf16, #tpu.memory_space<vmem>>, vector<1x64x128xbf16>
    %47 = vector.shape_cast %46 : vector<1x64x128xbf16> to vector<64x128xbf16>
    %cst_46 = arith.constant dense<0.000000e+00> : vector<4x128xf32>
    %48 = tpu.matmul %45, %47, %cst_46 {dimension_numbers = #tpu.dot_dimension_numbers<[1], [0], [0], [1], [0, 0, 1, 1], [], []>} : vector<4x64xbf16>, vector<64x128xbf16>, vector<4x128xf32> -> vector<4x128xf32>
    %49 = arith.addf %43, %48 : vector<4x128xf32>
    %c1_47 = arith.constant 1 : index
    %c32_48 = arith.constant 32 : index
    %50 = vector.load %arg9[%c1_47, %c32_48] : memref<6x96xf32, #tpu.memory_space<vmem>>, vector<4x64xf32>
    %51 = arith.truncf %50 : vector<4x64xf32> to vector<4x64xbf16>
    %c5 = arith.constant 5 : index
    %c0_49 = arith.constant 0 : index
    %c0_50 = arith.constant 0 : index
    %52 = vector.load %arg4[%c5, %c0_49, %c0_50] : memref<9x64x128xbf16, #tpu.memory_space<vmem>>, vector<1x64x128xbf16>
    %53 = vector.shape_cast %52 : vector<1x64x128xbf16> to vector<64x128xbf16>
    %cst_51 = arith.constant dense<0.000000e+00> : vector<4x128xf32>
    %54 = tpu.matmul %51, %53, %cst_51 {dimension_numbers = #tpu.dot_dimension_numbers<[1], [0], [0], [1], [0, 0, 1, 1], [], []>} : vector<4x64xbf16>, vector<64x128xbf16>, vector<4x128xf32> -> vector<4x128xf32>
    %55 = arith.addf %49, %54 : vector<4x128xf32>
    %c2_52 = arith.constant 2 : index
    %c0_53 = arith.constant 0 : index
    %56 = vector.load %arg9[%c2_52, %c0_53] : memref<6x96xf32, #tpu.memory_space<vmem>>, vector<4x64xf32>
    %57 = arith.truncf %56 : vector<4x64xf32> to vector<4x64xbf16>
    %c6 = arith.constant 6 : index
    %c0_54 = arith.constant 0 : index
    %c0_55 = arith.constant 0 : index
    %58 = vector.load %arg4[%c6, %c0_54, %c0_55] : memref<9x64x128xbf16, #tpu.memory_space<vmem>>, vector<1x64x128xbf16>
    %59 = vector.shape_cast %58 : vector<1x64x128xbf16> to vector<64x128xbf16>
    %cst_56 = arith.constant dense<0.000000e+00> : vector<4x128xf32>
    %60 = tpu.matmul %57, %59, %cst_56 {dimension_numbers = #tpu.dot_dimension_numbers<[1], [0], [0], [1], [0, 0, 1, 1], [], []>} : vector<4x64xbf16>, vector<64x128xbf16>, vector<4x128xf32> -> vector<4x128xf32>
    %61 = arith.addf %55, %60 : vector<4x128xf32>
    %c2_57 = arith.constant 2 : index
    %c16_58 = arith.constant 16 : index
    %62 = vector.load %arg9[%c2_57, %c16_58] : memref<6x96xf32, #tpu.memory_space<vmem>>, vector<4x64xf32>
    %63 = arith.truncf %62 : vector<4x64xf32> to vector<4x64xbf16>
    %c7 = arith.constant 7 : index
    %c0_59 = arith.constant 0 : index
    %c0_60 = arith.constant 0 : index
    %64 = vector.load %arg4[%c7, %c0_59, %c0_60] : memref<9x64x128xbf16, #tpu.memory_space<vmem>>, vector<1x64x128xbf16>
    %65 = vector.shape_cast %64 : vector<1x64x128xbf16> to vector<64x128xbf16>
    %cst_61 = arith.constant dense<0.000000e+00> : vector<4x128xf32>
    %66 = tpu.matmul %63, %65, %cst_61 {dimension_numbers = #tpu.dot_dimension_numbers<[1], [0], [0], [1], [0, 0, 1, 1], [], []>} : vector<4x64xbf16>, vector<64x128xbf16>, vector<4x128xf32> -> vector<4x128xf32>
    %67 = arith.addf %61, %66 : vector<4x128xf32>
    %c2_62 = arith.constant 2 : index
    %c32_63 = arith.constant 32 : index
    %68 = vector.load %arg9[%c2_62, %c32_63] : memref<6x96xf32, #tpu.memory_space<vmem>>, vector<4x64xf32>
    %69 = arith.truncf %68 : vector<4x64xf32> to vector<4x64xbf16>
    %c8 = arith.constant 8 : index
    %c0_64 = arith.constant 0 : index
    %c0_65 = arith.constant 0 : index
    %70 = vector.load %arg4[%c8, %c0_64, %c0_65] : memref<9x64x128xbf16, #tpu.memory_space<vmem>>, vector<1x64x128xbf16>
    %71 = vector.shape_cast %70 : vector<1x64x128xbf16> to vector<64x128xbf16>
    %cst_66 = arith.constant dense<0.000000e+00> : vector<4x128xf32>
    %72 = tpu.matmul %69, %71, %cst_66 {dimension_numbers = #tpu.dot_dimension_numbers<[1], [0], [0], [1], [0, 0, 1, 1], [], []>} : vector<4x64xbf16>, vector<64x128xbf16>, vector<4x128xf32> -> vector<4x128xf32>
    %73 = arith.addf %67, %72 : vector<4x128xf32>
    %c0_67 = arith.constant 0 : index
    %c0_68 = arith.constant 0 : index
    %74 = vector.load %arg5[%c0_67, %c0_68] : memref<1x128xf32, #tpu.memory_space<vmem>>, vector<1x128xf32>
    %75 = vector.broadcast %74 : vector<1x128xf32> to vector<4x128xf32>
    %76 = arith.addf %73, %75 : vector<4x128xf32>
    %cst_69 = arith.constant 0.000000e+00 : f32
    %77 = vector.broadcast %cst_69 : f32 to vector<4x128xf32>
    %78 = arith.maximumf %76, %77 : vector<4x128xf32>
    %cst_70 = arith.constant 0.000000e+00 : f32
    %79 = vector.broadcast %cst_70 : f32 to vector<6x192xf32>
    %c0_71 = arith.constant 0 : index
    %c0_72 = arith.constant 0 : index
    %80 = vector.load %arg10[%c0_71, %c0_72] : memref<6x192xf32, #tpu.memory_space<vmem>>, vector<6x192xf32>
    tpu.vector_store %arg10[%c0_71, %c0_72], %79 {strides = array<i32>} : memref<6x192xf32, #tpu.memory_space<vmem>>, vector<6x192xf32>,
    %c1_73 = arith.constant 1 : index
    %c32_74 = arith.constant 32 : index
    %81 = vector.load %arg10[%c1_73, %c32_74] : memref<6x192xf32, #tpu.memory_space<vmem>>, vector<4x128xf32>
    tpu.vector_store %arg10[%c1_73, %c32_74], %78 {strides = array<i32>} : memref<6x192xf32, #tpu.memory_space<vmem>>, vector<4x128xf32>,
    %cst_75 = arith.constant 0.000000e+00 : f32
    %82 = vector.broadcast %cst_75 : f32 to vector<4x128xf32>
    %c0_76 = arith.constant 0 : index
    %c0_77 = arith.constant 0 : index
    %83 = vector.load %arg10[%c0_76, %c0_77] : memref<6x192xf32, #tpu.memory_space<vmem>>, vector<4x128xf32>
    %84 = arith.truncf %83 : vector<4x128xf32> to vector<4x128xbf16>
    %c0_78 = arith.constant 0 : index
    %c0_79 = arith.constant 0 : index
    %c0_80 = arith.constant 0 : index
    %85 = vector.load %arg6[%c0_78, %c0_79, %c0_80] : memref<9x128x128xbf16, #tpu.memory_space<vmem>>, vector<1x128x128xbf16>
    %86 = vector.shape_cast %85 : vector<1x128x128xbf16> to vector<128x128xbf16>
    %cst_81 = arith.constant dense<0.000000e+00> : vector<4x128xf32>
    %87 = tpu.matmul %84, %86, %cst_81 {dimension_numbers = #tpu.dot_dimension_numbers<[1], [0], [0], [1], [0, 0, 1, 1], [], []>} : vector<4x128xbf16>, vector<128x128xbf16>, vector<4x128xf32> -> vector<4x128xf32>
    %88 = arith.addf %82, %87 : vector<4x128xf32>
    %c0_82 = arith.constant 0 : index
    %c32_83 = arith.constant 32 : index
    %89 = vector.load %arg10[%c0_82, %c32_83] : memref<6x192xf32, #tpu.memory_space<vmem>>, vector<4x128xf32>
    %90 = arith.truncf %89 : vector<4x128xf32> to vector<4x128xbf16>
    %c1_84 = arith.constant 1 : index
    %c0_85 = arith.constant 0 : index
    %c0_86 = arith.constant 0 : index
    %91 = vector.load %arg6[%c1_84, %c0_85, %c0_86] : memref<9x128x128xbf16, #tpu.memory_space<vmem>>, vector<1x128x128xbf16>
    %92 = vector.shape_cast %91 : vector<1x128x128xbf16> to vector<128x128xbf16>
    %cst_87 = arith.constant dense<0.000000e+00> : vector<4x128xf32>
    %93 = tpu.matmul %90, %92, %cst_87 {dimension_numbers = #tpu.dot_dimension_numbers<[1], [0], [0], [1], [0, 0, 1, 1], [], []>} : vector<4x128xbf16>, vector<128x128xbf16>, vector<4x128xf32> -> vector<4x128xf32>
    %94 = arith.addf %88, %93 : vector<4x128xf32>
    %c0_88 = arith.constant 0 : index
    %c64 = arith.constant 64 : index
    %95 = vector.load %arg10[%c0_88, %c64] : memref<6x192xf32, #tpu.memory_space<vmem>>, vector<4x128xf32>
    %96 = arith.truncf %95 : vector<4x128xf32> to vector<4x128xbf16>
    %c2_89 = arith.constant 2 : index
    %c0_90 = arith.constant 0 : index
    %c0_91 = arith.constant 0 : index
    %97 = vector.load %arg6[%c2_89, %c0_90, %c0_91] : memref<9x128x128xbf16, #tpu.memory_space<vmem>>, vector<1x128x128xbf16>
    %98 = vector.shape_cast %97 : vector<1x128x128xbf16> to vector<128x128xbf16>
    %cst_92 = arith.constant dense<0.000000e+00> : vector<4x128xf32>
    %99 = tpu.matmul %96, %98, %cst_92 {dimension_numbers = #tpu.dot_dimension_numbers<[1], [0], [0], [1], [0, 0, 1, 1], [], []>} : vector<4x128xbf16>, vector<128x128xbf16>, vector<4x128xf32> -> vector<4x128xf32>
    %100 = arith.addf %94, %99 : vector<4x128xf32>
    %c1_93 = arith.constant 1 : index
    %c0_94 = arith.constant 0 : index
    %101 = vector.load %arg10[%c1_93, %c0_94] : memref<6x192xf32, #tpu.memory_space<vmem>>, vector<4x128xf32>
    %102 = arith.truncf %101 : vector<4x128xf32> to vector<4x128xbf16>
    %c3_95 = arith.constant 3 : index
    %c0_96 = arith.constant 0 : index
    %c0_97 = arith.constant 0 : index
    %103 = vector.load %arg6[%c3_95, %c0_96, %c0_97] : memref<9x128x128xbf16, #tpu.memory_space<vmem>>, vector<1x128x128xbf16>
    %104 = vector.shape_cast %103 : vector<1x128x128xbf16> to vector<128x128xbf16>
    %cst_98 = arith.constant dense<0.000000e+00> : vector<4x128xf32>
    %105 = tpu.matmul %102, %104, %cst_98 {dimension_numbers = #tpu.dot_dimension_numbers<[1], [0], [0], [1], [0, 0, 1, 1], [], []>} : vector<4x128xbf16>, vector<128x128xbf16>, vector<4x128xf32> -> vector<4x128xf32>
    %106 = arith.addf %100, %105 : vector<4x128xf32>
    %c1_99 = arith.constant 1 : index
    %c32_100 = arith.constant 32 : index
    %107 = vector.load %arg10[%c1_99, %c32_100] : memref<6x192xf32, #tpu.memory_space<vmem>>, vector<4x128xf32>
    %108 = arith.truncf %107 : vector<4x128xf32> to vector<4x128xbf16>
    %c4_101 = arith.constant 4 : index
    %c0_102 = arith.constant 0 : index
    %c0_103 = arith.constant 0 : index
    %109 = vector.load %arg6[%c4_101, %c0_102, %c0_103] : memref<9x128x128xbf16, #tpu.memory_space<vmem>>, vector<1x128x128xbf16>
    %110 = vector.shape_cast %109 : vector<1x128x128xbf16> to vector<128x128xbf16>
    %cst_104 = arith.constant dense<0.000000e+00> : vector<4x128xf32>
    %111 = tpu.matmul %108, %110, %cst_104 {dimension_numbers = #tpu.dot_dimension_numbers<[1], [0], [0], [1], [0, 0, 1, 1], [], []>} : vector<4x128xbf16>, vector<128x128xbf16>, vector<4x128xf32> -> vector<4x128xf32>
    %112 = arith.addf %106, %111 : vector<4x128xf32>
    %c1_105 = arith.constant 1 : index
    %c64_106 = arith.constant 64 : index
    %113 = vector.load %arg10[%c1_105, %c64_106] : memref<6x192xf32, #tpu.memory_space<vmem>>, vector<4x128xf32>
    %114 = arith.truncf %113 : vector<4x128xf32> to vector<4x128xbf16>
    %c5_107 = arith.constant 5 : index
    %c0_108 = arith.constant 0 : index
    %c0_109 = arith.constant 0 : index
    %115 = vector.load %arg6[%c5_107, %c0_108, %c0_109] : memref<9x128x128xbf16, #tpu.memory_space<vmem>>, vector<1x128x128xbf16>
    %116 = vector.shape_cast %115 : vector<1x128x128xbf16> to vector<128x128xbf16>
    %cst_110 = arith.constant dense<0.000000e+00> : vector<4x128xf32>
    %117 = tpu.matmul %114, %116, %cst_110 {dimension_numbers = #tpu.dot_dimension_numbers<[1], [0], [0], [1], [0, 0, 1, 1], [], []>} : vector<4x128xbf16>, vector<128x128xbf16>, vector<4x128xf32> -> vector<4x128xf32>
    %118 = arith.addf %112, %117 : vector<4x128xf32>
    %c2_111 = arith.constant 2 : index
    %c0_112 = arith.constant 0 : index
    %119 = vector.load %arg10[%c2_111, %c0_112] : memref<6x192xf32, #tpu.memory_space<vmem>>, vector<4x128xf32>
    %120 = arith.truncf %119 : vector<4x128xf32> to vector<4x128xbf16>
    %c6_113 = arith.constant 6 : index
    %c0_114 = arith.constant 0 : index
    %c0_115 = arith.constant 0 : index
    %121 = vector.load %arg6[%c6_113, %c0_114, %c0_115] : memref<9x128x128xbf16, #tpu.memory_space<vmem>>, vector<1x128x128xbf16>
    %122 = vector.shape_cast %121 : vector<1x128x128xbf16> to vector<128x128xbf16>
    %cst_116 = arith.constant dense<0.000000e+00> : vector<4x128xf32>
    %123 = tpu.matmul %120, %122, %cst_116 {dimension_numbers = #tpu.dot_dimension_numbers<[1], [0], [0], [1], [0, 0, 1, 1], [], []>} : vector<4x128xbf16>, vector<128x128xbf16>, vector<4x128xf32> -> vector<4x128xf32>
    %124 = arith.addf %118, %123 : vector<4x128xf32>
    %c2_117 = arith.constant 2 : index
    %c32_118 = arith.constant 32 : index
    %125 = vector.load %arg10[%c2_117, %c32_118] : memref<6x192xf32, #tpu.memory_space<vmem>>, vector<4x128xf32>
    %126 = arith.truncf %125 : vector<4x128xf32> to vector<4x128xbf16>
    %c7_119 = arith.constant 7 : index
    %c0_120 = arith.constant 0 : index
    %c0_121 = arith.constant 0 : index
    %127 = vector.load %arg6[%c7_119, %c0_120, %c0_121] : memref<9x128x128xbf16, #tpu.memory_space<vmem>>, vector<1x128x128xbf16>
    %128 = vector.shape_cast %127 : vector<1x128x128xbf16> to vector<128x128xbf16>
    %cst_122 = arith.constant dense<0.000000e+00> : vector<4x128xf32>
    %129 = tpu.matmul %126, %128, %cst_122 {dimension_numbers = #tpu.dot_dimension_numbers<[1], [0], [0], [1], [0, 0, 1, 1], [], []>} : vector<4x128xbf16>, vector<128x128xbf16>, vector<4x128xf32> -> vector<4x128xf32>
    %130 = arith.addf %124, %129 : vector<4x128xf32>
    %c2_123 = arith.constant 2 : index
    %c64_124 = arith.constant 64 : index
    %131 = vector.load %arg10[%c2_123, %c64_124] : memref<6x192xf32, #tpu.memory_space<vmem>>, vector<4x128xf32>
    %132 = arith.truncf %131 : vector<4x128xf32> to vector<4x128xbf16>
    %c8_125 = arith.constant 8 : index
    %c0_126 = arith.constant 0 : index
    %c0_127 = arith.constant 0 : index
    %133 = vector.load %arg6[%c8_125, %c0_126, %c0_127] : memref<9x128x128xbf16, #tpu.memory_space<vmem>>, vector<1x128x128xbf16>
    %134 = vector.shape_cast %133 : vector<1x128x128xbf16> to vector<128x128xbf16>
    %cst_128 = arith.constant dense<0.000000e+00> : vector<4x128xf32>
    %135 = tpu.matmul %132, %134, %cst_128 {dimension_numbers = #tpu.dot_dimension_numbers<[1], [0], [0], [1], [0, 0, 1, 1], [], []>} : vector<4x128xbf16>, vector<128x128xbf16>, vector<4x128xf32> -> vector<4x128xf32>
    %136 = arith.addf %130, %135 : vector<4x128xf32>
    %c0_129 = arith.constant 0 : index
    %c0_130 = arith.constant 0 : index
    %137 = vector.load %arg7[%c0_129, %c0_130] : memref<1x128xf32, #tpu.memory_space<vmem>>, vector<1x128xf32>
    %138 = vector.broadcast %137 : vector<1x128xf32> to vector<4x128xf32>
    %139 = arith.addf %136, %138 : vector<4x128xf32>
    %cst_131 = arith.constant 0.000000e+00 : f32
    %140 = vector.broadcast %cst_131 : f32 to vector<4x128xf32>
    %141 = arith.maximumf %139, %140 : vector<4x128xf32>
    %142 = vector.shape_cast %141 : vector<4x128xf32> to vector<1x4x128xf32>
    %c0_132 = arith.constant 0 : index
    %c0_133 = arith.constant 0 : index
    %c0_134 = arith.constant 0 : index
    %143 = vector.load %arg8[%c0_132, %c0_133, %c0_134] : memref<1x4x128xf32, #tpu.memory_space<vmem>>, vector<1x4x128xf32>
    tpu.vector_store %arg8[%c0_132, %c0_133, %c0_134], %142 {strides = array<i32>} : memref<1x4x128xf32, #tpu.memory_space<vmem>>, vector<1x4x128xf32>,
    return
  }
  func.func @transform_0(%arg0: i32) -> (i32, i32, i32) {
    %c0_i32 = arith.constant 0 : i32
    %c0_i32_0 = arith.constant 0 : i32
    %c0_i32_1 = arith.constant 0 : i32
    return %arg0, %c0_i32, %c0_i32_0 : i32, i32, i32
  }
  func.func @transform_1(%arg0: i32) -> (i32, i32, i32) {
    %c0_i32 = arith.constant 0 : i32
    %c0_i32_0 = arith.constant 0 : i32
    %c0_i32_1 = arith.constant 0 : i32
    %c0_i32_2 = arith.constant 0 : i32
    return %c0_i32, %c0_i32_0, %c0_i32_1 : i32, i32, i32
  }
  func.func @transform_2(%arg0: i32) -> (i32, i32, i32) {
    %c0_i32 = arith.constant 0 : i32
    %c0_i32_0 = arith.constant 0 : i32
    %c0_i32_1 = arith.constant 0 : i32
    %c0_i32_2 = arith.constant 0 : i32
    return %c0_i32, %c0_i32_0, %c0_i32_1 : i32, i32, i32
  }
  func.func @transform_3(%arg0: i32) -> (i32, i32, i32) {
    %c0_i32 = arith.constant 0 : i32
    %c0_i32_0 = arith.constant 0 : i32
    %c0_i32_1 = arith.constant 0 : i32
    %c0_i32_2 = arith.constant 0 : i32
    return %c0_i32, %c0_i32_0, %c0_i32_1 : i32, i32, i32
  }
  func.func @transform_4(%arg0: i32) -> (i32, i32) {
    %c0_i32 = arith.constant 0 : i32
    %c0_i32_0 = arith.constant 0 : i32
    %c0_i32_1 = arith.constant 0 : i32
    return %c0_i32, %c0_i32_0 : i32, i32
  }
  func.func @transform_5(%arg0: i32) -> (i32, i32, i32) {
    %c0_i32 = arith.constant 0 : i32
    %c0_i32_0 = arith.constant 0 : i32
    %c0_i32_1 = arith.constant 0 : i32
    %c0_i32_2 = arith.constant 0 : i32
    return %c0_i32, %c0_i32_0, %c0_i32_1 : i32, i32, i32
  }
  func.func @transform_6(%arg0: i32) -> (i32, i32) {
    %c0_i32 = arith.constant 0 : i32
    %c0_i32_0 = arith.constant 0 : i32
    %c0_i32_1 = arith.constant 0 : i32
    return %c0_i32, %c0_i32_0 : i32, i32
  }
  func.func @transform_7(%arg0: i32) -> (i32, i32, i32) {
    %c0_i32 = arith.constant 0 : i32
    %c0_i32_0 = arith.constant 0 : i32
    %c0_i32_1 = arith.constant 0 : i32
    return %arg0, %c0_i32, %c0_i32_0 : i32, i32, i32
  }
}

</mosaic_0001>

<bundles_post_ra>
// kernel: _lambda_.3
= control target key start
LH: loop header
LB: loop body
LE: loop exit
PB: predicated region body
PF: predicated region fallthrough
CT: control target
= control target key end

     0   :  { %10 = vsyncpa [#allocation5], 0  ;;  %s2328_s18 = smov 0   ;;  %s2499_s0 = inlined_call_operand.vmem [shape: f32[2,16,48], index: 0, kind: input, shape index: {}]   ;;  %s2500_s1 = inlined_call_operand.vmem [shape: bf16[9,48,128], index: 1, kind: input, shape index: {}]   ;;  %s2501_s2 = inlined_call_operand.vmem [shape: f32[1,128], index: 2, kind: input, shape index: {}]   ;;  %s2502_s3 = inlined_call_operand.hbm [shape: bf16[9,128,128], index: 3, kind: input, shape index: {}]   ;;  %s2503_s4 = inlined_call_operand.vmem [shape: f32[1,128], index: 4, kind: input, shape index: {}]   ;;  %s2504_s5 = inlined_call_operand.vmem [shape: f32[2,16,128], index: 5, kind: output, shape index: {}]  }
   0x1 LB: > { %s174_s21 = sshll.u32 %s2502_s3, 4  ;;  %s1649_s22 = sadd.s32 4294967295, %s2286_s18   ;;  %s2286_s18 = sphi %s2328_s18, %s16_s18   ;;  %s175_s21 = int_to_ptr.hbm [resolvable:$true] %s174_s21 }
   0x2   : > { %p1651_p0 = scmp.ge.s32.totalorder %s2286_s18, 1  ;;  %p157_p1 = scmp.lt.s32.totalorder %s2286_s18, 3 }
   0x3   : > { %p2224_p2 = scmp.eq.s32.totalorder %s1649_s22, 0  ;;  %s2288_s23 = smov [#allocation4]  }
   0x4   : > { %p158_p3 = pnand %p1651_p0, %p157_p1  ;;  %s176_s24 = sshll.u32 %s2288_s23, 4  ;;  %s177_s24 = int_to_ptr.vmem [resolvable:$true] %s176_s24 }
   0x5   : > { %s2289_s25 = smov 64   ;;  %s2290_s26 = smov 4  }
   0x6   : > { %p2220_p4 = pneg %p158_p3  ;;  %203 = sbr.rel (%p158_p3) target bundleno = 860 (0x35c), region = 40 }
   0x8   : > { %p2221_p5 = pnand %p2224_p2, %p2220_p4 }
   0xa   : > { %2223 = dma.hbm_to_vmem [thread:$0]  (!%p2221_p5), %s175_s21, 9216, %s177_s24, [#allocation5], %s2289_s25, %s2289_s25, %s2290_s26  }
   0xb   : > { %2281 = dma.done.wait (%p2224_p2), [#allocation5], 9216  }
   0xc   : > { %2283 = vsyncadd (%p2224_p2), [#allocation5], 4294958080  ;;  %p232_p6 = scmp.lt.s32.totalorder %s1649_s22, 1  ;;  %vm245_vm0 = vcmask 441344   ;;  %v2291_v0 = vmov 0.0   ;;  %s2292_s6 = smov 3  }
   0xd   : > { %246 = vst.msk [vmem:[#allocation2] sm:$0xff] %vm245_vm0, %v2291_v0  ;;  %v2119_v3 = vld [vmem:[%s2500_s1 + $0x10] sm:$0xff]  ;;  %v2128_v4 = vld [vmem:[%s2500_s1 + $0x58] sm:$0xff]  ;;  %vm248_vm1 = vcmask 435200   ;;  %v2118_v5 = vld [vmem:[%s2500_s1 + $0x8] sm:$0xff]  ;;  %vm258_vm2 = vcmask 416792  }
   0xe   : > { %s2506_s22 = smov (!%p232_p6, %s1649_s22), 1  ;;  %247 = vst.msk [vmem:[#allocation2 + $0x8] sm:$0xff] %vm245_vm0, %v2291_v0  ;;  %342 = vmatpush.bf16.msra.mxu2 %v2119_v3  ;;  %433 = vmatpush.bf16.msra.mxu3 %v2128_v4  ;;  %v2127_v6 = vld [vmem:[%s2500_s1 + $0x50] sm:$0xff]  ;;  %v2117_v7 = vld [vmem:[%s2500_s1] sm:$0xff]  ;;  %v2126_v8 = vld [vmem:[%s2500_s1 + $0x48] sm:$0xff]  ;;  %vm298_vm3 = vcmask 392192  }
   0xf   : > { %685 = vst [vmem:[#allocation3] sm:$0xff] %v2291_v0  ;;  %s2115_s27 = sshll.u32 %s2506_s22, 4  ;;  %v2140_v10 = vld [vmem:[%s2500_s1 + $0xb8] sm:$0xff]  ;;  %s2293_s23 = smov 122   ;;  %v2139_v21 = vld [vmem:[%s2500_s1 + $0xb0] sm:$0xff]  ;;  %v2138_v22 = vld [vmem:[%s2500_s1 + $0xa8] sm:$0xff] }
  0x10   : > { %688 = vst [vmem:[#allocation3 + $0x10] sm:$0xff] %v2291_v0  ;;  %s236_s30 = scalar_lea.vmem %s2499_s0, %s2115_s27  ;;  %s2294_s24 = smov 125   ;;  %v2122_v23 = vld [vmem:[%s2500_s1 + $0x28] sm:$0xff]  ;;  %v2125_v25 = vld [vmem:[%s2500_s1 + $0x40] sm:$0xff]  ;;  %v2124_v28 = vld [vmem:[%s2500_s1 + $0x38] sm:$0xff]  ;;  %vm686_vm4 = vcmask 130048  }
  0x11   : > { %690 = vst [vmem:[#allocation3 + $0x20] sm:$0x3] %v2291_v0  ;;  %v243_v1 = vld [vmem:[%s236_s30] sm:$0xff]  ;;  %v244_v2 = vld [vmem:[%s236_s30 + $0x8] sm:$0xff]  ;;  %307 = vmatpush.bf16.msra.mxu0 %v2122_v23  ;;  %v2120_v29 = vld [vmem:[%s2500_s1 + $0x18] sm:$0xff]  ;;  %vm695_vm5 = vcmask 1040384  }
  0x12   : > { %252 = vrot.lane.b32.xlu0 %v243_v1, %s2292_s6  ;;  %249 = vst.msk [vmem:[#allocation2 + $0x10] sm:$0x3] %vm248_vm1, %v2291_v0  ;;  %343 = vmatpush.bf16.msra.mxu2 %v2118_v5  ;;  %v2134_v24 = vld [vmem:[%s2500_s1 + $0x88] sm:$0xff]  ;;  %v2121_v26 = vld [vmem:[%s2500_s1 + $0x20] sm:$0xff]  ;;  %v2132_v30 = vld [vmem:[%s2500_s1 + $0x78] sm:$0xff]  ;;  %vm691_vm6 = vcmask 123904  }
  0x13   : > { %434 = vmatpush.bf16.msra.mxu3 %v2127_v6  ;;  %526 = vmatpush.bf16.msra.mxu1 %v2134_v24  ;;  %v2133_v27 = vld [vmem:[%s2500_s1 + $0x80] sm:$0xff]  ;;  %v2131_v31 = vld [vmem:[%s2500_s1 + $0x70] sm:$0xff]  ;;  %v2130_v34 = vld [vmem:[%s2500_s1 + $0x68] sm:$0xff]  ;;  %687 = vst.msk [vmem:[#allocation3 + $0x8] sm:$0xff] %vm686_vm4, %v2291_v0  ;;  %vm708_vm7 = vcmask 1047617   ;;  %vm710_vm8 = vcmask 64513  }
  0x14   : > { %v2123_v32 = vld [vmem:[%s2500_s1 + $0x30] sm:$0xff]  ;;  %v2137_v35 = vld [vmem:[%s2500_s1 + $0xa0] sm:$0xff]  ;;  %v2136_v37 = vld [vmem:[%s2500_s1 + $0x98] sm:$0xff]  ;;  %689 = vst.msk [vmem:[#allocation3 + $0x18] sm:$0xff] %vm686_vm4, %v2291_v0  ;;  %vm716_vm9 = vcmask 1040448   ;;  %vm718_vm10 = vcmask 57344  }
  0x15   : > { %308 = vmatpush.bf16.msra.mxu0 %v2121_v26  ;;  %v2129_v36 = vld [vmem:[%s2500_s1 + $0x60] sm:$0xff]  ;;  %v2135_v39 = vld [vmem:[%s2500_s1 + $0x90] sm:$0xff]  ;;  %v2142_v43 = vld [vmem:[%s2500_s1 + $0xc8] sm:$0xff]  ;;  %692 = vst.msk [vmem:[#allocation3 + $0x28] sm:$0x3] %vm691_vm6, %v2291_v0  ;;  %vm712_vm11 = vcmask 1047616  }
  0x16   : > { %344 = vmatpush.bf16.msra.mxu2 %v2117_v7  ;;  %v2143_v40 = vld [vmem:[%s2500_s1 + $0xd0] sm:$0xff]  ;;  %v2141_v44 = vld [vmem:[%s2500_s1 + $0xc0] sm:$0xff]  ;;  %v2146_v0 = vld [vmem:[#allocation4 + $0x10] sm:$0xff]  ;;  %vm714_vm12 = vcmask 64512   ;;  %s2297_s25 = smov 120   ;;  %vm1311_vm14 = vcmask 1046528  }
  0x17   : > { %435 = vmatpush.bf16.msra.mxu3 %v2126_v8  ;;  %527 = vmatpush.bf16.msra.mxu1 %v2133_v27  ;;  %v2151_v26 = vld [vmem:[#allocation4 + $0x38] sm:$0xff]  ;;  %vm1002_vm13 = vsmask.f32 7424  ;;  %vm913_vm15 = vcmask 916480   ;;  %vm765_vm0 = vcmask 982016  }
  0x18   : > { %v2175_v27 = vld [vmem:[#allocation4 + $0xf8] sm:$0xff] }
  0x19   : > { %309 = vmatpush.bf16.msra.mxu0 %v2120_v29  ;;  %v2174_v29 = vld [vmem:[#allocation4 + $0xf0] sm:$0xff] }
  0x1a   : > { %254 = vrot.lane.b32.xlu0 %v244_v2, %s2292_s6  ;;  %386 = vmatpush.bf16.msrb.mxu2 %v2125_v25  ;;  %s241_s6 = scalar_lea.vmem %s2504_s5, %s2115_s27 }
  0x1b   : > { %620 = vmatpush.bf16.msrb.mxu3 %v2140_v10  ;;  %528 = vmatpush.bf16.msra.mxu1 %v2132_v30  ;;  %v2149_v30 = vld [vmem:[#allocation4 + $0x28] sm:$0xff] }
  0x1d   : > { %480 = vmatpush.bf16.msrb.mxu0 %v2131_v31  ;;  %v2173_v31 = vld [vmem:[#allocation4 + $0xe8] sm:$0xff] }
  0x1e   : > { %387 = vmatpush.bf16.msrb.mxu2 %v2124_v28  ;;  %v2150_v28 = vld [vmem:[#allocation4 + $0x30] sm:$0xff] }
  0x1f   : > { %621 = vmatpush.bf16.msrb.mxu3 %v2139_v21 }
  0x21   : > { %481 = vmatpush.bf16.msrb.mxu0 %v2130_v34  ;;  %v2147_v34 = vld [vmem:[#allocation4 + $0x18] sm:$0xff] }
  0x22   : > { %388 = vmatpush.bf16.msrb.mxu2 %v2123_v32  ;;  %v2148_v32 = vld [vmem:[#allocation4 + $0x20] sm:$0xff] }
  0x23   : > { %622 = vmatpush.bf16.msrb.mxu3 %v2138_v22 }
  0x25   : > { %482 = vmatpush.bf16.msrb.mxu0 %v2129_v36  ;;  %v2171_v36 = vld [vmem:[#allocation4 + $0xd8] sm:$0xff] }
  0x84   : > { %v253_v9 = vpop.permute.xlu0 %252 }
  0x85   : > { %259 = vst.msk [vmem:[#allocation2 + $0x1] sm:$0xff] %vm258_vm2, %v253_v9  ;;  %v2244_v9 = vld [vmem:[%s2501_s2] ss:$0 sm:$0xff] }
  0x8c   : > { %v255_v11 = vpop.permute.xlu0 %254  ;;  %v397_v12 = vld [vmem:[#allocation2 + $0x1] sm:$0xff] }
  0x8d   : > { %260 = vst.msk [vmem:[#allocation2 + $0x9] sm:$0xff] %vm258_vm2, %v255_v11  ;;  %v261_v14 = vld [vmem:[#allocation2] sm:$0xff] }
  0x94   : > { %v398_v13 = vld [vmem:[#allocation2 + $0x9] sm:$0xff] }
  0x95   : > { %v262_v15 = vld [vmem:[#allocation2 + $0x8] sm:$0xff]  ;;  %v399_v16 = vpack.c.bf16 %v398_v13, %v397_v12 }
  0x96   : > { %v263_v17 = vpack.c.bf16 %v262_v15, %v261_v14  ;;  %v537_v18 = vld [vmem:[#allocation2 + $0x2] sm:$0xff]  ;;  %v538_v19 = vld [vmem:[#allocation2 + $0xa] sm:$0xff] }
  0x97   : > { %498 = vrot.lane.b32.xlu0 %v399_v16, %s2293_s23  ;;  %452 = vrot.lane.b32.xlu2 %v399_v16, %s2294_s24  ;;  %v539_v20 = vpack.c.bf16 %v538_v19, %v537_v18 }
  0x98   : > { %1729 = vmatmul.msk.bf16.vlgmr.msra.gmra.mxu3 %vm298_vm3, %v399_v16  ;;  %278 = vrot.lane.b32.xlu1 %v263_v17, %s2294_s24 }
  0x99   : > { %1691 = vmatmul.msk.bf16.vlgmr.msra.gmra.mxu2 %vm298_vm3, %v263_v17 }
  0x9a   : > { %573 = vmatpush.bf16.msra.mxu2 %v2137_v35 }
  0x9e   : > { %574 = vmatpush.bf16.msra.mxu2 %v2136_v37  ;;  %v2145_v37 = vld [vmem:[#allocation4 + $0x8] sm:$0xff] }
  0x9f   : > { %592 = vrot.lane.b32.xlu2 %v539_v20, %s2294_s24  ;;  %s2296_s24 = smov 112  }
  0xa0   : > { %358 = vrot.lane.b32.xlu1 %v263_v17, %s2293_s23 }
  0xa2   : > { %575 = vmatpush.bf16.msra.mxu2 %v2135_v39  ;;  %v2144_v39 = vld [vmem:[#allocation4] sm:$0xff] }
  0xa8   : > { %638 = vrot.lane.b32.xlu1 %v539_v20, %s2293_s23  ;;  %s2295_s23 = smov 8  }
  0xf1   : > { %v453_v33 = vpop.permute.xlu2 %452 }
  0xf9   : > { %v593_v38 = vpop.permute.xlu2 %592 }
  0xfa   : > { %1805 = vmatmul.msk.bf16.vlgmr.msrb.gmra.mxu3 %vm298_vm3, %v593_v38  ;;  %v2170_v38 = vld [vmem:[#allocation4 + $0xd0] sm:$0xff] }
 0x109   : > { %v499_v41 = vpop.permute.xlu0 %498 }
 0x10a   : > { %v279_v42 = vpop.permute.xlu1 %278  ;;  %1767 = vmatmul.msk.bf16.vlgmr.msra.gmra.mxu1 %vm298_vm3, %v499_v41  ;;  %v2168_v41 = vld [vmem:[#allocation4 + $0xc0] sm:$0xff] }
 0x10b   : > { %1678 = vmatmul.msk.bf16.vlgmr.msra.gmra.mxu0 %vm298_vm3, %v279_v42 }
 0x10c   : > { %666 = vmatpush.bf16.msra.mxu0 %v2143_v40  ;;  %v2169_v40 = vld [vmem:[#allocation4 + $0xc8] sm:$0xff] }
 0x110   : > { %667 = vmatpush.bf16.msra.mxu0 %v2142_v43 }
 0x112   : > { %v359_v45 = vpop.permute.xlu1 %358 }
 0x113   : > { %1710 = vmatmul.msk.bf16.vlgmr.msrb.gmra.mxu2 %vm298_vm3, %v359_v45  ;;  %v2167_v45 = vld [vmem:[#allocation4 + $0xb8] sm:$0xff] }
 0x114   : > { %668 = vmatpush.bf16.msra.mxu0 %v2141_v44  ;;  %878 = vmatpush.bf16.msrb.mxu2 %v2151_v26  ;;  %v2159_v44 = vld [vmem:[#allocation4 + $0x78] sm:$0xff] }
 0x115   : > { %816 = vmatpush.bf16.msrb.mxu1 %v2159_v44  ;;  %964 = vmatpush.bf16.msra.mxu3 %v2167_v45 }
 0x118   : > { %879 = vmatpush.bf16.msrb.mxu2 %v2150_v28 }
 0x11a   : > { %v639_v46 = vpop.permute.xlu1 %638 }
 0x11b   : > { %1748 = vmatmul.msk.bf16.vlgmr.msrb.gmra.mxu0 %vm298_vm3, %v453_v33  ;;  %v437_v51 = vpop.f32.mrf.mxu3  ;;  %v2172_v33 = vld [vmem:[#allocation4 + $0xe0] sm:$0xff] }
 0x11c   : > { %v346_v47 = vpop.f32.mrf.mxu2  ;;  %1064 = vmatpush.bf16.msrb.mxu0 %v2175_v27  ;;  %880 = vmatpush.bf16.msrb.mxu2 %v2149_v30 }
 0x120   : > { %1065 = vmatpush.bf16.msrb.mxu0 %v2174_v29  ;;  %881 = vmatpush.bf16.msrb.mxu2 %v2148_v32  ;;  %v2164_v32 = vld [vmem:[#allocation4 + $0xa0] sm:$0xff] }
 0x123   : > { %1786 = vmatmul.msk.bf16.vlgmr.msra.gmra.mxu2 %vm298_vm3, %v539_v20  ;;  %v439_v57 = vpop.f32.mrf.mxu3 }
 0x124   : > { %v348_v49 = vpop.f32.mrf.mxu2  ;;  %1066 = vmatpush.bf16.msrb.mxu0 %v2173_v31  ;;  %882 = vmatpush.bf16.msrb.mxu2 %v2147_v34 }
 0x128   : > { %1067 = vmatpush.bf16.msrb.mxu0 %v2172_v33  ;;  %883 = vmatpush.bf16.msrb.mxu2 %v2146_v0 }
 0x12b   : > { %1824 = vmatmul.msk.bf16.vlgmr.msra.gmra.mxu0 %vm298_vm3, %v639_v46 }
 0x12c   : > { %1068 = vmatpush.bf16.msrb.mxu0 %v2171_v36  ;;  %884 = vmatpush.bf16.msrb.mxu2 %v2145_v37  ;;  %v2155_v37 = vld [vmem:[#allocation4 + $0x58] sm:$0xff] }
 0x130   : > { %1069 = vmatpush.bf16.msrb.mxu0 %v2170_v38  ;;  %885 = vmatpush.bf16.msrb.mxu2 %v2144_v39  ;;  %v2163_v39 = vld [vmem:[#allocation4 + $0x98] sm:$0xff] }
 0x134   : > { %1070 = vmatpush.bf16.msrb.mxu0 %v2169_v40 }
 0x138   : > { %1071 = vmatpush.bf16.msrb.mxu0 %v2168_v41 }
 0x17d   : > { %v624_v3 = vpop.f32.mrf.mxu3 }
 0x185   : > { %v626_v17 = vpop.f32.mrf.mxu3 }
 0x187   : > { %v530_v63 = vpop.f32.mrf.mxu1 }
 0x188   : > { %v311_v48 = vpop.f32.mrf.mxu0 }
 0x189   : > { %v347_v53 = vadd.f32 %v346_v47, %v311_v48  ;;  %v2158_v48 = vld [vmem:[#allocation4 + $0x70] sm:$0xff] }
 0x18a   : > { %817 = vmatpush.bf16.msrb.mxu1 %v2158_v48  ;;  %v2153_v48 = vld [vmem:[#allocation4 + $0x48] sm:$0xff] }
 0x18f   : > { %v532_v11 = vpop.f32.mrf.mxu1 }
 0x190   : > { %v313_v50 = vpop.f32.mrf.mxu0 }
 0x191   : > { %v349_v59 = vadd.f32 %v348_v49, %v313_v50 }
 0x196   : > { %v390_v52 = vpop.f32.mrf.mxu2 }
 0x197   : > { %v395_v55 = vadd.f32 %v390_v52, %v347_v53 }
 0x198   : > { %v484_v54 = vpop.f32.mrf.mxu0 }
 0x199   : > { %v442_v56 = vadd.f32 %v437_v51, %v395_v55 }
 0x19b   : > { %v489_v61 = vadd.f32 %v484_v54, %v442_v56 }
 0x19d   : > { %v535_v2 = vadd.f32 %v530_v63, %v489_v61  ;;  %v2166_v63 = vld [vmem:[#allocation4 + $0xb0] sm:$0xff] }
 0x19e   : > { %v392_v58 = vpop.f32.mrf.mxu2  ;;  %965 = vmatpush.bf16.msra.mxu3 %v2166_v63  ;;  %v2179_v63 = vld [vmem:[#allocation4 + $0x118] sm:$0xff] }
 0x19f   : > { %v396_v62 = vadd.f32 %v392_v58, %v349_v59 }
 0x1a0   : > { %v486_v60 = vpop.f32.mrf.mxu0 }
 0x1a1   : > { %v443_v1 = vadd.f32 %v439_v57, %v396_v62 }
 0x1a3   : > { %v490_v7 = vadd.f32 %v486_v60, %v443_v1 }
 0x1a5   : > { %v536_v13 = vadd.f32 %v532_v11, %v490_v7 }
 0x1a6   : > { %v577_v4 = vpop.f32.mrf.mxu2 }
 0x1a7   : > { %v582_v5 = vadd.f32 %v577_v4, %v535_v2 }
 0x1a8   : > { %v670_v6 = vpop.f32.mrf.mxu0 }
 0x1a9   : > { %v629_v8 = vadd.f32 %v624_v3, %v582_v5  ;;  %v2157_v3 = vld [vmem:[#allocation4 + $0x68] sm:$0xff] }
 0x1aa   : > { %818 = vmatpush.bf16.msrb.mxu1 %v2157_v3  ;;  %v2206_v3 = vld [vmem:[#allocation4 + $0x1f0] sm:$0xff] }
 0x1ab   : > { %v675_v10 = vadd.f32 %v670_v6, %v629_v8 }
 0x1ad   : > { %v681_v12 = vadd.f32 %v2244_v9, %v675_v10 }
 0x1ae   : > { %v579_v14 = vpop.f32.mrf.mxu2 }
 0x1af   : > { %v683_v15 = vmax.f32 %v681_v12, 0.0  ;;  %v583_v16 = vadd.f32 %v579_v14, %v536_v13  ;;  %v2156_v14 = vld [vmem:[#allocation4 + $0x60] sm:$0xff] }
 0x1b0   : > { %v672_v20 = vpop.f32.mrf.mxu0  ;;  %819 = vmatpush.bf16.msrb.mxu1 %v2156_v14  ;;  %v2195_v14 = vld [vmem:[#allocation4 + $0x198] sm:$0xff] }
 0x1b1   : > { %v696_v18 = vrot.slane %v683_v15, 7  ;;  %v630_v19 = vadd.f32 %v626_v17, %v583_v16  ;;  %v2165_v15 = vld [vmem:[#allocation4 + $0xa8] sm:$0xff] }
 0x1b2   : > { %966 = vmatpush.bf16.msra.mxu3 %v2165_v15  ;;  %v2203_v15 = vld [vmem:[#allocation4 + $0x1d8] sm:$0xff] }
 0x1b3   : > { %v676_v21 = vadd.f32 %v672_v20, %v630_v19  ;;  %699 = vrot.lane.b32.xlu2 %v696_v18, %s2295_s23 }
 0x1b4   : > { %820 = vmatpush.bf16.msrb.mxu1 %v2155_v37 }
 0x1b5   : > { %v682_v22 = vadd.f32 %v2244_v9, %v676_v21 }
 0x1b6   : > { %967 = vmatpush.bf16.msra.mxu3 %v2164_v32  ;;  %v2214_v32 = vld [vmem:[#allocation4 + $0x230] sm:$0xff] }
 0x1b7   : > { %v684_v23 = vmax.f32 %v682_v22, 0.0 }
 0x1b9   : > { %v697_v24 = vrot.slane %v684_v23, 7 }
 0x1ba   : > { %968 = vmatpush.bf16.msra.mxu3 %v2163_v39 }
 0x1bb   : > { %703 = vrot.lane.b32.xlu1 %v697_v24, %s2295_s23  ;;  %v698_v25 = vsel %vm695_vm5, %v696_v18, %v697_v24 }
 0x1bc   : > { %701 = vrot.lane.b32.xlu0 %v698_v25, %s2295_s23 }
 0x20d   : > { %v700_v35 = vpop.permute.xlu2 %699 }
 0x20e   : > { %709 = vst.msk [vmem:[#allocation3] sm:$0xfe] %vm708_vm7, %v700_v35 }
 0x20f   : > { %711 = vst.msk [vmem:[#allocation3 + $0x8] sm:$0xfe] %vm710_vm8, %v700_v35 }
 0x215   : > { %v720_v49 = vld [vmem:[#allocation3] sm:$0xff] }
 0x216   : > { %v980_v50 = vld [vmem:[#allocation3] sm:$0xfe]  ;;  %v739_v53 = vld [vmem:[#allocation3 + $0x8] sm:$0xff] }
 0x217   : > { %v1080_v55 = vld [vmem:[#allocation3] sm:$0xfe]  ;;  %v1081_v62 = vld [vmem:[#allocation3 + $0x8] sm:$0xfe] }
 0x218   : > { %v1288_v10 = vld [vmem:[#allocation3] sm:$0xfc]  ;;  %v1381_v44 = vld [vmem:[#allocation3 + $0x8] sm:$0xfc] }
 0x219   : > { %v1380_v30 = vld [vmem:[#allocation3] sm:$0xfc] }
 0x22d   : > { %v704_v42 = vpop.permute.xlu1 %703 }
 0x22e   : > { %717 = vst.msk [vmem:[#allocation3 + $0x20] sm:$0x1] %vm716_vm9, %v704_v42  ;;  %v702_v43 = vpop.permute.xlu0 %701 }
 0x22f   : > { %719 = vst.msk [vmem:[#allocation3 + $0x28] sm:$0x1] %vm718_vm10, %v704_v42  ;;  %v2154_v42 = vld [vmem:[#allocation4 + $0x50] sm:$0xff] }
 0x230   : > { %713 = vst.msk [vmem:[#allocation3 + $0x10] sm:$0xff] %vm712_vm11, %v702_v43  ;;  %821 = vmatpush.bf16.msrb.mxu1 %v2154_v42 }
 0x231   : > { %715 = vst.msk [vmem:[#allocation3 + $0x18] sm:$0xff] %vm714_vm12, %v702_v43 }
 0x234   : > { %822 = vmatpush.bf16.msrb.mxu1 %v2153_v48 }
 0x235   : > { %v982_v46 = vld [vmem:[#allocation3 + $0x20] sm:$0x1] }
 0x236   : > { %v1084_v47 = vld [vmem:[#allocation3 + $0x20] sm:$0x1]  ;;  %v984_v51 = vpack.c.bf16 %v982_v46, %v982_v46  ;;  %v1085_v52 = vld [vmem:[#allocation3 + $0x28] sm:$0x1] }
 0x237   : > { %v2449_v54 = vld [vmem:[#allocation3 + $0x10] sm:$0xff]  ;;  %v1088_v56 = vpack.c.bf16 %v1084_v47, %v1084_v47  ;;  %v1089_v57 = vpack.c.bf16 %v1085_v52, %v1085_v52  ;;  %v1289_v11 = vld [vmem:[#allocation3 + $0x20] sm:$0x3]  ;;  %v1383_v43 = vld [vmem:[#allocation3 + $0x28] sm:$0x3] }
 0x238   : > { %v2451_v58 = vld [vmem:[#allocation3 + $0x18] sm:$0xff]  ;;  %v722_v59 = vpack.c.bf16 %v2449_v54, %v720_v49  ;;  %v983_v60 = vpack.c.bf16 %v2449_v54, %v980_v50  ;;  %v1086_v61 = vpack.c.bf16 %v2449_v54, %v1080_v55  ;;  %v1011_v5 = vshll.u32 %v984_v51, 16  ;;  %v1382_v20 = vld [vmem:[#allocation3 + $0x20] sm:$0x3]  ;;  %v2152_v51 = vld [vmem:[#allocation4 + $0x40] sm:$0xff] }
 0x239   : > { %v741_v1 = vpack.c.bf16 %v2451_v58, %v739_v53  ;;  %v1087_v2 = vpack.c.bf16 %v2451_v58, %v1081_v62  ;;  %v1115_v7 = vshll.u32 %v1088_v56, 16  ;;  %v1127_v9 = vshll.u32 %v1089_v57, 16  ;;  %v2183_v52 = vld [vmem:[#allocation4 + $0x138] sm:$0xff]  ;;  %823 = vmatpush.bf16.msrb.mxu1 %v2152_v51  ;;  %v2182_v55 = vld [vmem:[#allocation4 + $0x130] sm:$0xff]  ;;  %v2161_v56 = vld [vmem:[#allocation4 + $0x88] sm:$0xff] }
 0x23a   : > { %909 = vrot.lane.b32.xlu1 %v722_v59, %s2296_s24  ;;  %761 = vrot.lane.b32.xlu2 %v722_v59, %s2297_s25  ;;  %v1006_v4 = vshll.u32 %v983_v60, 16  ;;  %v1110_v6 = vshll.u32 %v1086_v61, 16  ;;  %v1004_v12 = vshrl.u32 %v983_v60, 16  ;;  %v1108_v16 = vshrl.u32 %v1086_v61, 16  ;;  %v2181_v57 = vld [vmem:[#allocation4 + $0x128] sm:$0xff]  ;;  %v2191_v60 = vld [vmem:[#allocation4 + $0x178] sm:$0xff] }
 0x23b   : > { %763 = vrot.lane.b32.xlu0 %v741_v1, %s2297_s25  ;;  %886 = vmatmul.bf16.vlgmr.msrb.gmra.mxu2 %v722_v59  ;;  %v1122_v8 = vshll.u32 %v1087_v2, 16  ;;  %v1120_v18 = vshrl.u32 %v1087_v2, 16  ;;  %v1013_v22 = vrot.slane %v1011_v5, 1  ;;  %v1290_v23 = vpack.c.bf16 %v2449_v54, %v1288_v10  ;;  %v2180_v59 = vld [vmem:[#allocation4 + $0x120] sm:$0xff]  ;;  %v2199_v61 = vld [vmem:[#allocation4 + $0x1b8] sm:$0xff]  ;;  %v2198_v2 = vld [vmem:[#allocation4 + $0x1b0] sm:$0xff] }
 0x23c   : > { %v1008_v13 = vrot.slane %v1006_v4, 1  ;;  %v1112_v17 = vrot.slane %v1110_v6, 1  ;;  %v1291_v24 = vpack.c.bf16 %v1289_v11, %v1289_v11  ;;  %v1117_v26 = vrot.slane %v1115_v7, 1  ;;  %v2207_v62 = vld [vmem:[#allocation4 + $0x1f8] sm:$0xff]  ;;  %1272 = vmatpush.bf16.msra.mxu2 %v2191_v60  ;;  %v2178_v4 = vld [vmem:[#allocation4 + $0x110] sm:$0xff]  ;;  %v2189_v5 = vld [vmem:[#allocation4 + $0x168] sm:$0xff] }
 0x23d   : > { %v1124_v19 = vrot.slane %v1122_v8, 1  ;;  %v1129_v28 = vrot.slane %v1127_v9, 1  ;;  %v1386_v31 = vpack.c.bf16 %v1382_v20, %v1382_v20  ;;  %v1312_v33 = vrot.slane %v1290_v23, 1  ;;  %1185 = vmatpush.bf16.msra.mxu1 %v2183_v52  ;;  %1469 = vmatpush.bf16.msra.mxu0 %v2207_v62  ;;  %v2197_v6 = vld [vmem:[#allocation4 + $0x1a8] sm:$0xff]  ;;  %v2188_v9 = vld [vmem:[#allocation4 + $0x160] sm:$0xff] }
 0x23e   : > { %v1009_v21 = vor.u32 %v1008_v13, %v1004_v12  ;;  %v1113_v25 = vor.u32 %v1112_v17, %v1108_v16  ;;  %v1313_v34 = vrot.slane %v1291_v24, 1  ;;  %v1384_v36 = vpack.c.bf16 %v2449_v54, %v1380_v30  ;;  %v2162_v54 = vld [vmem:[#allocation4 + $0x90] sm:$0xff]  ;;  %v2205_v7 = vld [vmem:[#allocation4 + $0x1e8] sm:$0xff]  ;;  %v2196_v10 = vld [vmem:[#allocation4 + $0x1a0] sm:$0xff] }
 0x23f   : > { %v1125_v27 = vor.u32 %v1124_v19, %v1120_v18  ;;  %v1410_v41 = vrot.slane %v1386_v31, 1  ;;  %v1385_v46 = vpack.c.bf16 %v2451_v58, %v1381_v44  ;;  %v1387_v47 = vpack.c.bf16 %v1383_v43, %v1383_v43  ;;  %969 = vmatpush.bf16.msra.mxu3 %v2162_v54  ;;  %v2160_v58 = vld [vmem:[#allocation4 + $0x80] sm:$0xff]  ;;  %v2177_v8 = vld [vmem:[#allocation4 + $0x108] sm:$0xff]  ;;  %v2187_v13 = vld [vmem:[#allocation4 + $0x158] sm:$0xff] }
 0x240   : > { %v1014_v29 = vsel %vm1002_vm13, %v1009_v21, %v1013_v22  ;;  %v1118_v35 = vsel %vm1002_vm13, %v1113_v25, %v1117_v26  ;;  %v2469_v38 = vsel %vm1311_vm14, %v1312_v33, %v1313_v34  ;;  %v1409_v40 = vrot.slane %v1384_v36, 1  ;;  %v2204_v11 = vld [vmem:[#allocation4 + $0x1e0] sm:$0xff]  ;;  %v2186_v16 = vld [vmem:[#allocation4 + $0x150] sm:$0xff]  ;;  %v2185_v19 = vld [vmem:[#allocation4 + $0x148] sm:$0xff] }
 0x241   : > { %1072 = vmatmul.bf16.vlgmr.msrb.gmra.mxu0 %v1014_v29  ;;  %v1130_v0 = vsel %vm1002_vm13, %v1125_v27, %v1129_v28  ;;  %v1412_v49 = vrot.slane %v1385_v46, 1  ;;  %v1413_v50 = vrot.slane %v1387_v47, 1  ;;  %1186 = vmatpush.bf16.msra.mxu1 %v2182_v55  ;;  %v2176_v12 = vld [vmem:[#allocation4 + $0x100] sm:$0xff]  ;;  %v2194_v17 = vld [vmem:[#allocation4 + $0x190] sm:$0xff]  ;;  %v2193_v20 = vld [vmem:[#allocation4 + $0x188] sm:$0xff] }
 0x242   : > { %1133 = vrot.lane.b32.xlu1 %v1130_v0, %s2297_s25  ;;  %911 = vrot.lane.b32.xlu2 %v741_v1, %s2296_s24  ;;  %v1411_v45 = vsel %vm1311_vm14, %v1409_v40, %v1410_v41  ;;  %v2190_v1 = vld [vmem:[#allocation4 + $0x170] sm:$0xff]  ;;  %v2201_v21 = vld [vmem:[#allocation4 + $0x1c8] sm:$0xff]  ;;  %v2184_v22 = vld [vmem:[#allocation4 + $0x140] sm:$0xff] }
 0x243   : > { %1131 = vrot.lane.b32.xlu0 %v1118_v35, %s2297_s25  ;;  %v1414_v53 = vsel %vm1311_vm14, %v1412_v49, %v1413_v50  ;;  %970 = vmatpush.bf16.msra.mxu3 %v2161_v56  ;;  %v2202_v18 = vld [vmem:[#allocation4 + $0x1d0] sm:$0xff]  ;;  %v2192_v23 = vld [vmem:[#allocation4 + $0x180] sm:$0xff]  ;;  %v2215_v28 = vld [vmem:[#allocation4 + $0x238] sm:$0xff] }
 0x244   : > { %1273 = vmatpush.bf16.msra.mxu2 %v2190_v1  ;;  %1470 = vmatpush.bf16.msra.mxu0 %v2206_v3  ;;  %v2200_v24 = vld [vmem:[#allocation4 + $0x1c0] sm:$0xff]  ;;  %v2211_v40 = vld [vmem:[#allocation4 + $0x218] sm:$0xff]  ;;  %v2209_v46 = vld [vmem:[#allocation4 + $0x208] sm:$0xff] }
 0x245   : > { %1187 = vmatpush.bf16.msra.mxu1 %v2181_v57  ;;  %v2212_v36 = vld [vmem:[#allocation4 + $0x220] sm:$0xff] }
 0x246   : > { %v2208_v47 = vld [vmem:[#allocation4 + $0x200] sm:$0xff] }
 0x247   : > { %971 = vmatpush.bf16.msra.mxu3 %v2160_v58 }
 0x248   : > { %1274 = vmatpush.bf16.msra.mxu2 %v2189_v5  ;;  %1471 = vmatpush.bf16.msra.mxu0 %v2205_v7 }
 0x249   : > { %1188 = vmatpush.bf16.msra.mxu1 %v2180_v59 }
 0x24a   : > { %1415 = vrot.lane.b32.xlu1 %v1411_v45, %s2297_s25  ;;  %1218 = vrot.lane.b32.xlu2 %v1118_v35, %s2296_s24  ;;  %v2213_v35 = vld [vmem:[#allocation4 + $0x228] sm:$0xff] }
 0x24b   : > { %1220 = vrot.lane.b32.xlu0 %v1130_v0, %s2296_s24  ;;  %1364 = vmatpush.bf16.msrb.mxu3 %v2199_v61 }
 0x24c   : > { %1275 = vmatpush.bf16.msra.mxu2 %v2188_v9  ;;  %1472 = vmatpush.bf16.msra.mxu0 %v2204_v11 }
 0x24d   : > { %1189 = vmatpush.bf16.msra.mxu1 %v2179_v63 }
 0x24f   : > { %1365 = vmatpush.bf16.msrb.mxu3 %v2198_v2 }
 0x250   : > { %1276 = vmatpush.bf16.msra.mxu2 %v2187_v13  ;;  %1473 = vmatpush.bf16.msra.mxu0 %v2203_v15  ;;  %v2245_v13 = vld [vmem:[%s2503_s4] ss:$0 sm:$0xff] }
 0x251   : > { %1190 = vmatpush.bf16.msra.mxu1 %v2178_v4 }
 0x252   : > { %1504 = vrot.lane.b32.xlu1 %v1414_v53, %s2296_s24  ;;  %1417 = vrot.lane.b32.xlu2 %v1414_v53, %s2297_s25 }
 0x253   : > { %1502 = vrot.lane.b32.xlu0 %v1411_v45, %s2296_s24  ;;  %1366 = vmatpush.bf16.msrb.mxu3 %v2197_v6  ;;  %v2210_v45 = vld [vmem:[#allocation4 + $0x210] sm:$0xff] }
 0x254   : > { %1277 = vmatpush.bf16.msra.mxu2 %v2186_v16  ;;  %1474 = vmatpush.bf16.msra.mxu0 %v2202_v18 }
 0x255   : > { %1191 = vmatpush.bf16.msra.mxu1 %v2177_v8 }
 0x257   : > { %1367 = vmatpush.bf16.msrb.mxu3 %v2196_v10 }
 0x258   : > { %1278 = vmatpush.bf16.msra.mxu2 %v2185_v19  ;;  %1475 = vmatpush.bf16.msra.mxu0 %v2201_v21 }
 0x259   : > { %1192 = vmatpush.bf16.msra.mxu1 %v2176_v12 }
 0x25b   : > { %1368 = vmatpush.bf16.msrb.mxu3 %v2195_v14 }
 0x25c   : > { %1279 = vmatpush.bf16.msra.mxu2 %v2184_v22  ;;  %1476 = vmatpush.bf16.msra.mxu0 %v2200_v24 }
 0x25f   : > { %1369 = vmatpush.bf16.msrb.mxu3 %v2194_v17 }
 0x263   : > { %1370 = vmatpush.bf16.msrb.mxu3 %v2193_v20 }
 0x267   : > { %1371 = vmatpush.bf16.msrb.mxu3 %v2192_v23 }
 0x294   : > { %v762_v25 = vpop.permute.xlu2 %761 }
 0x29c   : > { %v912_v26 = vpop.permute.xlu2 %911 }
 0x2a4   : > { %v1219_v33 = vpop.permute.xlu2 %1218 }
 0x2ac   : > { %v910_v27 = vpop.permute.xlu1 %909  ;;  %v1418_v37 = vpop.permute.xlu2 %1417 }
 0x2ad   : > { %v764_v29 = vpop.permute.xlu0 %763  ;;  %v914_v30 = vsel %vm913_vm15, %v910_v27, %v912_v26 }
 0x2ae   : > { %v766_v31 = vsel %vm765_vm0, %v762_v25, %v764_v29  ;;  %972 = vmatmul.bf16.vlgmr.msra.gmra.mxu3 %v914_v30 }
 0x2af   : > { %824 = vmatmul.bf16.vlgmr.msrb.gmra.mxu1 %v766_v31 }
 0x2b0   : > { %1556 = vmatpush.bf16.msrb.mxu1 %v2215_v28 }
 0x2b4   : > { %1557 = vmatpush.bf16.msrb.mxu1 %v2214_v32  ;;  %v1134_v34 = vpop.permute.xlu1 %1133 }
 0x2b5   : > { %v1132_v0 = vpop.permute.xlu0 %1131 }
 0x2b6   : > { %v1135_v43 = vsel %vm765_vm0, %v1132_v0, %v1134_v34 }
 0x2b8   : > { %1558 = vmatpush.bf16.msrb.mxu1 %v2213_v35 }
 0x2bc   : > { %1559 = vmatpush.bf16.msrb.mxu1 %v2212_v36  ;;  %v1416_v39 = vpop.permute.xlu1 %1415 }
 0x2bd   : > { %v1221_v41 = vpop.permute.xlu0 %1220  ;;  %v1419_v42 = vsel %vm765_vm0, %v1416_v39, %v1418_v37 }
 0x2be   : > { %v1222_v44 = vsel %vm913_vm15, %v1219_v33, %v1221_v41  ;;  %1372 = vmatmul.bf16.vlgmr.msrb.gmra.mxu3 %v2469_v38  ;;  %1477 = vmatmul.bf16.vlgmr.msra.gmra.mxu0 %v1419_v42  ;;  %v887_v52 = vpop.f32.mrf.mxu2  ;;  %v1073_v38 = vpop.f32.mrf.mxu0 }
 0x2bf   : > { %1193 = vmatmul.bf16.vlgmr.msra.gmra.mxu1 %v1135_v43  ;;  %1280 = vmatmul.bf16.vlgmr.msra.gmra.mxu2 %v1222_v44 }
 0x2c0   : > { %1560 = vmatpush.bf16.msrb.mxu1 %v2211_v40 }
 0x2c4   : > { %1561 = vmatpush.bf16.msrb.mxu1 %v2210_v45  ;;  %v1505_v49 = vpop.permute.xlu1 %1504 }
 0x2c5   : > { %v1503_v48 = vpop.permute.xlu0 %1502 }
 0x2c6   : > { %v1506_v50 = vsel %vm913_vm15, %v1503_v48, %v1505_v49  ;;  %v889_v56 = vpop.f32.mrf.mxu2  ;;  %v1075_v61 = vpop.f32.mrf.mxu0 }
 0x2c8   : > { %1562 = vmatpush.bf16.msrb.mxu1 %v2209_v46 }
 0x2cc   : > { %1563 = vmatpush.bf16.msrb.mxu1 %v2208_v47 }
 0x2cf   : > { %1564 = vmatmul.bf16.vlgmr.msrb.gmra.mxu1 %v1506_v50 }
 0x32c   : > { %v825_v51 = vpop.f32.mrf.mxu1 }
 0x32d   : > { %v888_v55 = vadd.f32 %v887_v52, %v825_v51 }
 0x331   : > { %v973_v53 = vpop.f32.mrf.mxu3 }
 0x332   : > { %v978_v58 = vadd.f32 %v973_v53, %v888_v55 }
 0x334   : > { %v827_v54 = vpop.f32.mrf.mxu1  ;;  %v1078_v60 = vadd.f32 %v1073_v38, %v978_v58 }
 0x335   : > { %v890_v62 = vadd.f32 %v889_v56, %v827_v54 }
 0x339   : > { %v975_v57 = vpop.f32.mrf.mxu3 }
 0x33a   : > { %v979_v2 = vadd.f32 %v975_v57, %v890_v62 }
 0x33b   : > { %v1478_v8 = vpop.f32.mrf.mxu0 }
 0x33c   : > { %v1194_v59 = vpop.f32.mrf.mxu1  ;;  %v1079_v7 = vadd.f32 %v1075_v61, %v979_v2 }
 0x33d   : > { %v1199_v63 = vadd.f32 %v1194_v59, %v1078_v60 }
 0x341   : > { %v1373_v4 = vpop.f32.mrf.mxu3 }
 0x342   : > { %v1281_v1 = vpop.f32.mrf.mxu2 }
 0x343   : > { %v1286_v3 = vadd.f32 %v1281_v1, %v1199_v63  ;;  %v1480_v20 = vpop.f32.mrf.mxu0 }
 0x344   : > { %v1196_v5 = vpop.f32.mrf.mxu1 }
 0x345   : > { %v1378_v6 = vadd.f32 %v1373_v4, %v1286_v3  ;;  %v1200_v9 = vadd.f32 %v1196_v5, %v1079_v7 }
 0x347   : > { %v1483_v12 = vadd.f32 %v1478_v8, %v1378_v6 }
 0x349   : > { %v1375_v16 = vpop.f32.mrf.mxu3 }
 0x34a   : > { %v1283_v10 = vpop.f32.mrf.mxu2 }
 0x34b   : > { %v1287_v11 = vadd.f32 %v1283_v10, %v1200_v9 }
 0x34c   : > { %v1565_v14 = vpop.f32.mrf.mxu1 }
 0x34d   : > { %v1570_v15 = vadd.f32 %v1565_v14, %v1483_v12  ;;  %v1379_v17 = vadd.f32 %v1375_v16, %v1287_v11 }
 0x34f   : > { %v1576_v18 = vadd.f32 %v2245_v13, %v1570_v15  ;;  %v1484_v21 = vadd.f32 %v1480_v20, %v1379_v17 }
 0x351   : > { %v1578_v19 = vmax.f32 %v1576_v18, 0.0 }
 0x353   : > { %1580 = vst [vmem:[%s241_s6] sm:$0xff] %v1578_v19 }
 0x354   : > { %v1567_v22 = vpop.f32.mrf.mxu1 }
 0x355   : > { %v1571_v23 = vadd.f32 %v1567_v22, %v1484_v21 }
 0x357   : > { %v1577_v24 = vadd.f32 %v2245_v13, %v1571_v23 }
 0x359   : > { %v1579_v25 = vmax.f32 %v1577_v24, 0.0 }
 0x35b   : > { %1581 = vst [vmem:[%s241_s6 + $0x8] sm:$0xff] %v1579_v25 }
 0x35c PF: > { %s16_s18 = sadd.s32 1, %s2286_s18  }
 0x35d   : > { %p13_p7 = scmp.ge.s32.totalorder %s16_s18, 4  }
 0x35f   :  { %15 = sbr.rel (!%p13_p7) target bundleno = 1 (0x1), region = 91 }
 0x364   :  { %1603 = vsyncpa [#allocation5], 1 }
 0x365   :  { %1605 = vsyncpa [#allocation5 + $0x1], 1 }

// kernel: _lambda_.4
= control target key start
LH: loop header
LB: loop body
LE: loop exit
PB: predicated region body
PF: predicated region fallthrough
CT: control target
= control target key end

     0   :  { %s2609_s24 = smov 0   ;;  %s3099_s0 = inlined_call_operand.vmem [shape: f32[2,16,128], index: 0, kind: input, shape index: {}]   ;;  %s3100_s1 = inlined_call_operand.vmem [shape: f32[2,8,16], index: 1, kind: input, shape index: {}]   ;;  %s3101_s2 = inlined_call_operand.vmem [shape: f32[2,128,64], index: 2, kind: input, shape index: {}]   ;;  %s3102_s3 = inlined_call_operand.vmem [shape: bf16[9,64,128], index: 3, kind: input, shape index: {}]   ;;  %s3103_s4 = inlined_call_operand.vmem [shape: f32[1,128], index: 4, kind: input, shape index: {}]   ;;  %s3104_s5 = inlined_call_operand.vmem [shape: bf16[9,128,128], index: 5, kind: input, shape index: {}]   ;;  %s3105_s6 = inlined_call_operand.vmem [shape: f32[1,128], index: 6, kind: input, shape index: {}]   ;;  %s3106_s7 = inlined_call_operand.vmem [shape: f32[2,8,128], index: 7, kind: output, shape index: {}]  }
   0x1 LB: > { %s1768_s25 = sadd.s32 4294967295, %s2561_s24   ;;  %p1772_p0 = scmp.ge.s32.totalorder %s2561_s24, 1  ;;  %s2561_s24 = sphi %s2609_s24, %s17_s24  }
   0x2   : > { %p237_p1 = scmp.lt.s32.totalorder %s2561_s24, 3 }
   0x4   : > { %p238_p2 = pnand %p1772_p0, %p237_p1 }
   0x5   : > { %p268_p3 = scmp.lt.s32.totalorder (!%p238_p2), %s1768_s25, 1  ;;  %s2564_s16 = smov (!%p238_p2), 8  }
   0x6   : > { %241 = sbr.rel (%p238_p2) target bundleno = 1129 (0x469), region = 48  ;;  %s2565_s8 = smov (!%p238_p2), 112  }
   0x7   : > { %s2566_s9 = smov (!%p238_p2), 120   ;;  %s2567_s30 = smov (!%p238_p2), 16  }
   0x8   : > { %s2568_s11 = smov (!%p238_p2), 96  }
   0xb   : > { %v346_v0 = vld [vmem:[%s3101_s2 + $0x78] sm:$0xff]  ;;  %v345_v2 = vld [vmem:[%s3101_s2 + $0x70] sm:$0xff]  ;;  %s3108_s25 = smov (!%p268_p3, %s1768_s25), 1  ;;  %v344_v4 = vld [vmem:[%s3101_s2 + $0x68] sm:$0xff]  ;;  %vm281_vm0 = vcmask 130048   ;;  %vm405_vm1 = vcmask 654336  }
   0xc   : > { %347 = vmatpush.msra.mxu2 %v346_v0  ;;  %v1794_v1 = vld [vmem:[%s3101_s2 + $0xf8] sm:$0xff]  ;;  %v1793_v3 = vld [vmem:[%s3101_s2 + $0xf0] sm:$0xff]  ;;  %v1792_v5 = vld [vmem:[%s3101_s2 + $0xe8] sm:$0xff]  ;;  %s2430_s15 = sshll.u32 %s3108_s25, 4  ;;  %vm407_vm2 = vcmask 648192   ;;  %v2563_v40 = vmov 0.0  }
   0xd   : > { %384 = vmatpush.msra.mxu3 %v1794_v1  ;;  %v343_v6 = vld [vmem:[%s3101_s2 + $0x60] sm:$0xff]  ;;  %s272_s20 = scalar_lea.vmem %s3099_s0, %s2430_s15  ;;  %v342_v10 = vld [vmem:[%s3101_s2 + $0x58] sm:$0xff]  ;;  %v341_v13 = vld [vmem:[%s3101_s2 + $0x50] sm:$0xff]  ;;  %406 = vst.msk [vmem:[#allocation2] sm:$0xff] %vm405_vm1, %v2563_v40  ;;  %vm413_vm3 = vcmask 588864   ;;  %vm461_vm4 = vcmask 523264  }
   0xe   : > { %348 = vmatpush.msra.mxu2 %v345_v2  ;;  %v1791_v7 = vld [vmem:[%s3101_s2 + $0xe0] sm:$0xff]  ;;  %v279_v8 = vld [vmem:[%s272_s20 + $0x8] sm:$0xff]  ;;  %v1790_v12 = vld [vmem:[%s3101_s2 + $0xd8] sm:$0xff]  ;;  %408 = vst.msk [vmem:[#allocation2 + $0x8] sm:$0x3] %vm407_vm2, %v2563_v40  ;;  %vm891_vm5 = vcmask 261120  }
   0xf   : > { %385 = vmatpush.msra.mxu3 %v1793_v3  ;;  %v278_v9 = vld [vmem:[%s272_s20] sm:$0xff]  ;;  %299 = vmatpush.msra.mxu1 %v279_v8  ;;  %v1789_v14 = vld [vmem:[%s3101_s2 + $0xd0] sm:$0xff]  ;;  %v340_v15 = vld [vmem:[%s3101_s2 + $0x48] sm:$0xff]  ;;  %890 = vst [vmem:[#allocation3] sm:$0xff] %v2563_v40  ;;  %vm894_vm6 = vcmask 254976   ;;  %vm901_vm7 = vcmask 1047681  }
  0x10   : > { %349 = vmatpush.msra.mxu2 %v344_v4  ;;  %v280_v11 = vld [vmem:[%s3100_s1] sm:$0xff]  ;;  %v1788_v16 = vld [vmem:[%s3101_s2 + $0xc8] sm:$0xff]  ;;  %v338_v19 = vld [vmem:[%s3101_s2 + $0x38] sm:$0xff]  ;;  %893 = vst [vmem:[#allocation3 + $0x10] sm:$0x3] %v2563_v40  ;;  %vm903_vm8 = vcmask 130049  }
  0x11   : > { %386 = vmatpush.msra.mxu3 %v1792_v5  ;;  %300 = vmatpush.msra.mxu1 %v278_v9  ;;  %v339_v17 = vld [vmem:[%s3101_s2 + $0x40] sm:$0xff]  ;;  %v1777_v20 = vld [vmem:[%s3100_s1 + $0x8] sm:$0xff]  ;;  %v1786_v21 = vld [vmem:[%s3101_s2 + $0xb8] sm:$0xff]  ;;  %892 = vst.msk [vmem:[#allocation3 + $0x8] sm:$0xff] %vm891_vm5, %v2563_v40  ;;  %vm905_vm9 = vcmask 1040512   ;;  %vm907_vm10 = vcmask 122880  }
  0x12   : > { %350 = vmatpush.msra.mxu2 %v343_v6  ;;  %1776 = vmatmul.msk.f32.vlgmr.msra.gmra.mxu1 %vm281_vm0, %v280_v11  ;;  %v1787_v18 = vld [vmem:[%s3101_s2 + $0xc0] sm:$0xff]  ;;  %v337_v22 = vld [vmem:[%s3101_s2 + $0x30] sm:$0xff]  ;;  %v336_v24 = vld [vmem:[%s3101_s2 + $0x28] sm:$0xff]  ;;  %895 = vst.msk [vmem:[#allocation3 + $0x18] sm:$0x3] %vm894_vm6, %v2563_v40  ;;  %vm952_vm11 = vcmask 916480  }
  0x13   : > { %387 = vmatpush.msra.mxu3 %v1791_v7  ;;  %324 = vmatpush.msrb.mxu1 %v279_v8  ;;  %v1785_v23 = vld [vmem:[%s3101_s2 + $0xb0] sm:$0xff]  ;;  %v1784_v25 = vld [vmem:[%s3101_s2 + $0xa8] sm:$0xff]  ;;  %v335_v26 = vld [vmem:[%s3101_s2 + $0x20] sm:$0xff]  ;;  %vm1098_vm12 = vcmask 785408  }
  0x14   : > { %351 = vmatpush.msra.mxu2 %v342_v10  ;;  %v1783_v27 = vld [vmem:[%s3101_s2 + $0xa0] sm:$0xff]  ;;  %v334_v28 = vld [vmem:[%s3101_s2 + $0x18] sm:$0xff]  ;;  %v333_v30 = vld [vmem:[%s3101_s2 + $0x10] sm:$0xff] }
  0x15   : > { %388 = vmatpush.msra.mxu3 %v1790_v12  ;;  %325 = vmatpush.msrb.mxu1 %v278_v9  ;;  %v1782_v29 = vld [vmem:[%s3101_s2 + $0x98] sm:$0xff]  ;;  %v1781_v31 = vld [vmem:[%s3101_s2 + $0x90] sm:$0xff]  ;;  %v332_v32 = vld [vmem:[%s3101_s2 + $0x8] sm:$0xff] }
  0x16   : > { %352 = vmatpush.msra.mxu2 %v341_v13  ;;  %v1780_v33 = vld [vmem:[%s3101_s2 + $0x88] sm:$0xff]  ;;  %v331_v34 = vld [vmem:[%s3101_s2] sm:$0xff]  ;;  %v2434_v39 = vld [vmem:[%s3102_s3 + $0x18] sm:$0xff] }
  0x17   : > { %389 = vmatpush.msra.mxu3 %v1789_v14  ;;  %v1779_v35 = vld [vmem:[%s3101_s2 + $0x80] sm:$0xff]  ;;  %509 = vmatpush.bf16.msra.mxu1 %v2434_v39  ;;  %v2433_v41 = vld [vmem:[%s3102_s3 + $0x10] sm:$0xff]  ;;  %v2432_v45 = vld [vmem:[%s3102_s3 + $0x8] sm:$0xff] }
  0x18   : > { %353 = vmatpush.msra.mxu2 %v340_v15  ;;  %v2431_v46 = vld [vmem:[%s3102_s3] sm:$0xff]  ;;  %v2446_v47 = vld [vmem:[%s3102_s3 + $0x78] sm:$0xff]  ;;  %v2445_v48 = vld [vmem:[%s3102_s3 + $0x70] sm:$0xff] }
  0x19   : > { %390 = vmatpush.msra.mxu3 %v1788_v16  ;;  %v2444_v49 = vld [vmem:[%s3102_s3 + $0x68] sm:$0xff]  ;;  %v2443_v50 = vld [vmem:[%s3102_s3 + $0x60] sm:$0xff]  ;;  %v2438_v58 = vld [vmem:[%s3102_s3 + $0x38] sm:$0xff] }
  0x1a   : > { %354 = vmatpush.msra.mxu2 %v339_v17  ;;  %1778 = vmatmul.msk.f32.vlgmr.msrb.gmra.mxu1 %vm281_vm0, %v1777_v20  ;;  %v2450_v59 = vld [vmem:[%s3102_s3 + $0x98] sm:$0xff]  ;;  %v2437_v61 = vld [vmem:[%s3102_s3 + $0x30] sm:$0xff]  ;;  %v2436_v0 = vld [vmem:[%s3102_s3 + $0x28] sm:$0xff] }
  0x1b   : > { %391 = vmatpush.msra.mxu3 %v1787_v18  ;;  %510 = vmatpush.bf16.msra.mxu1 %v2433_v41  ;;  %v2462_v60 = vld [vmem:[%s3102_s3 + $0xf8] sm:$0xff]  ;;  %v2449_v62 = vld [vmem:[%s3102_s3 + $0x90] sm:$0xff]  ;;  %v2435_v1 = vld [vmem:[%s3102_s3 + $0x20] sm:$0xff] }
  0x1c   : > { %355 = vmatpush.msra.mxu2 %v338_v19  ;;  %469 = vmatpush.bf16.msra.mxu0 %v2438_v58  ;;  %v2461_v63 = vld [vmem:[%s3102_s3 + $0xf0] sm:$0xff]  ;;  %v2442_v2 = vld [vmem:[%s3102_s3 + $0x58] sm:$0xff]  ;;  %v2448_v3 = vld [vmem:[%s3102_s3 + $0x88] sm:$0xff] }
  0x1d   : > { %392 = vmatpush.msra.mxu3 %v1786_v21  ;;  %v2460_v4 = vld [vmem:[%s3102_s3 + $0xe8] sm:$0xff]  ;;  %v2441_v5 = vld [vmem:[%s3102_s3 + $0x50] sm:$0xff]  ;;  %v2447_v6 = vld [vmem:[%s3102_s3 + $0x80] sm:$0xff] }
  0x1e   : > { %356 = vmatpush.msra.mxu2 %v337_v22  ;;  %v2459_v7 = vld [vmem:[%s3102_s3 + $0xe0] sm:$0xff]  ;;  %v2440_v8 = vld [vmem:[%s3102_s3 + $0x48] sm:$0xff]  ;;  %v2466_v9 = vld [vmem:[%s3102_s3 + $0x118] sm:$0xff] }
  0x1f   : > { %393 = vmatpush.msra.mxu3 %v1785_v23  ;;  %511 = vmatpush.bf16.msra.mxu1 %v2432_v45  ;;  %v2439_v10 = vld [vmem:[%s3102_s3 + $0x40] sm:$0xff]  ;;  %v2465_v11 = vld [vmem:[%s3102_s3 + $0x110] sm:$0xff]  ;;  %v2464_v12 = vld [vmem:[%s3102_s3 + $0x108] sm:$0xff] }
  0x20   : > { %357 = vmatpush.msra.mxu2 %v336_v24  ;;  %470 = vmatpush.bf16.msra.mxu0 %v2437_v61  ;;  %v2463_v13 = vld [vmem:[%s3102_s3 + $0x100] sm:$0xff]  ;;  %v2454_v14 = vld [vmem:[%s3102_s3 + $0xb8] sm:$0xff]  ;;  %v2453_v17 = vld [vmem:[%s3102_s3 + $0xb0] sm:$0xff] }
  0x21   : > { %394 = vmatpush.msra.mxu3 %v1784_v25  ;;  %v2452_v18 = vld [vmem:[%s3102_s3 + $0xa8] sm:$0xff]  ;;  %v2451_v21 = vld [vmem:[%s3102_s3 + $0xa0] sm:$0xff]  ;;  %v2458_v24 = vld [vmem:[%s3102_s3 + $0xd8] sm:$0xff] }
  0x22   : > { %358 = vmatpush.msra.mxu2 %v335_v26  ;;  %v2457_v25 = vld [vmem:[%s3102_s3 + $0xd0] sm:$0xff]  ;;  %v2495_v40 = vld [vmem:[%s3104_s5 + $0xe0] sm:$0xff] }
  0x23   : > { %395 = vmatpush.msra.mxu3 %v1783_v27  ;;  %512 = vmatpush.bf16.msra.mxu1 %v2431_v46  ;;  %v2456_v27 = vld [vmem:[%s3102_s3 + $0xc8] sm:$0xff]  ;;  %v2497_v45 = vld [vmem:[%s3104_s5 + $0xf0] sm:$0xff] }
  0x24   : > { %359 = vmatpush.msra.mxu2 %v334_v28  ;;  %471 = vmatpush.bf16.msra.mxu0 %v2436_v0  ;;  %v2469_v58 = vld [vmem:[%s3104_s5 + $0x10] sm:$0xff] }
  0x25   : > { %396 = vmatpush.msra.mxu3 %v1782_v29  ;;  %v2455_v29 = vld [vmem:[%s3102_s3 + $0xc0] sm:$0xff] }
  0x26   : > { %360 = vmatpush.msra.mxu2 %v333_v30 }
  0x27   : > { %397 = vmatpush.msra.mxu3 %v1781_v31  ;;  %612 = vmatpush.bf16.msrb.mxu1 %v2446_v47 }
  0x28   : > { %361 = vmatpush.msra.mxu2 %v332_v32  ;;  %472 = vmatpush.bf16.msra.mxu0 %v2435_v1 }
  0x29   : > { %398 = vmatpush.msra.mxu3 %v1780_v33 }
  0x2a   : > { %362 = vmatpush.msra.mxu2 %v331_v34 }
  0x2b   : > { %399 = vmatpush.msra.mxu3 %v1779_v35  ;;  %613 = vmatpush.bf16.msrb.mxu1 %v2445_v48  ;;  %v2472_v48 = vld [vmem:[%s3104_s5 + $0x28] sm:$0xff] }
  0x2c   : > { %665 = vmatpush.bf16.msrb.mxu2 %v2450_v59  ;;  %560 = vmatpush.bf16.msrb.mxu0 %v2442_v2 }
  0x2f   : > { %614 = vmatpush.bf16.msrb.mxu1 %v2444_v49  ;;  %v2496_v49 = vld [vmem:[%s3104_s5 + $0xe8] sm:$0xff] }
  0x30   : > { %666 = vmatpush.bf16.msrb.mxu2 %v2449_v62  ;;  %561 = vmatpush.bf16.msrb.mxu0 %v2441_v5  ;;  %v2553_v62 = vld [vmem:[%s3103_s4] ss:$0 sm:$0xff]  ;;  %v2468_v5 = vld [vmem:[%s3104_s5 + $0x8] sm:$0xff] }
  0x33   : > { %615 = vmatpush.bf16.msrb.mxu1 %v2443_v50 }
  0x34   : > { %667 = vmatpush.bf16.msrb.mxu2 %v2448_v3  ;;  %562 = vmatpush.bf16.msrb.mxu0 %v2440_v8  ;;  %v2492_v8 = vld [vmem:[%s3104_s5 + $0xc8] sm:$0xff] }
  0x38   : > { %668 = vmatpush.bf16.msrb.mxu2 %v2447_v6  ;;  %563 = vmatpush.bf16.msrb.mxu0 %v2439_v10  ;;  %v2493_v6 = vld [vmem:[%s3104_s5 + $0xd0] sm:$0xff] }
  0x8f   : > { %v302_v36 = vpop.f32.mrf.mxu1 }
  0x97   : > { %v327_v37 = vpop.f32.mrf.mxu1 }
  0x98   : > { %v330_v38 = vmax.f32 %v302_v36, %v327_v37 }
  0x9a   : > { %363 = vmatmul.f32.vlgmr.msra.gmra.mxu2 %v330_v38  ;;  %400 = vmatmul.f32.vlgmr.msra.gmra.mxu3 %v330_v38 }
  0x9b   : > { %874 = vmatpush.bf16.msra.mxu2 %v2466_v9  ;;  %v2491_v9 = vld [vmem:[%s3104_s5 + $0xc0] sm:$0xff] }
  0x9f   : > { %875 = vmatpush.bf16.msra.mxu2 %v2465_v11 }
  0xa3   : > { %876 = vmatpush.bf16.msra.mxu2 %v2464_v12 }
  0xa7   : > { %877 = vmatpush.bf16.msra.mxu2 %v2463_v13 }
 0x11d   : > { %v364_v42 = vpop.f32.mrf.mxu2  ;;  %v401_v43 = vpop.f32.mrf.mxu3 }
 0x11e   : > { %v404_v44 = vmax.f32 %v364_v42, %v401_v43  ;;  %v2474_v42 = vld [vmem:[%s3104_s5 + $0x38] sm:$0xff] }
 0x11f   : > { %v2498_v43 = vld [vmem:[%s3104_s5 + $0xf8] sm:$0xff] }
 0x120   : > { %410 = vrot.lane.b32.xlu0 %v404_v44, %s2564_s16  ;;  %v2473_v44 = vld [vmem:[%s3104_s5 + $0x30] sm:$0xff] }
 0x192   : > { %v411_v51 = vpop.permute.xlu0 %410 }
 0x193   : > { %414 = vst.msk [vmem:[#allocation2 + $0x1] sm:$0xff] %vm413_vm3, %v411_v51 }
 0x19a   : > { %v570_v52 = vld [vmem:[#allocation2 + $0x1] sm:$0xff] }
 0x19b   : > { %v415_v53 = vld [vmem:[#allocation2] sm:$0xff]  ;;  %v571_v54 = vpack.c.bf16 %v570_v52, %v570_v52 }
 0x19c   : > { %v416_v55 = vpack.c.bf16 %v415_v53, %v415_v53  ;;  %v727_v56 = vld [vmem:[#allocation2 + $0x2] sm:$0xff] }
 0x19d   : > { %684 = vrot.lane.b32.xlu2 %v571_v54, %s2565_s8  ;;  %v2758_v57 = vpack.c.bf16 %v727_v56, %v727_v56  ;;  %v2471_v52 = vld [vmem:[%s3104_s5 + $0x20] sm:$0xff] }
 0x19e   : > { %527 = vrot.lane.b32.xlu1 %v416_v55, %s2565_s8  ;;  %435 = vrot.lane.b32.xlu0 %v416_v55, %s2566_s9 }
 0x19f   : > { %1836 = vmatmul.msk.bf16.vlgmr.msra.gmra.mxu1 %vm461_vm4, %v416_v55  ;;  %v2470_v55 = vld [vmem:[%s3104_s5 + $0x18] sm:$0xff] }
 0x1a0   : > { %822 = vmatpush.bf16.msra.mxu1 %v2462_v60 }
 0x1a4   : > { %823 = vmatpush.bf16.msra.mxu1 %v2461_v63 }
 0x1a5   : > { %841 = vrot.lane.b32.xlu2 %v2758_v57, %s2565_s8 }
 0x1a6   : > { %632 = vrot.lane.b32.xlu1 %v571_v54, %s2566_s9  ;;  %789 = vrot.lane.b32.xlu0 %v2758_v57, %s2566_s9 }
 0x1a8   : > { %824 = vmatpush.bf16.msra.mxu1 %v2460_v4  ;;  %v2494_v4 = vld [vmem:[%s3104_s5 + $0xd8] sm:$0xff] }
 0x1ac   : > { %825 = vmatpush.bf16.msra.mxu1 %v2459_v7  ;;  %v2467_v7 = vld [vmem:[%s3104_s5] sm:$0xff] }
 0x1af   : > { %1886 = vmatmul.msk.bf16.vlgmr.msrb.gmra.mxu1 %vm461_vm4, %v571_v54 }
 0x1f7   : > { %v685_v23 = vpop.permute.xlu2 %684 }
 0x1ff   : > { %v842_v28 = vpop.permute.xlu2 %841 }
 0x210   : > { %v528_v15 = vpop.permute.xlu1 %527  ;;  %v436_v16 = vpop.permute.xlu0 %435 }
 0x211   : > { %1819 = vmatmul.msk.bf16.vlgmr.msra.gmra.mxu0 %vm461_vm4, %v436_v16 }
 0x212   : > { %717 = vmatpush.bf16.msra.mxu0 %v2454_v14 }
 0x216   : > { %718 = vmatpush.bf16.msra.mxu0 %v2453_v17 }
 0x218   : > { %v633_v19 = vpop.permute.xlu1 %632  ;;  %v790_v20 = vpop.permute.xlu0 %789 }
 0x219   : > { %1911 = vmatmul.msk.bf16.vlgmr.msrb.gmra.mxu2 %vm461_vm4, %v633_v19  ;;  %1986 = vmatmul.msk.bf16.vlgmr.msra.gmra.mxu1 %vm461_vm4, %v790_v20 }
 0x21a   : > { %719 = vmatpush.bf16.msra.mxu0 %v2452_v18  ;;  %1239 = vmatpush.bf16.msrb.mxu2 %v2498_v43 }
 0x21c   : > { %v514_v22 = vpop.f32.mrf.mxu1 }
 0x21e   : > { %720 = vmatpush.bf16.msra.mxu0 %v2451_v21  ;;  %1240 = vmatpush.bf16.msrb.mxu2 %v2497_v45 }
 0x221   : > { %1861 = vmatmul.msk.bf16.vlgmr.msrb.gmra.mxu0 %vm461_vm4, %v528_v15 }
 0x222   : > { %769 = vmatpush.bf16.msrb.mxu0 %v2458_v24  ;;  %1241 = vmatpush.bf16.msrb.mxu2 %v2496_v49  ;;  %v2482_v24 = vld [vmem:[%s3104_s5 + $0x78] sm:$0xff] }
 0x223   : > { %1003 = vmatpush.bf16.msrb.mxu3 %v2482_v24  ;;  %v2508_v24 = vld [vmem:[%s3104_s5 + $0x148] sm:$0xff] }
 0x224   : > { %v516_v26 = vpop.f32.mrf.mxu1 }
 0x226   : > { %770 = vmatpush.bf16.msrb.mxu0 %v2457_v25  ;;  %1242 = vmatpush.bf16.msrb.mxu2 %v2495_v40  ;;  %v2476_v40 = vld [vmem:[%s3104_s5 + $0x48] sm:$0xff] }
 0x229   : > { %2011 = vmatmul.msk.bf16.vlgmr.msra.gmra.mxu2 %vm461_vm4, %v842_v28  ;;  %v2481_v28 = vld [vmem:[%s3104_s5 + $0x70] sm:$0xff] }
 0x22a   : > { %771 = vmatpush.bf16.msrb.mxu0 %v2456_v27  ;;  %1243 = vmatpush.bf16.msrb.mxu2 %v2494_v4  ;;  %v2500_v4 = vld [vmem:[%s3104_s5 + $0x108] sm:$0xff] }
 0x22b   : > { %1004 = vmatpush.bf16.msrb.mxu3 %v2481_v28 }
 0x22c   : > { %v617_v30 = vpop.f32.mrf.mxu1 }
 0x22e   : > { %772 = vmatpush.bf16.msrb.mxu0 %v2455_v29  ;;  %1244 = vmatpush.bf16.msrb.mxu2 %v2493_v6  ;;  %v2483_v6 = vld [vmem:[%s3104_s5 + $0x80] sm:$0xff] }
 0x231   : > { %1936 = vmatmul.msk.bf16.vlgmr.msra.gmra.mxu0 %vm461_vm4, %v685_v23 }
 0x232   : > { %1064 = vmatpush.bf16.msra.mxu0 %v2474_v42  ;;  %1245 = vmatpush.bf16.msrb.mxu2 %v2492_v8  ;;  %v2480_v42 = vld [vmem:[%s3104_s5 + $0x68] sm:$0xff]  ;;  %v2522_v8 = vld [vmem:[%s3104_s5 + $0x1b8] sm:$0xff] }
 0x233   : > { %1005 = vmatpush.bf16.msrb.mxu3 %v2480_v42 }
 0x234   : > { %v619_v31 = vpop.f32.mrf.mxu1 }
 0x236   : > { %1065 = vmatpush.bf16.msra.mxu0 %v2473_v44  ;;  %1246 = vmatpush.bf16.msrb.mxu2 %v2491_v9  ;;  %v2499_v9 = vld [vmem:[%s3104_s5 + $0x100] sm:$0xff] }
 0x23a   : > { %1066 = vmatpush.bf16.msra.mxu0 %v2472_v48  ;;  %v2479_v48 = vld [vmem:[%s3104_s5 + $0x60] sm:$0xff] }
 0x23b   : > { %1006 = vmatpush.bf16.msrb.mxu3 %v2479_v48  ;;  %v2533_v48 = vld [vmem:[%s3104_s5 + $0x210] sm:$0xff] }
 0x23e   : > { %1067 = vmatpush.bf16.msra.mxu0 %v2471_v52  ;;  %v2477_v52 = vld [vmem:[%s3104_s5 + $0x50] sm:$0xff] }
 0x241   : > { %1961 = vmatmul.msk.bf16.vlgmr.msrb.gmra.mxu0 %vm461_vm4, %v2758_v57 }
 0x242   : > { %1068 = vmatpush.bf16.msra.mxu0 %v2470_v55  ;;  %v2505_v55 = vld [vmem:[%s3104_s5 + $0x130] sm:$0xff] }
 0x246   : > { %1069 = vmatpush.bf16.msra.mxu0 %v2469_v58  ;;  %v2487_v58 = vld [vmem:[%s3104_s5 + $0xa0] sm:$0xff] }
 0x24a   : > { %1070 = vmatpush.bf16.msra.mxu0 %v2468_v5  ;;  %v2527_v5 = vld [vmem:[%s3104_s5 + $0x1e0] sm:$0xff] }
 0x24e   : > { %1071 = vmatpush.bf16.msra.mxu0 %v2467_v7  ;;  %v2514_v7 = vld [vmem:[%s3104_s5 + $0x178] sm:$0xff] }
 0x252   : > { %1429 = vmatpush.bf16.msrb.mxu0 %v2514_v7 }
 0x28e   : > { %v474_v32 = vpop.f32.mrf.mxu0 }
 0x28f   : > { %v515_v47 = vadd.f32 %v514_v22, %v474_v32 }
 0x296   : > { %v476_v33 = vpop.f32.mrf.mxu0  ;;  %v827_v34 = vpop.f32.mrf.mxu1 }
 0x297   : > { %v2490_v33 = vld [vmem:[%s3104_s5 + $0xb8] sm:$0xff] }
 0x298   : > { %1149 = vmatpush.bf16.msrb.mxu1 %v2490_v33 }
 0x29c   : > { %v670_v35 = vpop.f32.mrf.mxu2 }
 0x29e   : > { %v565_v36 = vpop.f32.mrf.mxu0  ;;  %v829_v37 = vpop.f32.mrf.mxu1 }
 0x29f   : > { %v569_v50 = vadd.f32 %v565_v36, %v515_v47 }
 0x2a1   : > { %v621_v54 = vadd.f32 %v617_v30, %v569_v50 }
 0x2a3   : > { %v674_v56 = vadd.f32 %v670_v35, %v621_v54  ;;  %v2506_v54 = vld [vmem:[%s3104_s5 + $0x138] sm:$0xff] }
 0x2a4   : > { %v672_v38 = vpop.f32.mrf.mxu2 }
 0x2a5   : > { %v2489_v38 = vld [vmem:[%s3104_s5 + $0xb0] sm:$0xff] }
 0x2a6   : > { %v567_v39 = vpop.f32.mrf.mxu0  ;;  %1150 = vmatpush.bf16.msrb.mxu1 %v2489_v38  ;;  %v2535_v38 = vld [vmem:[%s3104_s5 + $0x220] sm:$0xff] }
 0x2ac   : > { %v879_v41 = vpop.f32.mrf.mxu2 }
 0x2ae   : > { %v722_v46 = vpop.f32.mrf.mxu0 }
 0x2af   : > { %v726_v57 = vadd.f32 %v722_v46, %v674_v56  ;;  %v2488_v56 = vld [vmem:[%s3104_s5 + $0xa8] sm:$0xff] }
 0x2b0   : > { %1151 = vmatpush.bf16.msrb.mxu1 %v2488_v56 }
 0x2b4   : > { %v881_v51 = vpop.f32.mrf.mxu2  ;;  %1152 = vmatpush.bf16.msrb.mxu1 %v2487_v58 }
 0x2b5   : > { %v2478_v51 = vld [vmem:[%s3104_s5 + $0x58] sm:$0xff] }
 0x2b6   : > { %v724_v53 = vpop.f32.mrf.mxu0  ;;  %1007 = vmatpush.bf16.msrb.mxu3 %v2478_v51 }
 0x2b7   : > { %v2475_v53 = vld [vmem:[%s3104_s5 + $0x40] sm:$0xff] }
 0x2ba   : > { %1008 = vmatpush.bf16.msrb.mxu3 %v2477_v52 }
 0x2be   : > { %v774_v59 = vpop.f32.mrf.mxu0  ;;  %1009 = vmatpush.bf16.msrb.mxu3 %v2476_v40 }
 0x2bf   : > { %v778_v60 = vadd.f32 %v774_v59, %v726_v57  ;;  %v2504_v57 = vld [vmem:[%s3104_s5 + $0x128] sm:$0xff]  ;;  %v2503_v59 = vld [vmem:[%s3104_s5 + $0x120] sm:$0xff] }
 0x2c1   : > { %v831_v61 = vadd.f32 %v827_v34, %v778_v60  ;;  %v2530_v60 = vld [vmem:[%s3104_s5 + $0x1f8] sm:$0xff] }
 0x2c2   : > { %1010 = vmatpush.bf16.msrb.mxu3 %v2475_v53  ;;  %1609 = vmatpush.bf16.msra.mxu2 %v2530_v60  ;;  %v2531_v53 = vld [vmem:[%s3104_s5 + $0x200] sm:$0xff] }
 0x2c3   : > { %v883_v63 = vadd.f32 %v879_v41, %v831_v61  ;;  %v2486_v61 = vld [vmem:[%s3104_s5 + $0x98] sm:$0xff] }
 0x2c4   : > { %1153 = vmatpush.bf16.msrb.mxu1 %v2486_v61 }
 0x2c5   : > { %v888_v0 = vadd.f32 %v2553_v62, %v883_v63  ;;  %v2502_v62 = vld [vmem:[%s3104_s5 + $0x118] sm:$0xff]  ;;  %v2529_v63 = vld [vmem:[%s3104_s5 + $0x1f0] sm:$0xff] }
 0x2c6   : > { %v776_v1 = vpop.f32.mrf.mxu0  ;;  %1344 = vmatpush.bf16.msra.mxu3 %v2506_v54  ;;  %1610 = vmatpush.bf16.msra.mxu2 %v2529_v63 }
 0x2c7   : > { %v889_v2 = vmax.f32 %v888_v0, 0.0  ;;  %v2485_v0 = vld [vmem:[%s3104_s5 + $0x90] sm:$0xff] }
 0x2c8   : > { %1154 = vmatpush.bf16.msrb.mxu1 %v2485_v0  ;;  %v2501_v1 = vld [vmem:[%s3104_s5 + $0x110] sm:$0xff] }
 0x2c9   : > { %v897_v3 = vrot.slane %v889_v2, 7  ;;  %v2528_v2 = vld [vmem:[%s3104_s5 + $0x1e8] sm:$0xff] }
 0x2ca   : > { %1345 = vmatpush.bf16.msra.mxu3 %v2505_v55  ;;  %1611 = vmatpush.bf16.msra.mxu2 %v2528_v2 }
 0x2cb   : > { %898 = vrot.lane.b32.xlu1 %v897_v3, %s2567_s30  ;;  %v2484_v3 = vld [vmem:[%s3104_s5 + $0x88] sm:$0xff] }
 0x2cc   : > { %1155 = vmatpush.bf16.msrb.mxu1 %v2484_v3 }
 0x2ce   : > { %1346 = vmatpush.bf16.msra.mxu3 %v2504_v57  ;;  %1612 = vmatpush.bf16.msra.mxu2 %v2527_v5 }
 0x2d0   : > { %1156 = vmatpush.bf16.msrb.mxu1 %v2483_v6 }
 0x2d2   : > { %1347 = vmatpush.bf16.msra.mxu3 %v2503_v59 }
 0x2d4   : > { %1514 = vmatpush.bf16.msra.mxu1 %v2522_v8 }
 0x2d6   : > { %1348 = vmatpush.bf16.msra.mxu3 %v2502_v62 }
 0x2da   : > { %1349 = vmatpush.bf16.msra.mxu3 %v2501_v1 }
 0x2de   : > { %1350 = vmatpush.bf16.msra.mxu3 %v2500_v4 }
 0x2e2   : > { %1351 = vmatpush.bf16.msra.mxu3 %v2499_v9 }
 0x33d   : > { %v899_v10 = vpop.permute.xlu1 %898 }
 0x33e   : > { %902 = vst.msk [vmem:[#allocation3] sm:$0xfe] %vm901_vm7, %v899_v10 }
 0x33f   : > { %904 = vst.msk [vmem:[#allocation3 + $0x8] sm:$0xfe] %vm903_vm8, %v899_v10 }
 0x340   : > { %906 = vst.msk [vmem:[#allocation3 + $0x10] sm:$0x1] %vm905_vm9, %v899_v10 }
 0x341   : > { %908 = vst.msk [vmem:[#allocation3 + $0x18] sm:$0x1] %vm907_vm10, %v899_v10  ;;  %v2526_v10 = vld [vmem:[%s3104_s5 + $0x1d8] sm:$0xff] }
 0x342   : > { %1613 = vmatpush.bf16.msra.mxu2 %v2526_v10 }
 0x345   : > { %v909_v11 = vld [vmem:[#allocation3] sm:$0xff] }
 0x346   : > { %v1253_v12 = vld [vmem:[#allocation3] sm:$0xfe]  ;;  %v927_v14 = vld [vmem:[#allocation3 + $0x8] sm:$0xff]  ;;  %v910_v15 = vpack.c.bf16 %v909_v11, %v909_v11 }
 0x347   : > { %v1163_v13 = vld [vmem:[#allocation3] sm:$0xfe]  ;;  %v1254_v16 = vld [vmem:[#allocation3 + $0x8] sm:$0xfe]  ;;  %v928_v17 = vpack.c.bf16 %v927_v14, %v927_v14  ;;  %v1255_v18 = vld [vmem:[#allocation3 + $0x10] sm:$0x1] }
 0x348   : > { %v1164_v19 = vld [vmem:[#allocation3 + $0x10] sm:$0x1]  ;;  %948 = vrot.lane.b32.xlu2 %v910_v15, %s2565_s8  ;;  %1072 = vmatmul.bf16.vlgmr.msra.gmra.mxu0 %v910_v15  ;;  %v1257_v20 = vpack.c.bf16 %v1255_v18, %v1253_v12  ;;  %v1256_v22 = vld [vmem:[#allocation3 + $0x18] sm:$0x1]  ;;  %v1529_v41 = vld [vmem:[#allocation3 + $0x8] sm:$0xfc] }
 0x349   : > { %v1165_v21 = vpack.c.bf16 %v1164_v19, %v1163_v13  ;;  %950 = vrot.lane.b32.xlu0 %v928_v17, %s2565_s8  ;;  %v1258_v23 = vpack.c.bf16 %v1256_v22, %v1254_v16  ;;  %v1531_v43 = vld [vmem:[#allocation3 + $0x18] sm:$0x3]  ;;  %v1528_v44 = vld [vmem:[#allocation3] sm:$0xfc]  ;;  %v1530_v45 = vld [vmem:[#allocation3 + $0x10] sm:$0x3] }
 0x34a   : > { %v1279_v25 = vshll.u32 %v1257_v20, 16  ;;  %v1277_v29 = vshrl.u32 %v1257_v20, 16  ;;  %v1533_v46 = vpack.c.bf16 %v1531_v43, %v1529_v41  ;;  %v1532_v47 = vpack.c.bf16 %v1530_v45, %v1528_v44  ;;  %v2513_v11 = vld [vmem:[%s3104_s5 + $0x170] sm:$0xff]  ;;  %v2512_v14 = vld [vmem:[%s3104_s5 + $0x168] sm:$0xff]  ;;  %v2519_v18 = vld [vmem:[%s3104_s5 + $0x1a0] sm:$0xff] }
 0x34b   : > { %v1186_v26 = vshll.u32 %v1165_v21, 16  ;;  %v1286_v27 = vshll.u32 %v1258_v23, 16  ;;  %v1184_v31 = vshrl.u32 %v1165_v21, 16  ;;  %v1284_v34 = vshrl.u32 %v1258_v23, 16  ;;  %v2521_v12 = vld [vmem:[%s3104_s5 + $0x1b0] sm:$0xff]  ;;  %1430 = vmatpush.bf16.msrb.mxu0 %v2513_v11  ;;  %v2524_v16 = vld [vmem:[%s3104_s5 + $0x1c8] sm:$0xff] }
 0x34c   : > { %v1281_v30 = vrot.slane %v1279_v25, 1  ;;  %v1554_v49 = vrot.slane %v1533_v46, 1  ;;  %v1553_v50 = vrot.slane %v1532_v47, 1  ;;  %1515 = vmatpush.bf16.msra.mxu1 %v2521_v12  ;;  %v2525_v13 = vld [vmem:[%s3104_s5 + $0x1d0] sm:$0xff]  ;;  %v2523_v19 = vld [vmem:[%s3104_s5 + $0x1c0] sm:$0xff]  ;;  %v2510_v20 = vld [vmem:[%s3104_s5 + $0x158] sm:$0xff] }
 0x34d   : > { %v1188_v32 = vrot.slane %v1186_v26, 1  ;;  %v1288_v35 = vrot.slane %v1286_v27, 1  ;;  %1614 = vmatpush.bf16.msra.mxu2 %v2525_v13  ;;  %v2518_v21 = vld [vmem:[%s3104_s5 + $0x198] sm:$0xff]  ;;  %v2509_v22 = vld [vmem:[%s3104_s5 + $0x150] sm:$0xff]  ;;  %v2516_v25 = vld [vmem:[%s3104_s5 + $0x188] sm:$0xff] }
 0x34e   : > { %v1282_v36 = vor.u32 %v1281_v30, %v1277_v29  ;;  %v2517_v23 = vld [vmem:[%s3104_s5 + $0x190] sm:$0xff]  ;;  %v2507_v26 = vld [vmem:[%s3104_s5 + $0x140] sm:$0xff]  ;;  %v2538_v29 = vld [vmem:[%s3104_s5 + $0x238] sm:$0xff] }
 0x34f   : > { %v1189_v37 = vor.u32 %v1188_v32, %v1184_v31  ;;  %v1289_v39 = vor.u32 %v1288_v35, %v1284_v34  ;;  %1431 = vmatpush.bf16.msrb.mxu0 %v2512_v14  ;;  %v2515_v27 = vld [vmem:[%s3104_s5 + $0x180] sm:$0xff]  ;;  %v2537_v32 = vld [vmem:[%s3104_s5 + $0x230] sm:$0xff]  ;;  %v2536_v35 = vld [vmem:[%s3104_s5 + $0x228] sm:$0xff] }
 0x350   : > { %1290 = vrot.lane.b32.xlu1 %v1282_v36, %s2565_s8  ;;  %v2534_v41 = vld [vmem:[%s3104_s5 + $0x218] sm:$0xff]  ;;  %v1443_v52 = vld [vmem:[#allocation3] sm:$0xfc]  ;;  %v1444_v40 = vld [vmem:[#allocation3 + $0x10] sm:$0x3] }
 0x351   : > { %1247 = vmatmul.bf16.vlgmr.msrb.gmra.mxu2 %v1189_v37  ;;  %1094 = vrot.lane.b32.xlu0 %v910_v15, %s2568_s11  ;;  %v2520_v15 = vld [vmem:[%s3104_s5 + $0x1a8] sm:$0xff]  ;;  %v1445_v54 = vpack.c.bf16 %v1444_v40, %v1443_v52 }
 0x352   : > { %1292 = vrot.lane.b32.xlu2 %v1289_v39, %s2565_s8  ;;  %1516 = vmatpush.bf16.msra.mxu1 %v2520_v15  ;;  %v2554_v15 = vld [vmem:[%s3105_s6] ss:$0 sm:$0xff] }
 0x353   : > { %1615 = vmatpush.bf16.msra.mxu2 %v2524_v16  ;;  %v1464_v57 = vrot.slane %v1445_v54, 1 }
 0x356   : > { %1517 = vmatpush.bf16.msra.mxu1 %v2519_v18 }
 0x357   : > { %1616 = vmatpush.bf16.msra.mxu2 %v2523_v19 }
 0x358   : > { %1096 = vrot.lane.b32.xlu1 %v928_v17, %s2568_s11  ;;  %v2511_v17 = vld [vmem:[%s3104_s5 + $0x160] sm:$0xff] }
 0x359   : > { %1557 = vrot.lane.b32.xlu0 %v1554_v49, %s2565_s8  ;;  %1432 = vmatpush.bf16.msrb.mxu0 %v2511_v17 }
 0x35a   : > { %1555 = vrot.lane.b32.xlu2 %v1553_v50, %s2565_s8  ;;  %1518 = vmatpush.bf16.msra.mxu1 %v2518_v21 }
 0x35d   : > { %1433 = vmatpush.bf16.msrb.mxu0 %v2510_v20 }
 0x35e   : > { %1519 = vmatpush.bf16.msra.mxu1 %v2517_v23 }
 0x360   : > { %1640 = vrot.lane.b32.xlu1 %v1553_v50, %s2568_s11  ;;  %v2532_v50 = vld [vmem:[%s3104_s5 + $0x208] sm:$0xff] }
 0x361   : > { %1375 = vrot.lane.b32.xlu0 %v1282_v36, %s2568_s11  ;;  %1434 = vmatpush.bf16.msrb.mxu0 %v2509_v22 }
 0x362   : > { %1642 = vrot.lane.b32.xlu2 %v1554_v49, %s2568_s11  ;;  %1520 = vmatpush.bf16.msra.mxu1 %v2516_v25 }
 0x365   : > { %1435 = vmatpush.bf16.msrb.mxu0 %v2508_v24 }
 0x366   : > { %1521 = vmatpush.bf16.msra.mxu1 %v2515_v27 }
 0x368   : > { %1377 = vrot.lane.b32.xlu1 %v1289_v39, %s2568_s11  ;;  %s1775_s11 = sshll.u32 %s3108_s25, 3 }
 0x369   : > { %1436 = vmatpush.bf16.msrb.mxu0 %v2507_v26  ;;  %s276_s14 = scalar_lea.vmem %s3106_s7, %s1775_s11 }
 0x3a2   : > { %v949_v28 = vpop.permute.xlu2 %948 }
 0x3ac   : > { %v1293_v33 = vpop.permute.xlu2 %1292 }
 0x3b4   : > { %v1556_v42 = vpop.permute.xlu2 %1555 }
 0x3bb   : > { %v951_v30 = vpop.permute.xlu0 %950 }
 0x3bc   : > { %v953_v31 = vsel %vm952_vm11, %v949_v28, %v951_v30  ;;  %v1643_v58 = vpop.permute.xlu2 %1642 }
 0x3bd   : > { %1011 = vmatmul.bf16.vlgmr.msrb.gmra.mxu3 %v953_v31 }
 0x3be   : > { %1694 = vmatpush.bf16.msrb.mxu3 %v2538_v29 }
 0x3c2   : > { %v1291_v34 = vpop.permute.xlu1 %1290  ;;  %1695 = vmatpush.bf16.msrb.mxu3 %v2537_v32 }
 0x3c3   : > { %v1095_v36 = vpop.permute.xlu0 %1094  ;;  %v1294_v45 = vsel %vm952_vm11, %v1291_v34, %v1293_v33 }
 0x3c5   : > { %v1073_v37 = vpop.f32.mrf.mxu0 }
 0x3c6   : > { %1696 = vmatpush.bf16.msrb.mxu3 %v2536_v35 }
 0x3ca   : > { %v1097_v39 = vpop.permute.xlu1 %1096  ;;  %1697 = vmatpush.bf16.msrb.mxu3 %v2535_v38 }
 0x3cb   : > { %v1099_v43 = vsel %vm1098_vm12, %v1095_v36, %v1097_v39  ;;  %v1558_v44 = vpop.permute.xlu0 %1557 }
 0x3cc   : > { %1157 = vmatmul.bf16.vlgmr.msrb.gmra.mxu1 %v1099_v43  ;;  %v1559_v46 = vsel %vm952_vm11, %v1556_v42, %v1558_v44 }
 0x3cd   : > { %1352 = vmatmul.bf16.vlgmr.msra.gmra.mxu3 %v1294_v45  ;;  %1617 = vmatmul.bf16.vlgmr.msra.gmra.mxu2 %v1559_v46  ;;  %v1075_v47 = vpop.f32.mrf.mxu0 }
 0x3ce   : > { %1698 = vmatpush.bf16.msrb.mxu3 %v2534_v41 }
 0x3d2   : > { %v1641_v49 = vpop.permute.xlu1 %1640  ;;  %1699 = vmatpush.bf16.msrb.mxu3 %v2533_v48 }
 0x3d3   : > { %v1376_v55 = vpop.permute.xlu0 %1375  ;;  %v1644_v61 = vsel %vm1098_vm12, %v1641_v49, %v1643_v58 }
 0x3d4   : > { %v1248_v51 = vpop.f32.mrf.mxu2 }
 0x3d6   : > { %1700 = vmatpush.bf16.msrb.mxu3 %v2532_v50 }
 0x3da   : > { %v1378_v56 = vpop.permute.xlu1 %1377  ;;  %1701 = vmatpush.bf16.msrb.mxu3 %v2531_v53 }
 0x3db   : > { %v1379_v59 = vsel %vm1098_vm12, %v1376_v55, %v1378_v56 }
 0x3dc   : > { %v1250_v60 = vpop.f32.mrf.mxu2  ;;  %1437 = vmatmul.bf16.vlgmr.msrb.gmra.mxu0 %v1379_v59  ;;  %1522 = vmatmul.bf16.vlgmr.msra.gmra.mxu1 %v1464_v57 }
 0x3dd   : > { %1702 = vmatmul.bf16.vlgmr.msrb.gmra.mxu3 %v1644_v61 }
 0x440   : > { %v1012_v62 = vpop.f32.mrf.mxu3 }
 0x441   : > { %v1074_v1 = vadd.f32 %v1073_v37, %v1012_v62 }
 0x448   : > { %v1014_v63 = vpop.f32.mrf.mxu3 }
 0x449   : > { %v1158_v0 = vpop.f32.mrf.mxu1 }
 0x44a   : > { %v1162_v5 = vadd.f32 %v1158_v0, %v1074_v1 }
 0x44c   : > { %v1252_v6 = vadd.f32 %v1248_v51, %v1162_v5 }
 0x450   : > { %v1353_v2 = vpop.f32.mrf.mxu3  ;;  %v1618_v3 = vpop.f32.mrf.mxu2 }
 0x451   : > { %v1160_v4 = vpop.f32.mrf.mxu1  ;;  %v1357_v7 = vadd.f32 %v1353_v2, %v1252_v6 }
 0x458   : > { %v1355_v8 = vpop.f32.mrf.mxu3  ;;  %v1620_v9 = vpop.f32.mrf.mxu2 }
 0x459   : > { %v1438_v10 = vpop.f32.mrf.mxu0  ;;  %v1523_v11 = vpop.f32.mrf.mxu1 }
 0x45a   : > { %v1442_v12 = vadd.f32 %v1438_v10, %v1357_v7 }
 0x45c   : > { %v1527_v13 = vadd.f32 %v1523_v11, %v1442_v12 }
 0x45e   : > { %v1622_v14 = vadd.f32 %v1618_v3, %v1527_v13 }
 0x460   : > { %v1703_v16 = vpop.f32.mrf.mxu3 }
 0x461   : > { %v1440_v17 = vpop.f32.mrf.mxu0  ;;  %v1525_v18 = vpop.f32.mrf.mxu1  ;;  %v1707_v19 = vadd.f32 %v1703_v16, %v1622_v14 }
 0x463   : > { %v1712_v20 = vadd.f32 %v2554_v15, %v1707_v19 }
 0x465   : > { %v1713_v21 = vmax.f32 %v1712_v20, 0.0 }
 0x467   : > { %1714 = vst [vmem:[%s276_s14] sm:$0xff] %v1713_v21 }
 0x468   : > { %v1705_v22 = vpop.f32.mrf.mxu3 }
 0x469 PF: > { %s17_s24 = sadd.s32 1, %s2561_s24  }
 0x46a   : > { %p14_p4 = scmp.ge.s32.totalorder %s17_s24, 4  }
 0x46c   :  { %16 = sbr.rel (!%p14_p4) target bundleno = 1 (0x1), region = 96 }

// kernel: _lambda_.5
= control target key start
LH: loop header
LB: loop body
LE: loop exit
PB: predicated region body
PF: predicated region fallthrough
CT: control target
= control target key end

     0   :  { %s2588_s24 = smov 0   ;;  %s3075_s0 = inlined_call_operand.vmem [shape: f32[2,8,128], index: 0, kind: input, shape index: {}]   ;;  %s3076_s1 = inlined_call_operand.vmem [shape: f32[2,4,8], index: 1, kind: input, shape index: {}]   ;;  %s3077_s2 = inlined_call_operand.vmem [shape: f32[2,128,64], index: 2, kind: input, shape index: {}]   ;;  %s3078_s3 = inlined_call_operand.vmem [shape: bf16[9,64,128], index: 3, kind: input, shape index: {}]   ;;  %s3079_s4 = inlined_call_operand.vmem [shape: f32[1,128], index: 4, kind: input, shape index: {}]   ;;  %s3080_s5 = inlined_call_operand.vmem [shape: bf16[9,128,128], index: 5, kind: input, shape index: {}]   ;;  %s3081_s6 = inlined_call_operand.vmem [shape: f32[1,128], index: 6, kind: input, shape index: {}]   ;;  %s3082_s7 = inlined_call_operand.vmem [shape: f32[2,4,128], index: 7, kind: output, shape index: {}]  }
   0x1 LB: > { %s1749_s25 = sadd.s32 4294967295, %s2540_s24   ;;  %p1753_p0 = scmp.ge.s32.totalorder %s2540_s24, 1  ;;  %s2540_s24 = sphi %s2588_s24, %s17_s24  }
   0x2   : > { %p236_p1 = scmp.lt.s32.totalorder %s2540_s24, 3 }
   0x4   : > { %p237_p2 = pnand %p1753_p0, %p236_p1 }
   0x5   : > { %p266_p3 = scmp.lt.s32.totalorder (!%p237_p2), %s1749_s25, 1  ;;  %s2543_s16 = smov (!%p237_p2), 16  }
   0x6   : > { %240 = sbr.rel (%p237_p2) target bundleno = 1128 (0x468), region = 48  ;;  %s2544_s8 = smov (!%p237_p2), 96  }
   0x7   : > { %s2545_s9 = smov (!%p237_p2), 112   ;;  %s2546_s30 = smov (!%p237_p2), 32  }
   0x8   : > { %s2547_s11 = smov (!%p237_p2), 64  }
   0xb   : > { %v342_v0 = vld [vmem:[%s3077_s2 + $0x78] sm:$0xff]  ;;  %v341_v2 = vld [vmem:[%s3077_s2 + $0x70] sm:$0xff]  ;;  %s3084_s25 = smov (!%p266_p3, %s1749_s25), 1  ;;  %v340_v4 = vld [vmem:[%s3077_s2 + $0x68] sm:$0xff]  ;;  %vm277_vm0 = vcmask 64512   ;;  %vm401_vm1 = vcmask 783360  }
   0xc   : > { %v1774_v1 = vld [vmem:[%s3077_s2 + $0xf8] sm:$0xff]  ;;  %343 = vmatpush.msra.mxu2 %v342_v0  ;;  %v1773_v3 = vld [vmem:[%s3077_s2 + $0xf0] sm:$0xff]  ;;  %v1772_v5 = vld [vmem:[%s3077_s2 + $0xe8] sm:$0xff]  ;;  %s1754_s15 = sshll.u32 %s3084_s25, 3  ;;  %v2542_v39 = vmov 0.0   ;;  %vm407_vm2 = vcmask 650368  }
   0xd   : > { %380 = vmatpush.msra.mxu3 %v1774_v1  ;;  %s269_s18 = scalar_lea.vmem %s3075_s0, %s1754_s15  ;;  %v276_v6 = vld [vmem:[%s3076_s1] sm:$0xf]  ;;  %v338_v10 = vld [vmem:[%s3077_s2 + $0x58] sm:$0xff]  ;;  %v337_v12 = vld [vmem:[%s3077_s2 + $0x50] sm:$0xff]  ;;  %402 = vst.msk [vmem:[#allocation2] sm:$0x3f] %vm401_vm1, %v2542_v39 }
   0xe   : > { %344 = vmatpush.msra.mxu2 %v341_v2  ;;  %v339_v7 = vld [vmem:[%s3077_s2 + $0x60] sm:$0xff]  ;;  %v1770_v11 = vld [vmem:[%s3077_s2 + $0xd8] sm:$0xff]  ;;  %v1769_v13 = vld [vmem:[%s3077_s2 + $0xd0] sm:$0xff]  ;;  %884 = vst [vmem:[#allocation3] sm:$0x3f] %v2542_v39  ;;  %vm455_vm3 = vcmask 523264  }
   0xf   : > { %381 = vmatpush.msra.mxu3 %v1773_v3  ;;  %v275_v8 = vld [vmem:[%s269_s18] sm:$0xff]  ;;  %v336_v14 = vld [vmem:[%s3077_s2 + $0x48] sm:$0xff]  ;;  %v334_v19 = vld [vmem:[%s3077_s2 + $0x38] sm:$0xff]  ;;  %vm885_vm4 = vcmask 521216   ;;  %vm892_vm5 = vcmask 1044737   ;;  %vm894_vm6 = vcmask 258049  }
  0x10   : > { %345 = vmatpush.msra.mxu2 %v340_v4  ;;  %v1771_v9 = vld [vmem:[%s3077_s2 + $0xe0] sm:$0xff]  ;;  %296 = vmatpush.msra.mxu1 %v275_v8  ;;  %v1768_v15 = vld [vmem:[%s3077_s2 + $0xc8] sm:$0xff]  ;;  %v1766_v20 = vld [vmem:[%s3077_s2 + $0xb8] sm:$0xff]  ;;  %886 = vst.msk [vmem:[#allocation3 + $0x8] sm:$0x3f] %vm885_vm4, %v2542_v39  ;;  %vm939_vm7 = vcmask 785408  }
  0x11   : > { %382 = vmatpush.msra.mxu3 %v1772_v5  ;;  %1756 = vmatmul.msk.f32.vlgmr.msra.gmra.mxu1 %vm277_vm0, %v276_v6  ;;  %v1757_v16 = vld [vmem:[%s3076_s1 + $0x4] sm:$0xf]  ;;  %v333_v21 = vld [vmem:[%s3077_s2 + $0x30] sm:$0xff]  ;;  %v332_v23 = vld [vmem:[%s3077_s2 + $0x28] sm:$0xff] }
  0x12   : > { %346 = vmatpush.msra.mxu2 %v339_v7  ;;  %321 = vmatpush.msrb.mxu1 %v275_v8  ;;  %v335_v17 = vld [vmem:[%s3077_s2 + $0x40] sm:$0xff]  ;;  %v1765_v22 = vld [vmem:[%s3077_s2 + $0xb0] sm:$0xff]  ;;  %v1764_v24 = vld [vmem:[%s3077_s2 + $0xa8] sm:$0xff] }
  0x13   : > { %383 = vmatpush.msra.mxu3 %v1771_v9  ;;  %v1767_v18 = vld [vmem:[%s3077_s2 + $0xc0] sm:$0xff]  ;;  %v330_v27 = vld [vmem:[%s3077_s2 + $0x18] sm:$0xff]  ;;  %v329_v29 = vld [vmem:[%s3077_s2 + $0x10] sm:$0xff] }
  0x14   : > { %347 = vmatpush.msra.mxu2 %v338_v10  ;;  %v331_v25 = vld [vmem:[%s3077_s2 + $0x20] sm:$0xff]  ;;  %v1762_v28 = vld [vmem:[%s3077_s2 + $0x98] sm:$0xff]  ;;  %v1761_v30 = vld [vmem:[%s3077_s2 + $0x90] sm:$0xff] }
  0x15   : > { %384 = vmatpush.msra.mxu3 %v1770_v11  ;;  %v1763_v26 = vld [vmem:[%s3077_s2 + $0xa0] sm:$0xff]  ;;  %v328_v31 = vld [vmem:[%s3077_s2 + $0x8] sm:$0xff]  ;;  %v2413_v38 = vld [vmem:[%s3078_s3 + $0x18] sm:$0xff] }
  0x16   : > { %348 = vmatpush.msra.mxu2 %v337_v12  ;;  %v1760_v32 = vld [vmem:[%s3077_s2 + $0x88] sm:$0xff]  ;;  %v327_v33 = vld [vmem:[%s3077_s2] sm:$0xff]  ;;  %503 = vmatpush.bf16.msra.mxu1 %v2413_v38  ;;  %v2412_v40 = vld [vmem:[%s3078_s3 + $0x10] sm:$0xff] }
  0x17   : > { %385 = vmatpush.msra.mxu3 %v1769_v13  ;;  %v1759_v34 = vld [vmem:[%s3077_s2 + $0x80] sm:$0xff]  ;;  %v2411_v44 = vld [vmem:[%s3078_s3 + $0x8] sm:$0xff]  ;;  %v2425_v46 = vld [vmem:[%s3078_s3 + $0x78] sm:$0xff] }
  0x18   : > { %349 = vmatpush.msra.mxu2 %v336_v14  ;;  %v2410_v45 = vld [vmem:[%s3078_s3] sm:$0xff]  ;;  %v2424_v47 = vld [vmem:[%s3078_s3 + $0x70] sm:$0xff]  ;;  %v2423_v48 = vld [vmem:[%s3078_s3 + $0x68] sm:$0xff] }
  0x19   : > { %386 = vmatpush.msra.mxu3 %v1768_v15  ;;  %1758 = vmatmul.msk.f32.vlgmr.msrb.gmra.mxu1 %vm277_vm0, %v1757_v16  ;;  %v2422_v49 = vld [vmem:[%s3078_s3 + $0x60] sm:$0xff]  ;;  %v2417_v57 = vld [vmem:[%s3078_s3 + $0x38] sm:$0xff]  ;;  %v2416_v60 = vld [vmem:[%s3078_s3 + $0x30] sm:$0xff] }
  0x1a   : > { %350 = vmatpush.msra.mxu2 %v335_v17  ;;  %504 = vmatpush.bf16.msra.mxu1 %v2412_v40  ;;  %v2429_v58 = vld [vmem:[%s3078_s3 + $0x98] sm:$0xff]  ;;  %v2428_v61 = vld [vmem:[%s3078_s3 + $0x90] sm:$0xff]  ;;  %v2415_v63 = vld [vmem:[%s3078_s3 + $0x28] sm:$0xff] }
  0x1b   : > { %387 = vmatpush.msra.mxu3 %v1767_v18  ;;  %v2441_v59 = vld [vmem:[%s3078_s3 + $0xf8] sm:$0xff]  ;;  %463 = vmatpush.bf16.msra.mxu0 %v2417_v57  ;;  %v2440_v62 = vld [vmem:[%s3078_s3 + $0xf0] sm:$0xff]  ;;  %v2414_v0 = vld [vmem:[%s3078_s3 + $0x20] sm:$0xff] }
  0x1c   : > { %351 = vmatpush.msra.mxu2 %v334_v19  ;;  %v2421_v1 = vld [vmem:[%s3078_s3 + $0x58] sm:$0xff]  ;;  %v2427_v2 = vld [vmem:[%s3078_s3 + $0x88] sm:$0xff]  ;;  %v2420_v4 = vld [vmem:[%s3078_s3 + $0x50] sm:$0xff] }
  0x1d   : > { %388 = vmatpush.msra.mxu3 %v1766_v20  ;;  %v2439_v3 = vld [vmem:[%s3078_s3 + $0xe8] sm:$0xff]  ;;  %v2426_v5 = vld [vmem:[%s3078_s3 + $0x80] sm:$0xff]  ;;  %v2445_v8 = vld [vmem:[%s3078_s3 + $0x118] sm:$0xff] }
  0x1e   : > { %352 = vmatpush.msra.mxu2 %v333_v21  ;;  %505 = vmatpush.bf16.msra.mxu1 %v2411_v44  ;;  %v2438_v6 = vld [vmem:[%s3078_s3 + $0xe0] sm:$0xff]  ;;  %v2419_v7 = vld [vmem:[%s3078_s3 + $0x48] sm:$0xff]  ;;  %v2444_v10 = vld [vmem:[%s3078_s3 + $0x110] sm:$0xff] }
  0x1f   : > { %389 = vmatpush.msra.mxu3 %v1765_v22  ;;  %464 = vmatpush.bf16.msra.mxu0 %v2416_v60  ;;  %v2418_v9 = vld [vmem:[%s3078_s3 + $0x40] sm:$0xff]  ;;  %v2443_v11 = vld [vmem:[%s3078_s3 + $0x108] sm:$0xff]  ;;  %v2433_v13 = vld [vmem:[%s3078_s3 + $0xb8] sm:$0xff] }
  0x20   : > { %353 = vmatpush.msra.mxu2 %v332_v23  ;;  %v2442_v12 = vld [vmem:[%s3078_s3 + $0x100] sm:$0xff]  ;;  %v2432_v16 = vld [vmem:[%s3078_s3 + $0xb0] sm:$0xff]  ;;  %v2431_v17 = vld [vmem:[%s3078_s3 + $0xa8] sm:$0xff] }
  0x21   : > { %390 = vmatpush.msra.mxu3 %v1764_v24  ;;  %v2430_v20 = vld [vmem:[%s3078_s3 + $0xa0] sm:$0xff]  ;;  %v2437_v23 = vld [vmem:[%s3078_s3 + $0xd8] sm:$0xff]  ;;  %v2436_v24 = vld [vmem:[%s3078_s3 + $0xd0] sm:$0xff] }
  0x22   : > { %354 = vmatpush.msra.mxu2 %v331_v25  ;;  %506 = vmatpush.bf16.msra.mxu1 %v2410_v45  ;;  %v2476_v44 = vld [vmem:[%s3080_s5 + $0xf0] sm:$0xff]  ;;  %v2475_v39 = vld [vmem:[%s3080_s5 + $0xe8] sm:$0xff] }
  0x23   : > { %391 = vmatpush.msra.mxu3 %v1763_v26  ;;  %465 = vmatpush.bf16.msra.mxu0 %v2415_v63  ;;  %v2435_v26 = vld [vmem:[%s3078_s3 + $0xc8] sm:$0xff]  ;;  %v2448_v57 = vld [vmem:[%s3080_s5 + $0x10] sm:$0xff] }
  0x24   : > { %355 = vmatpush.msra.mxu2 %v330_v27 }
  0x25   : > { %392 = vmatpush.msra.mxu3 %v1762_v28  ;;  %v2434_v28 = vld [vmem:[%s3078_s3 + $0xc0] sm:$0xff] }
  0x26   : > { %356 = vmatpush.msra.mxu2 %v329_v29  ;;  %606 = vmatpush.bf16.msrb.mxu1 %v2425_v46 }
  0x27   : > { %393 = vmatpush.msra.mxu3 %v1761_v30  ;;  %466 = vmatpush.bf16.msra.mxu0 %v2414_v0 }
  0x28   : > { %357 = vmatpush.msra.mxu2 %v328_v31 }
  0x29   : > { %394 = vmatpush.msra.mxu3 %v1760_v32 }
  0x2a   : > { %358 = vmatpush.msra.mxu2 %v327_v33  ;;  %607 = vmatpush.bf16.msrb.mxu1 %v2424_v47  ;;  %v2451_v47 = vld [vmem:[%s3080_s5 + $0x28] sm:$0xff] }
  0x2b   : > { %395 = vmatpush.msra.mxu3 %v1759_v34  ;;  %554 = vmatpush.bf16.msrb.mxu0 %v2421_v1 }
  0x2c   : > { %659 = vmatpush.bf16.msrb.mxu2 %v2429_v58 }
  0x2e   : > { %608 = vmatpush.bf16.msrb.mxu1 %v2423_v48 }
  0x2f   : > { %555 = vmatpush.bf16.msrb.mxu0 %v2420_v4  ;;  %v2447_v4 = vld [vmem:[%s3080_s5 + $0x8] sm:$0xff] }
  0x30   : > { %660 = vmatpush.bf16.msrb.mxu2 %v2428_v61  ;;  %v2532_v61 = vld [vmem:[%s3079_s4] ss:$0 sm:$0xff] }
  0x32   : > { %609 = vmatpush.bf16.msrb.mxu1 %v2422_v49 }
  0x33   : > { %556 = vmatpush.bf16.msrb.mxu0 %v2419_v7  ;;  %v2471_v7 = vld [vmem:[%s3080_s5 + $0xc8] sm:$0xff] }
  0x34   : > { %661 = vmatpush.bf16.msrb.mxu2 %v2427_v2 }
  0x37   : > { %557 = vmatpush.bf16.msrb.mxu0 %v2418_v9 }
  0x38   : > { %662 = vmatpush.bf16.msrb.mxu2 %v2426_v5  ;;  %v2472_v5 = vld [vmem:[%s3080_s5 + $0xd0] sm:$0xff] }
  0x8e   : > { %v298_v35 = vpop.f32.mrf.mxu1 }
  0x96   : > { %v323_v36 = vpop.f32.mrf.mxu1 }
  0x97   : > { %v326_v37 = vmax.f32 %v298_v35, %v323_v36 }
  0x99   : > { %359 = vmatmul.f32.vlgmr.msra.gmra.mxu2 %v326_v37  ;;  %396 = vmatmul.f32.vlgmr.msra.gmra.mxu3 %v326_v37 }
  0x9a   : > { %868 = vmatpush.bf16.msra.mxu2 %v2445_v8  ;;  %v2470_v8 = vld [vmem:[%s3080_s5 + $0xc0] sm:$0xff] }
  0x9e   : > { %869 = vmatpush.bf16.msra.mxu2 %v2444_v10 }
  0xa2   : > { %870 = vmatpush.bf16.msra.mxu2 %v2443_v11 }
  0xa6   : > { %871 = vmatpush.bf16.msra.mxu2 %v2442_v12 }
 0x11c   : > { %v360_v41 = vpop.f32.mrf.mxu2  ;;  %v397_v42 = vpop.f32.mrf.mxu3 }
 0x11d   : > { %v400_v43 = vmax.f32 %v360_v41, %v397_v42  ;;  %v2453_v41 = vld [vmem:[%s3080_s5 + $0x38] sm:$0xff] }
 0x11e   : > { %v2477_v42 = vld [vmem:[%s3080_s5 + $0xf8] sm:$0xff] }
 0x11f   : > { %404 = vrot.lane.b32.xlu0 %v400_v43, %s2543_s16  ;;  %v2452_v43 = vld [vmem:[%s3080_s5 + $0x30] sm:$0xff] }
 0x191   : > { %v405_v50 = vpop.permute.xlu0 %404 }
 0x192   : > { %408 = vst.msk [vmem:[#allocation2 + $0x1] sm:$0xf] %vm407_vm2, %v405_v50  ;;  %v2450_v50 = vld [vmem:[%s3080_s5 + $0x20] sm:$0xff] }
 0x199   : > { %v564_v51 = vld [vmem:[#allocation2 + $0x1] sm:$0xf] }
 0x19a   : > { %v409_v52 = vld [vmem:[#allocation2] sm:$0xf]  ;;  %v565_v53 = vpack.c.bf16 %v564_v51, %v564_v51 }
 0x19b   : > { %v410_v54 = vpack.c.bf16 %v409_v52, %v409_v52  ;;  %v721_v55 = vld [vmem:[#allocation2 + $0x2] sm:$0xf] }
 0x19c   : > { %678 = vrot.lane.b32.xlu2 %v565_v53, %s2544_s8  ;;  %v2735_v56 = vpack.c.bf16 %v721_v55, %v721_v55  ;;  %v2474_v51 = vld [vmem:[%s3080_s5 + $0xe0] sm:$0xff] }
 0x19d   : > { %521 = vrot.lane.b32.xlu1 %v410_v54, %s2544_s8  ;;  %429 = vrot.lane.b32.xlu0 %v410_v54, %s2545_s9 }
 0x19e   : > { %1816 = vmatmul.msk.bf16.vlgmr.msra.gmra.mxu1 %vm455_vm3, %v410_v54  ;;  %v2449_v54 = vld [vmem:[%s3080_s5 + $0x18] sm:$0xff] }
 0x19f   : > { %816 = vmatpush.bf16.msra.mxu1 %v2441_v59 }
 0x1a3   : > { %817 = vmatpush.bf16.msra.mxu1 %v2440_v62 }
 0x1a4   : > { %835 = vrot.lane.b32.xlu2 %v2735_v56, %s2544_s8 }
 0x1a5   : > { %626 = vrot.lane.b32.xlu1 %v565_v53, %s2545_s9  ;;  %783 = vrot.lane.b32.xlu0 %v2735_v56, %s2545_s9 }
 0x1a7   : > { %818 = vmatpush.bf16.msra.mxu1 %v2439_v3  ;;  %v2473_v3 = vld [vmem:[%s3080_s5 + $0xd8] sm:$0xff] }
 0x1ab   : > { %819 = vmatpush.bf16.msra.mxu1 %v2438_v6  ;;  %v2446_v6 = vld [vmem:[%s3080_s5] sm:$0xff] }
 0x1ae   : > { %1866 = vmatmul.msk.bf16.vlgmr.msrb.gmra.mxu1 %vm455_vm3, %v565_v53 }
 0x1f6   : > { %v679_v22 = vpop.permute.xlu2 %678 }
 0x1fe   : > { %v836_v27 = vpop.permute.xlu2 %835 }
 0x20f   : > { %v522_v14 = vpop.permute.xlu1 %521  ;;  %v430_v15 = vpop.permute.xlu0 %429 }
 0x210   : > { %1799 = vmatmul.msk.bf16.vlgmr.msra.gmra.mxu0 %vm455_vm3, %v430_v15 }
 0x211   : > { %711 = vmatpush.bf16.msra.mxu0 %v2433_v13 }
 0x215   : > { %712 = vmatpush.bf16.msra.mxu0 %v2432_v16 }
 0x217   : > { %v627_v18 = vpop.permute.xlu1 %626  ;;  %v784_v19 = vpop.permute.xlu0 %783 }
 0x218   : > { %1891 = vmatmul.msk.bf16.vlgmr.msrb.gmra.mxu2 %vm455_vm3, %v627_v18  ;;  %1966 = vmatmul.msk.bf16.vlgmr.msra.gmra.mxu1 %vm455_vm3, %v784_v19 }
 0x219   : > { %713 = vmatpush.bf16.msra.mxu0 %v2431_v17  ;;  %1225 = vmatpush.bf16.msrb.mxu2 %v2477_v42 }
 0x21b   : > { %v508_v21 = vpop.f32.mrf.mxu1 }
 0x21d   : > { %714 = vmatpush.bf16.msra.mxu0 %v2430_v20  ;;  %1226 = vmatpush.bf16.msrb.mxu2 %v2476_v44  ;;  %v2461_v20 = vld [vmem:[%s3080_s5 + $0x78] sm:$0xff] }
 0x21e   : > { %990 = vmatpush.bf16.msrb.mxu3 %v2461_v20  ;;  %v2486_v20 = vld [vmem:[%s3080_s5 + $0x140] sm:$0xff] }
 0x220   : > { %1841 = vmatmul.msk.bf16.vlgmr.msrb.gmra.mxu0 %vm455_vm3, %v522_v14 }
 0x221   : > { %763 = vmatpush.bf16.msrb.mxu0 %v2437_v23  ;;  %1227 = vmatpush.bf16.msrb.mxu2 %v2475_v39  ;;  %v2454_v39 = vld [vmem:[%s3080_s5 + $0x40] sm:$0xff] }
 0x223   : > { %v510_v25 = vpop.f32.mrf.mxu1 }
 0x225   : > { %764 = vmatpush.bf16.msrb.mxu0 %v2436_v24  ;;  %1228 = vmatpush.bf16.msrb.mxu2 %v2474_v51  ;;  %v2460_v24 = vld [vmem:[%s3080_s5 + $0x70] sm:$0xff]  ;;  %v2483_v51 = vld [vmem:[%s3080_s5 + $0x128] sm:$0xff] }
 0x226   : > { %991 = vmatpush.bf16.msrb.mxu3 %v2460_v24 }
 0x228   : > { %1991 = vmatmul.msk.bf16.vlgmr.msra.gmra.mxu2 %vm455_vm3, %v836_v27 }
 0x229   : > { %765 = vmatpush.bf16.msrb.mxu0 %v2435_v26  ;;  %1229 = vmatpush.bf16.msrb.mxu2 %v2473_v3  ;;  %v2478_v3 = vld [vmem:[%s3080_s5 + $0x100] sm:$0xff] }
 0x22b   : > { %v611_v29 = vpop.f32.mrf.mxu1 }
 0x22d   : > { %766 = vmatpush.bf16.msrb.mxu0 %v2434_v28  ;;  %1230 = vmatpush.bf16.msrb.mxu2 %v2472_v5  ;;  %v2492_v5 = vld [vmem:[%s3080_s5 + $0x170] sm:$0xff] }
 0x230   : > { %1916 = vmatmul.msk.bf16.vlgmr.msra.gmra.mxu0 %vm455_vm3, %v679_v22 }
 0x231   : > { %1051 = vmatpush.bf16.msra.mxu0 %v2453_v41  ;;  %1231 = vmatpush.bf16.msrb.mxu2 %v2471_v7  ;;  %v2504_v7 = vld [vmem:[%s3080_s5 + $0x1d0] sm:$0xff] }
 0x233   : > { %v613_v30 = vpop.f32.mrf.mxu1 }
 0x235   : > { %1052 = vmatpush.bf16.msra.mxu0 %v2452_v43  ;;  %1232 = vmatpush.bf16.msrb.mxu2 %v2470_v8  ;;  %v2457_v43 = vld [vmem:[%s3080_s5 + $0x58] sm:$0xff]  ;;  %v2491_v8 = vld [vmem:[%s3080_s5 + $0x168] sm:$0xff] }
 0x239   : > { %1053 = vmatpush.bf16.msra.mxu0 %v2451_v47  ;;  %v2455_v47 = vld [vmem:[%s3080_s5 + $0x48] sm:$0xff] }
 0x23d   : > { %1054 = vmatpush.bf16.msra.mxu0 %v2450_v50  ;;  %v2467_v50 = vld [vmem:[%s3080_s5 + $0xa8] sm:$0xff] }
 0x240   : > { %1941 = vmatmul.msk.bf16.vlgmr.msrb.gmra.mxu0 %vm455_vm3, %v2735_v56 }
 0x241   : > { %1055 = vmatpush.bf16.msra.mxu0 %v2449_v54  ;;  %v2509_v54 = vld [vmem:[%s3080_s5 + $0x1f8] sm:$0xff] }
 0x242   : > { %1590 = vmatpush.bf16.msra.mxu2 %v2509_v54 }
 0x245   : > { %1056 = vmatpush.bf16.msra.mxu0 %v2448_v57  ;;  %v2508_v57 = vld [vmem:[%s3080_s5 + $0x1f0] sm:$0xff] }
 0x246   : > { %1591 = vmatpush.bf16.msra.mxu2 %v2508_v57 }
 0x249   : > { %1057 = vmatpush.bf16.msra.mxu0 %v2447_v4  ;;  %v2505_v4 = vld [vmem:[%s3080_s5 + $0x1d8] sm:$0xff] }
 0x24d   : > { %1058 = vmatpush.bf16.msra.mxu0 %v2446_v6  ;;  %v2500_v6 = vld [vmem:[%s3080_s5 + $0x1b0] sm:$0xff] }
 0x28d   : > { %v468_v31 = vpop.f32.mrf.mxu0 }
 0x28e   : > { %v509_v46 = vadd.f32 %v508_v21, %v468_v31 }
 0x295   : > { %v470_v32 = vpop.f32.mrf.mxu0  ;;  %v821_v33 = vpop.f32.mrf.mxu1 }
 0x29b   : > { %v664_v34 = vpop.f32.mrf.mxu2 }
 0x29d   : > { %v559_v35 = vpop.f32.mrf.mxu0  ;;  %v823_v36 = vpop.f32.mrf.mxu1 }
 0x29e   : > { %v563_v48 = vadd.f32 %v559_v35, %v509_v46  ;;  %v2459_v35 = vld [vmem:[%s3080_s5 + $0x68] sm:$0xff]  ;;  %v2456_v46 = vld [vmem:[%s3080_s5 + $0x50] sm:$0xff] }
 0x29f   : > { %992 = vmatpush.bf16.msrb.mxu3 %v2459_v35  ;;  %v2513_v35 = vld [vmem:[%s3080_s5 + $0x218] sm:$0xff] }
 0x2a0   : > { %v615_v53 = vadd.f32 %v611_v29, %v563_v48  ;;  %v2469_v29 = vld [vmem:[%s3080_s5 + $0xb8] sm:$0xff] }
 0x2a1   : > { %1136 = vmatpush.bf16.msrb.mxu1 %v2469_v29  ;;  %v2485_v48 = vld [vmem:[%s3080_s5 + $0x138] sm:$0xff]  ;;  %v2515_v29 = vld [vmem:[%s3080_s5 + $0x228] sm:$0xff] }
 0x2a2   : > { %v668_v55 = vadd.f32 %v664_v34, %v615_v53  ;;  %v2468_v34 = vld [vmem:[%s3080_s5 + $0xb0] sm:$0xff]  ;;  %v2482_v53 = vld [vmem:[%s3080_s5 + $0x120] sm:$0xff] }
 0x2a3   : > { %v666_v37 = vpop.f32.mrf.mxu2 }
 0x2a5   : > { %v561_v38 = vpop.f32.mrf.mxu0  ;;  %1137 = vmatpush.bf16.msrb.mxu1 %v2468_v34 }
 0x2a9   : > { %1138 = vmatpush.bf16.msrb.mxu1 %v2467_v50 }
 0x2ab   : > { %v873_v40 = vpop.f32.mrf.mxu2 }
 0x2ad   : > { %v716_v45 = vpop.f32.mrf.mxu0 }
 0x2ae   : > { %v720_v56 = vadd.f32 %v716_v45, %v668_v55  ;;  %v2465_v55 = vld [vmem:[%s3080_s5 + $0x98] sm:$0xff] }
 0x2b3   : > { %v875_v49 = vpop.f32.mrf.mxu2 }
 0x2b4   : > { %v2484_v49 = vld [vmem:[%s3080_s5 + $0x130] sm:$0xff] }
 0x2b5   : > { %v718_v52 = vpop.f32.mrf.mxu0 }
 0x2b6   : > { %v2466_v52 = vld [vmem:[%s3080_s5 + $0xa0] sm:$0xff] }
 0x2b7   : > { %1139 = vmatpush.bf16.msrb.mxu1 %v2466_v52 }
 0x2bb   : > { %1140 = vmatpush.bf16.msrb.mxu1 %v2465_v55 }
 0x2bd   : > { %v768_v58 = vpop.f32.mrf.mxu0 }
 0x2be   : > { %v772_v59 = vadd.f32 %v768_v58, %v720_v56  ;;  %v2481_v56 = vld [vmem:[%s3080_s5 + $0x118] sm:$0xff]  ;;  %v2464_v58 = vld [vmem:[%s3080_s5 + $0x90] sm:$0xff] }
 0x2bf   : > { %1141 = vmatpush.bf16.msrb.mxu1 %v2464_v58 }
 0x2c0   : > { %v825_v60 = vadd.f32 %v821_v33, %v772_v59  ;;  %v2480_v59 = vld [vmem:[%s3080_s5 + $0x110] sm:$0xff] }
 0x2c2   : > { %v877_v62 = vadd.f32 %v873_v40, %v825_v60  ;;  %v2458_v40 = vld [vmem:[%s3080_s5 + $0x60] sm:$0xff]  ;;  %v2507_v60 = vld [vmem:[%s3080_s5 + $0x1e8] sm:$0xff] }
 0x2c3   : > { %993 = vmatpush.bf16.msrb.mxu3 %v2458_v40  ;;  %1592 = vmatpush.bf16.msra.mxu2 %v2507_v60 }
 0x2c4   : > { %v882_v63 = vadd.f32 %v2532_v61, %v877_v62  ;;  %v2463_v61 = vld [vmem:[%s3080_s5 + $0x88] sm:$0xff] }
 0x2c5   : > { %v770_v0 = vpop.f32.mrf.mxu0  ;;  %v2479_v62 = vld [vmem:[%s3080_s5 + $0x108] sm:$0xff]  ;;  %1142 = vmatpush.bf16.msrb.mxu1 %v2463_v61 }
 0x2c6   : > { %v883_v1 = vmax.f32 %v882_v63, 0.0  ;;  %v2506_v63 = vld [vmem:[%s3080_s5 + $0x1e0] sm:$0xff] }
 0x2c7   : > { %994 = vmatpush.bf16.msrb.mxu3 %v2457_v43  ;;  %v2462_v0 = vld [vmem:[%s3080_s5 + $0x80] sm:$0xff]  ;;  %1593 = vmatpush.bf16.msra.mxu2 %v2506_v63 }
 0x2c8   : > { %v888_v2 = vrot.slane %v883_v1, 7  ;;  %v2493_v1 = vld [vmem:[%s3080_s5 + $0x178] sm:$0xff] }
 0x2c9   : > { %1143 = vmatpush.bf16.msrb.mxu1 %v2462_v0  ;;  %1413 = vmatpush.bf16.msrb.mxu0 %v2493_v1 }
 0x2ca   : > { %889 = vrot.lane.b32.xlu1 %v888_v2, %s2546_s30  ;;  %v2501_v2 = vld [vmem:[%s3080_s5 + $0x1b8] sm:$0xff] }
 0x2cb   : > { %995 = vmatpush.bf16.msrb.mxu3 %v2456_v46  ;;  %1594 = vmatpush.bf16.msra.mxu2 %v2505_v4 }
 0x2cd   : > { %1497 = vmatpush.bf16.msra.mxu1 %v2501_v2  ;;  %1414 = vmatpush.bf16.msrb.mxu0 %v2492_v5 }
 0x2cf   : > { %996 = vmatpush.bf16.msrb.mxu3 %v2455_v47  ;;  %1595 = vmatpush.bf16.msra.mxu2 %v2504_v7 }
 0x2d1   : > { %1498 = vmatpush.bf16.msra.mxu1 %v2500_v6  ;;  %1415 = vmatpush.bf16.msrb.mxu0 %v2491_v8 }
 0x2d3   : > { %997 = vmatpush.bf16.msrb.mxu3 %v2454_v39  ;;  %v2510_v39 = vld [vmem:[%s3080_s5 + $0x200] sm:$0xff] }
 0x2d7   : > { %1328 = vmatpush.bf16.msra.mxu3 %v2485_v48 }
 0x2db   : > { %1329 = vmatpush.bf16.msra.mxu3 %v2484_v49 }
 0x2df   : > { %1330 = vmatpush.bf16.msra.mxu3 %v2483_v51 }
 0x2e3   : > { %1331 = vmatpush.bf16.msra.mxu3 %v2482_v53 }
 0x2e7   : > { %1332 = vmatpush.bf16.msra.mxu3 %v2481_v56 }
 0x2eb   : > { %1333 = vmatpush.bf16.msra.mxu3 %v2480_v59 }
 0x2ef   : > { %1334 = vmatpush.bf16.msra.mxu3 %v2479_v62 }
 0x2f3   : > { %1335 = vmatpush.bf16.msra.mxu3 %v2478_v3 }
 0x33c   : > { %v890_v9 = vpop.permute.xlu1 %889 }
 0x33d   : > { %893 = vst.msk [vmem:[#allocation3] sm:$0x1e] %vm892_vm5, %v890_v9 }
 0x33e   : > { %895 = vst.msk [vmem:[#allocation3 + $0x8] sm:$0x1e] %vm894_vm6, %v890_v9  ;;  %v2499_v9 = vld [vmem:[%s3080_s5 + $0x1a8] sm:$0xff] }
 0x33f   : > { %1499 = vmatpush.bf16.msra.mxu1 %v2499_v9  ;;  %v2533_v9 = vld [vmem:[%s3081_s6] ss:$0 sm:$0xff] }
 0x344   : > { %v896_v10 = vld [vmem:[#allocation3] sm:$0xf] }
 0x345   : > { %v1239_v11 = vld [vmem:[#allocation3] sm:$0x1e]  ;;  %v914_v13 = vld [vmem:[#allocation3 + $0x8] sm:$0xf]  ;;  %v897_v14 = vpack.c.bf16 %v896_v10, %v896_v10 }
 0x346   : > { %v1150_v12 = vld [vmem:[#allocation3] sm:$0x1e]  ;;  %v1241_v15 = vpack.c.bf16 %v1239_v11, %v1239_v11  ;;  %v1240_v17 = vld [vmem:[#allocation3 + $0x8] sm:$0x1e]  ;;  %v915_v18 = vpack.c.bf16 %v914_v13, %v914_v13  ;;  %v2490_v11 = vld [vmem:[%s3080_s5 + $0x160] sm:$0xff] }
 0x347   : > { %v1151_v16 = vpack.c.bf16 %v1150_v12, %v1150_v12  ;;  %v1242_v19 = vpack.c.bf16 %v1240_v17, %v1240_v17  ;;  %935 = vrot.lane.b32.xlu2 %v897_v14, %s2544_s8  ;;  %1059 = vmatmul.bf16.vlgmr.msra.gmra.mxu0 %v897_v14  ;;  %v1511_v37 = vld [vmem:[#allocation3] sm:$0x3c]  ;;  %v1512_v38 = vld [vmem:[#allocation3 + $0x8] sm:$0x3c]  ;;  %v2498_v12 = vld [vmem:[%s3080_s5 + $0x1a0] sm:$0xff] }
 0x348   : > { %v1263_v21 = vshll.u32 %v1241_v15, 16  ;;  %937 = vrot.lane.b32.xlu0 %v915_v18, %s2544_s8  ;;  %v1261_v25 = vshrl.u32 %v1241_v15, 16  ;;  %v1513_v41 = vpack.c.bf16 %v1511_v37, %v1511_v37  ;;  %v1514_v42 = vpack.c.bf16 %v1512_v38, %v1512_v38  ;;  %v2503_v10 = vld [vmem:[%s3080_s5 + $0x1c8] sm:$0xff]  ;;  %1416 = vmatpush.bf16.msrb.mxu0 %v2490_v11  ;;  %v2502_v13 = vld [vmem:[%s3080_s5 + $0x1c0] sm:$0xff]  ;;  %v2497_v15 = vld [vmem:[%s3080_s5 + $0x198] sm:$0xff] }
 0x349   : > { %v1172_v22 = vshll.u32 %v1151_v16, 16  ;;  %v1270_v23 = vshll.u32 %v1242_v19, 16  ;;  %v1170_v27 = vshrl.u32 %v1151_v16, 16  ;;  %v1268_v33 = vshrl.u32 %v1242_v19, 16  ;;  %1596 = vmatpush.bf16.msra.mxu2 %v2503_v10  ;;  %1500 = vmatpush.bf16.msra.mxu1 %v2498_v12  ;;  %v2488_v16 = vld [vmem:[%s3080_s5 + $0x150] sm:$0xff]  ;;  %v2495_v19 = vld [vmem:[%s3080_s5 + $0x188] sm:$0xff] }
 0x34a   : > { %v1265_v26 = vrot.slane %v1263_v21, 1  ;;  %v1534_v44 = vrot.slane %v1513_v41, 1  ;;  %v1535_v45 = vrot.slane %v1514_v42, 1  ;;  %v2496_v17 = vld [vmem:[%s3080_s5 + $0x190] sm:$0xff]  ;;  %v2494_v21 = vld [vmem:[%s3080_s5 + $0x180] sm:$0xff] }
 0x34b   : > { %v1174_v28 = vrot.slane %v1172_v22, 1  ;;  %v1272_v30 = vrot.slane %v1270_v23, 1  ;;  %v2517_v23 = vld [vmem:[%s3080_s5 + $0x238] sm:$0xff]  ;;  %v2512_v42 = vld [vmem:[%s3080_s5 + $0x210] sm:$0xff]  ;;  %v1427_v46 = vld [vmem:[#allocation3] sm:$0x3c] }
 0x34c   : > { %v1266_v31 = vor.u32 %v1265_v26, %v1261_v25  ;;  %v2516_v26 = vld [vmem:[%s3080_s5 + $0x230] sm:$0xff]  ;;  %v1428_v47 = vpack.c.bf16 %v1427_v46, %v1427_v46 }
 0x34d   : > { %v1175_v32 = vor.u32 %v1174_v28, %v1170_v27  ;;  %v1273_v36 = vor.u32 %v1272_v30, %v1268_v33  ;;  %1597 = vmatpush.bf16.msra.mxu2 %v2502_v13  ;;  %1501 = vmatpush.bf16.msra.mxu1 %v2497_v15 }
 0x34e   : > { %1274 = vrot.lane.b32.xlu1 %v1266_v31, %s2544_s8  ;;  %v1447_v52 = vrot.slane %v1428_v47, 1 }
 0x34f   : > { %1233 = vmatmul.bf16.vlgmr.msrb.gmra.mxu2 %v1175_v32  ;;  %1276 = vrot.lane.b32.xlu2 %v1273_v36, %s2544_s8  ;;  %v2514_v32 = vld [vmem:[%s3080_s5 + $0x220] sm:$0xff] }
 0x350   : > { %1081 = vrot.lane.b32.xlu0 %v897_v14, %s2547_s11  ;;  %v2489_v14 = vld [vmem:[%s3080_s5 + $0x158] sm:$0xff] }
 0x351   : > { %1417 = vmatpush.bf16.msrb.mxu0 %v2489_v14  ;;  %1502 = vmatpush.bf16.msra.mxu1 %v2496_v17 }
 0x355   : > { %1418 = vmatpush.bf16.msrb.mxu0 %v2488_v16  ;;  %1503 = vmatpush.bf16.msra.mxu1 %v2495_v19 }
 0x356   : > { %1083 = vrot.lane.b32.xlu1 %v915_v18, %s2547_s11  ;;  %v2487_v18 = vld [vmem:[%s3080_s5 + $0x148] sm:$0xff] }
 0x357   : > { %1536 = vrot.lane.b32.xlu2 %v1534_v44, %s2544_s8 }
 0x358   : > { %1538 = vrot.lane.b32.xlu0 %v1535_v45, %s2544_s8 }
 0x359   : > { %1419 = vmatpush.bf16.msrb.mxu0 %v2487_v18  ;;  %1504 = vmatpush.bf16.msra.mxu1 %v2494_v21 }
 0x35d   : > { %1420 = vmatpush.bf16.msrb.mxu0 %v2486_v20 }
 0x35e   : > { %1621 = vrot.lane.b32.xlu1 %v1534_v44, %s2547_s11 }
 0x35f   : > { %1623 = vrot.lane.b32.xlu2 %v1535_v45, %s2547_s11  ;;  %v2511_v45 = vld [vmem:[%s3080_s5 + $0x208] sm:$0xff] }
 0x360   : > { %1359 = vrot.lane.b32.xlu0 %v1266_v31, %s2547_s11 }
 0x366   : > { %1361 = vrot.lane.b32.xlu1 %v1273_v36, %s2547_s11  ;;  %s1755_s11 = sshll.u32 %s3084_s25, 2 }
 0x367   : > { %s273_s14 = scalar_lea.vmem %s3082_s7, %s1755_s11 }
 0x3a1   : > { %v936_v22 = vpop.permute.xlu2 %935 }
 0x3a9   : > { %v1277_v28 = vpop.permute.xlu2 %1276 }
 0x3b1   : > { %v1537_v36 = vpop.permute.xlu2 %1536 }
 0x3b9   : > { %v1624_v53 = vpop.permute.xlu2 %1623 }
 0x3ba   : > { %v938_v24 = vpop.permute.xlu0 %937 }
 0x3bb   : > { %v940_v25 = vsel %vm939_vm7, %v936_v22, %v938_v24 }
 0x3bc   : > { %998 = vmatmul.bf16.vlgmr.msrb.gmra.mxu3 %v940_v25 }
 0x3bd   : > { %1675 = vmatpush.bf16.msrb.mxu3 %v2517_v23 }
 0x3c0   : > { %v1275_v27 = vpop.permute.xlu1 %1274 }
 0x3c1   : > { %1676 = vmatpush.bf16.msrb.mxu3 %v2516_v26  ;;  %v1278_v38 = vsel %vm939_vm7, %v1275_v27, %v1277_v28 }
 0x3c2   : > { %v1082_v30 = vpop.permute.xlu0 %1081 }
 0x3c4   : > { %v1060_v31 = vpop.f32.mrf.mxu0 }
 0x3c5   : > { %1677 = vmatpush.bf16.msrb.mxu3 %v2515_v29 }
 0x3c8   : > { %v1084_v33 = vpop.permute.xlu1 %1083 }
 0x3c9   : > { %v1086_v34 = vsel %vm455_vm3, %v1082_v30, %v1084_v33  ;;  %1678 = vmatpush.bf16.msrb.mxu3 %v2514_v32 }
 0x3ca   : > { %1144 = vmatmul.bf16.vlgmr.msrb.gmra.mxu1 %v1086_v34  ;;  %v1539_v37 = vpop.permute.xlu0 %1538 }
 0x3cb   : > { %v1540_v40 = vsel %vm939_vm7, %v1537_v36, %v1539_v37 }
 0x3cc   : > { %1336 = vmatmul.bf16.vlgmr.msra.gmra.mxu3 %v1278_v38  ;;  %1598 = vmatmul.bf16.vlgmr.msra.gmra.mxu2 %v1540_v40  ;;  %v1062_v41 = vpop.f32.mrf.mxu0 }
 0x3cd   : > { %1679 = vmatpush.bf16.msrb.mxu3 %v2513_v35 }
 0x3d0   : > { %v1622_v43 = vpop.permute.xlu1 %1621 }
 0x3d1   : > { %1680 = vmatpush.bf16.msrb.mxu3 %v2512_v42  ;;  %v1625_v54 = vsel %vm455_vm3, %v1622_v43, %v1624_v53 }
 0x3d2   : > { %v1234_v44 = vpop.f32.mrf.mxu2  ;;  %v1360_v48 = vpop.permute.xlu0 %1359 }
 0x3d5   : > { %1681 = vmatpush.bf16.msrb.mxu3 %v2511_v45 }
 0x3d8   : > { %v1362_v49 = vpop.permute.xlu1 %1361 }
 0x3d9   : > { %v1363_v50 = vsel %vm455_vm3, %v1360_v48, %v1362_v49  ;;  %1682 = vmatpush.bf16.msrb.mxu3 %v2510_v39 }
 0x3da   : > { %v1236_v51 = vpop.f32.mrf.mxu2  ;;  %1421 = vmatmul.bf16.vlgmr.msrb.gmra.mxu0 %v1363_v50  ;;  %1505 = vmatmul.bf16.vlgmr.msra.gmra.mxu1 %v1447_v52 }
 0x3dc   : > { %1683 = vmatmul.bf16.vlgmr.msrb.gmra.mxu3 %v1625_v54 }
 0x43f   : > { %v999_v55 = vpop.f32.mrf.mxu3 }
 0x440   : > { %v1061_v58 = vadd.f32 %v1060_v31, %v999_v55 }
 0x447   : > { %v1145_v56 = vpop.f32.mrf.mxu1  ;;  %v1001_v57 = vpop.f32.mrf.mxu3 }
 0x448   : > { %v1149_v60 = vadd.f32 %v1145_v56, %v1061_v58 }
 0x44a   : > { %v1238_v63 = vadd.f32 %v1234_v44, %v1149_v60 }
 0x44f   : > { %v1147_v59 = vpop.f32.mrf.mxu1  ;;  %v1337_v61 = vpop.f32.mrf.mxu3 }
 0x450   : > { %v1599_v62 = vpop.f32.mrf.mxu2  ;;  %v1341_v0 = vadd.f32 %v1337_v61, %v1238_v63 }
 0x457   : > { %v1422_v1 = vpop.f32.mrf.mxu0  ;;  %v1339_v2 = vpop.f32.mrf.mxu3 }
 0x458   : > { %v1426_v3 = vadd.f32 %v1422_v1, %v1341_v0  ;;  %v1506_v4 = vpop.f32.mrf.mxu1  ;;  %v1601_v5 = vpop.f32.mrf.mxu2 }
 0x45a   : > { %v1510_v6 = vadd.f32 %v1506_v4, %v1426_v3 }
 0x45c   : > { %v1603_v8 = vadd.f32 %v1599_v62, %v1510_v6 }
 0x45f   : > { %v1424_v7 = vpop.f32.mrf.mxu0  ;;  %v1684_v11 = vpop.f32.mrf.mxu3 }
 0x460   : > { %v1508_v10 = vpop.f32.mrf.mxu1  ;;  %v1688_v12 = vadd.f32 %v1684_v11, %v1603_v8 }
 0x462   : > { %v1693_v13 = vadd.f32 %v2533_v9, %v1688_v12 }
 0x464   : > { %v1694_v14 = vmax.f32 %v1693_v13, 0.0 }
 0x466   : > { %1695 = vst [vmem:[%s273_s14] sm:$0xf] %v1694_v14 }
 0x467   : > { %v1686_v15 = vpop.f32.mrf.mxu3 }
 0x468 PF: > { %s17_s24 = sadd.s32 1, %s2540_s24  }
 0x469   : > { %p14_p4 = scmp.ge.s32.totalorder %s17_s24, 4  }
 0x46b   :  { %16 = sbr.rel (!%p14_p4) target bundleno = 1 (0x1), region = 96 }

</bundles_post_ra>
